<compile_context>
chip_gen: v7x
topology: tpu7x:2x2x1
jax: 0.10.0
libtpu: 0.0.40
codegen_flags: <defaults>
</compile_context>

<pallas_src>
import functools
import math

import jax
import jax.numpy as jnp
from jax.experimental import pallas as pl
from jax.experimental.pallas import tpu as pltpu

_VMEM_LIMIT_BYTES = 64 * 1024 * 1024
_BN_EPS = 1e-5


def _relu(x):
    return jnp.maximum(x, 0.0)


# ---------------------------------------------------------------------------
# Kernel A: encoder + theta + online softmax statistics of the beta logits.
# Grid: (num_V_tiles,), "arbitrary" (reduction over the vocab axis).
# ---------------------------------------------------------------------------
def _foto_encode_stats_kernel(*refs, n_groups, approx_recip, use_bf16):
    G = n_groups
    n_in = 2 * G + 24
    n_out = 3 * G + 2
    in_refs = refs[:n_in]
    out_refs = refs[n_in:n_in + n_out]
    scratch = refs[n_in + n_out:]

    x_refs = in_refs[0:G]                      # per-group (rows, TV) vocab tiles
    eps_refs = in_refs[G:2 * G]                # per-group (rows, C) reparam noise
    (w1_ref, b1_ref, w2_ref, b2_ref, wm_ref, bm_ref, wlv_ref, blv_ref,
     g_mean_ref, be_mean_ref, g_lv_ref, be_lv_ref) = in_refs[2 * G:2 * G + 12]
    (mu_z_ref, wc1_ref, bc1_ref, wc2_ref, bc2_ref, wc_ref, bc_ref,
     g_phi_ref, be_phi_ref, g_x_ref, be_x_ref) = in_refs[2 * G + 12:2 * G + 23]
    embT_ref = in_refs[2 * G + 23]             # (E, TV) tile of emb_words^T

    z_refs = out_refs[0:G]
    zx_refs = out_refs[G:2 * G]
    th_refs = out_refs[2 * G:3 * G]
    zc_ref = out_refs[3 * G]
    lse_ref = out_refs[3 * G + 1]

    acc_refs = scratch[0:G]                    # per-group (rows, H1) f32 accumulators
    m_sc = scratch[G]                          # (T, 1) running max of beta logits
    l_sc = scratch[G + 1]                      # (T, 1) running sum of exp

    k = pl.program_id(0)
    nv = pl.num_programs(0)

    @pl.when(k == 0)
    def _init():
        for a in acc_refs:
            a[...] = jnp.zeros_like(a)
        m_sc[...] = jnp.full_like(m_sc, -jnp.inf)
        l_sc[...] = jnp.zeros_like(l_sc)

    # ---- accumulate the first encoder layer over this vocab tile ----
    w1_t = w1_ref[...]
    if use_bf16:
        w1_t = w1_t.astype(jnp.bfloat16)
    for xr, ar in zip(x_refs, acc_refs):
        xt = xr[...]
        if use_bf16:
            xt = xt.astype(jnp.bfloat16)
        ar[...] += jnp.dot(xt, w1_t, preferred_element_type=jnp.float32)

    # ---- online max / sum-exp of beta logits over this vocab tile ----
    mu_z = mu_z_ref[...]                                            # (T, E) f32
    emb_t = embT_ref[...]                                           # (E, TV)
    if use_bf16:
        mu_mm = mu_z.astype(jnp.bfloat16)
        emb_mm = emb_t.astype(jnp.bfloat16)
    else:
        mu_mm, emb_mm = mu_z, emb_t
    logits = jnp.dot(mu_mm, emb_mm, preferred_element_type=jnp.float32)   # (T, TV)
    t_max = jnp.max(logits, axis=-1, keepdims=True)                 # (T, 1)
    m_prev = m_sc[...]
    m_new = jnp.maximum(m_prev, t_max)
    l_sc[...] = (l_sc[...] * jnp.exp(m_prev - m_new)
                 + jnp.sum(jnp.exp(logits - m_new), axis=-1, keepdims=True))
    m_sc[...] = m_new

    # ---- finalize once all vocab tiles have been accumulated ----
    @pl.when(k == nv - 1)
    def _finalize():
        def _lin(a, w_ref, b_ref):
            return jnp.dot(a, w_ref[...], preferred_element_type=jnp.float32) + b_ref[...]

        def _bn_groups(xs, g_ref, b_ref):
            # BatchNorm1d (training mode, biased variance) over the joint batch of
            # all groups, without ever materializing the concatenated batch.
            n = sum(x.shape[0] for x in xs)
            mean = sum([jnp.sum(x, axis=0, keepdims=True) for x in xs]) / n
            var = sum([jnp.sum((x - mean) ** 2, axis=0, keepdims=True) for x in xs]) / n
            inv = jax.lax.rsqrt(var + _BN_EPS) * g_ref[...]
            return [(x - mean) * inv + b_ref[...] for x in xs]

        # encoder tail per group (pre-BN).  TODO(synk): nn.Dropout treated as identity.
        pms, plvs = [], []
        for ar in acc_refs:
            en1 = _relu(ar[...] + b1_ref[...])
            en2 = _relu(_lin(en1, w2_ref, b2_ref))
            pms.append(_lin(en2, wm_ref, bm_ref))
            plvs.append(_lin(en2, wlv_ref, blv_ref))
        pms = _bn_groups(pms, g_mean_ref, be_mean_ref)       # posterior_mean
        plvs = _bn_groups(plvs, g_lv_ref, be_lv_ref)         # posterior_logvar

        # reparameterized sample: sqrt(exp(lv)) == exp(0.5 * lv)
        zs = [pm + jnp.exp(0.5 * plv) * er[...]
              for pm, plv, er in zip(pms, plvs, eps_refs)]
        zxs = _bn_groups(zs, g_x_ref, be_x_ref)              # decoder_x_bn(z)

        # topic coordinates from mu_z
        c1 = _relu(_lin(mu_z, wc1_ref, bc1_ref))
        c2 = _relu(_lin(c1, wc2_ref, bc2_ref))
        topics = _lin(c2, wc_ref, bc_ref)                    # (T, C)
        zc = _bn_groups([topics], g_phi_ref, be_phi_ref)[0]  # decoder_phi_bn(topics)

        # Gram-form doc-topic logits: zx.zc - 0.5*||zc||^2  (the per-row ||zx||^2
        # term is constant along the topic axis, so it cancels in the softmax).
        ones_row = jnp.ones((1, zc.shape[1]), jnp.float32)
        zc_half_sq_row = 0.5 * jax.lax.dot_general(
            ones_row, zc * zc, (((1,), (1,)), ((), ())),
            preferred_element_type=jnp.float32)              # (1, T)

        zc_ref[...] = zc
        lse_ref[...] = m_sc[...] + jnp.log(l_sc[...])        # log-sum-exp of beta logits

        for g in range(G):
            cross = jax.lax.dot_general(
                zxs[g], zc, (((1,), (1,)), ((), ())),
                preferred_element_type=jnp.float32)          # (rows_g, T)
            lg = cross - zc_half_sq_row
            lmax = jnp.max(lg, axis=-1, keepdims=True)
            e = jnp.exp(lg - lmax)
            den = jnp.sum(e, axis=-1, keepdims=True)
            inv = pl.reciprocal(den, approx=True) if approx_recip else 1.0 / den
            z_refs[g][...] = zs[g]
            zx_refs[g][...] = zxs[g]
            th_refs[g][...] = e * inv


# ---------------------------------------------------------------------------
# Kernel B: decode.  Grid: (num_V_tiles,), "parallel" (independent vocab tiles).
# beta's softmax normalizer is folded into lse, so no (T, V) beta temp.
# ---------------------------------------------------------------------------
def _foto_recon_kernel(mu_z_ref, embT_ref, lse_ref, theta_ref, recon_ref, *, use_bf16):
    mu_z = mu_z_ref[...]
    emb = embT_ref[...]
    if use_bf16:
        mu_z = mu_z.astype(jnp.bfloat16)
        emb = emb.astype(jnp.bfloat16)
    logits = jnp.dot(mu_z, emb, preferred_element_type=jnp.float32)   # (T, TV)
    beta_tile = jnp.exp(logits - lse_ref[...])                        # normalized beta tile
    theta = theta_ref[...]
    if use_bf16:
        theta = theta.astype(jnp.bfloat16)
        beta_mm = beta_tile.astype(jnp.bfloat16)
    else:
        beta_mm = beta_tile
    recon_ref[...] = jnp.dot(theta, beta_mm, preferred_element_type=jnp.float32)


# ---------------------------------------------------------------------------
# Host-side wrapper.
# ---------------------------------------------------------------------------
def foto_forward(params, input_, input_keywords_as_docs, eps, first_batch=True,
                 tile_v=256, use_bf16=False, approx_recip=True):
    has_keys = bool(first_batch)
    xs = (input_, input_keywords_as_docs) if has_keys else (input_,)
    G = len(xs)
    rows = tuple(int(x.shape[0]) for x in xs)
    nd = rows[0]
    N = sum(rows)
    V = int(input_.shape[1])
    C = int(params["g_x"].shape[1])
    T = int(params["mu_z"].shape[0])
    E = int(params["mu_z"].shape[1])
    H1 = int(params["w1"].shape[1])
    embT = params["emb_words_T"]

    # TODO(synk): ragged vocab tiling (mask padded columns); fall back to one tile.
    tv = tile_v if (tile_v <= V and V % tile_v == 0) else V
    nv = V // tv

    eps_groups = (eps[:nd], eps[nd:N]) if has_keys else (eps[:nd],)

    def _resident(a):
        return pl.BlockSpec(a.shape, lambda k: (0, 0))

    inputs = xs + eps_groups + (
        params["w1"], params["b1"], params["w2"], params["b2"],
        params["wm"], params["bm"], params["wlv"], params["blv"],
        params["g_mean"], params["be_mean"], params["g_lv"], params["be_lv"],
        params["mu_z"], params["wc1"], params["bc1"], params["wc2"], params["bc2"],
        params["wc"], params["bc"],
        params["g_phi"], params["be_phi"], params["g_x"], params["be_x"],
        embT,
    )

    in_specs = (
        [pl.BlockSpec((r, tv), lambda k: (0, k)) for r in rows]        # x tiles over V
        + [_resident(e) for e in eps_groups]
        + [pl.BlockSpec((tv, H1), lambda k: (k, 0))]                   # w1 tiles over V
        + [_resident(a) for a in inputs[2 * G + 1:2 * G + 23]]         # small params
        + [pl.BlockSpec((E, tv), lambda k: (0, k))]                    # emb_words_T tiles
    )

    out_shape = (
        tuple(jax.ShapeDtypeStruct((r, C), jnp.float32) for r in rows)     # z per group
        + tuple(jax.ShapeDtypeStruct((r, C), jnp.float32) for r in rows)   # zx per group
        + tuple(jax.ShapeDtypeStruct((r, T), jnp.float32) for r in rows)   # theta per group
        + (jax.ShapeDtypeStruct((T, C), jnp.float32),                      # zc (zphi)
           jax.ShapeDtypeStruct((T, 1), jnp.float32))                      # lse of beta logits
    )
    out_specs = tuple(pl.BlockSpec(s.shape, lambda k: (0, 0)) for s in out_shape)

    scratch_shapes = (
        [pltpu.VMEM((r, H1), jnp.float32) for r in rows]
        + [pltpu.VMEM((T, 1), jnp.float32), pltpu.VMEM((T, 1), jnp.float32)]
    )

    outs = pl.pallas_call(
        functools.partial(_foto_encode_stats_kernel, n_groups=G,
                          approx_recip=approx_recip, use_bf16=use_bf16),
        out_shape=out_shape,
        grid_spec=pltpu.PrefetchScalarGridSpec(
            num_scalar_prefetch=0,
            grid=(nv,),
            in_specs=in_specs,
            out_specs=out_specs,
            scratch_shapes=scratch_shapes,
        ),
        compiler_params=pltpu.CompilerParams(
            dimension_semantics=("arbitrary",),
            vmem_limit_bytes=_VMEM_LIMIT_BYTES,
        ),
    )(*inputs)

    zs = outs[0:G]
    zxs = outs[G:2 * G]
    ths = outs[2 * G:3 * G]
    zc = outs[3 * G]
    lse = outs[3 * G + 1]

    z = zs[0] if G == 1 else jnp.concatenate(zs, axis=0)          # tiny (N, C)
    zx = zxs[0] if G == 1 else jnp.concatenate(zxs, axis=0)       # tiny (N, C)
    theta = ths[0] if G == 1 else jnp.concatenate(ths, axis=0)    # tiny (N, T)

    recon = pl.pallas_call(
        functools.partial(_foto_recon_kernel, use_bf16=use_bf16),
        out_shape=jax.ShapeDtypeStruct((N, V), jnp.float32),
        grid_spec=pltpu.PrefetchScalarGridSpec(
            num_scalar_prefetch=0,
            grid=(nv,),
            in_specs=[
                pl.BlockSpec((T, E), lambda k: (0, 0)),
                pl.BlockSpec((E, tv), lambda k: (0, k)),
                pl.BlockSpec((T, 1), lambda k: (0, 0)),
                pl.BlockSpec((N, T), lambda k: (0, 0)),
            ],
            out_specs=pl.BlockSpec((N, tv), lambda k: (0, k)),
        ),
        compiler_params=pltpu.CompilerParams(
            dimension_semantics=("parallel",),
            vmem_limit_bytes=_VMEM_LIMIT_BYTES,
        ),
    )(params["mu_z"], embT, lse, theta)

    return z, recon, zx.reshape(N, 1, C), zc, theta


# ---------------------------------------------------------------------------
# Parameter init (mirrors nn.Module __init__ shapes) + one-time host preparation.
# ---------------------------------------------------------------------------
def init_params(key, num_input, en1_units, en2_units, num_coordinate, num_topic,
                word_emb_size, embedding_words):
    ks = iter(jax.random.split(key, 32))

    def linear(fan_in, fan_out):
        bound = 1.0 / math.sqrt(fan_in)
        w = jax.random.uniform(next(ks), (fan_in, fan_out), jnp.float32, -bound, bound)
        b = jax.random.uniform(next(ks), (1, fan_out), jnp.float32, -bound, bound)
        return w, b

    p = {}
    p["w1"], p["b1"] = linear(num_input, en1_units)          # en1_fc
    p["w2"], p["b2"] = linear(en1_units, en2_units)          # en2_fc
    p["wm"], p["bm"] = linear(en2_units, num_coordinate)     # mean_fc
    p["wlv"], p["blv"] = linear(en2_units, num_coordinate)   # logvar_fc
    p["wc1"], p["bc1"] = linear(word_emb_size, 100)          # c1_fc
    p["wc2"], p["bc2"] = linear(100, 100)                    # c2_fc
    p["wc"], p["bc"] = linear(100, num_coordinate)           # c_fc (out=2)

    ones_c = jnp.ones((1, num_coordinate), jnp.float32)
    zeros_c = jnp.zeros((1, num_coordinate), jnp.float32)
    p["g_mean"], p["be_mean"] = ones_c, zeros_c              # mean_bn
    p["g_lv"], p["be_lv"] = ones_c, zeros_c                  # logvar_bn
    p["g_phi"], p["be_phi"] = ones_c, zeros_c                # decoder_phi_bn
    p["g_x"], p["be_x"] = ones_c, zeros_c                    # decoder_x_bn
    # TODO(synk): BatchNorm running_mean/var updates not modeled (training batch stats only).

    p["mu_z"] = 0.01 * jax.random.normal(next(ks), (num_topic, word_emb_size), jnp.float32)
    p["emb_words"] = embedding_words
    return p


def prepare_params(params, lane_multiple=128):
    """One-time host prep: zero-pad hidden widths to lane multiples (exact through
    ReLU / zero bias) and pre-transpose the word embeddings for the decode matmul."""

    def pad_axis(a, axis, mult):
        size = a.shape[axis]
        target = ((size + mult - 1) // mult) * mult
        if target == size:
            return a
        pad = [(0, 0)] * a.ndim
        pad[axis] = (0, target - size)
        return jnp.pad(a, pad)

    m = lane_multiple
    p = dict(params)
    p["w1"] = pad_axis(params["w1"], 1, m)
    p["b1"] = pad_axis(params["b1"], 1, m)
    p["w2"] = pad_axis(pad_axis(params["w2"], 0, m), 1, m)
    p["b2"] = pad_axis(params["b2"], 1, m)
    p["wm"] = pad_axis(params["wm"], 0, m)
    p["wlv"] = pad_axis(params["wlv"], 0, m)
    p["wc1"] = pad_axis(params["wc1"], 1, m)
    p["bc1"] = pad_axis(params["bc1"], 1, m)
    p["wc2"] = pad_axis(pad_axis(params["wc2"], 0, m), 1, m)
    p["bc2"] = pad_axis(params["bc2"], 1, m)
    p["wc"] = pad_axis(params["wc"], 0, m)
    p["emb_words_T"] = jnp.transpose(params["emb_words"])    # (E, V)
    return p


if __name__ == "__main__":
    # small, forward-consistent shapes
    num_input = 512         # vocab size (multiple of the 256 vocab tile)
    en1_units_x = 100
    en2_units_x = 100
    num_coordinate = 2      # c_fc outputs 2 -> num_coordinate must be 2
    num_topic = 8
    word_emb_size = 300     # c1_fc expects 300-d input
    num_keyword = 4
    bs = 8

    key = jax.random.PRNGKey(0)
    k_params, k_x, k_kw, k_eps, k_emb = jax.random.split(key, 5)

    embedding_words = jax.random.normal(k_emb, (num_input, word_emb_size), jnp.float32)
    raw_params = init_params(k_params, num_input, en1_units_x, en2_units_x,
                             num_coordinate, num_topic, word_emb_size, embedding_words)
    params = prepare_params(raw_params)

    input_ = jax.random.uniform(k_x, (bs, num_input), jnp.float32)
    input_keywords_as_docs = jax.random.uniform(k_kw, (num_keyword, num_input), jnp.float32)

    first_batch = True
    N = bs + num_keyword if first_batch else bs
    eps = jax.random.normal(k_eps, (N, num_coordinate), jnp.float32)  # reparam noise

    outs = foto_forward(params, input_, input_keywords_as_docs, eps,
                        first_batch=first_batch, tile_v=256)
    jax.block_until_ready(outs)

    z, recon, zx, zphi, theta = outs
    assert z.shape == (N, num_coordinate)
    assert recon.shape == (N, num_input)
    assert zx.shape == (N, 1, num_coordinate)
    assert zphi.shape == (num_topic, num_coordinate)
    assert theta.shape == (N, num_topic)
    print("KERNEL_OK")
</pallas_src>

<mosaic_0001>
module attributes {stable_mosaic.version = 11 : i64} {
  func.func @_foto_encode_stats_kernel(%arg0: i32, %arg1: memref<8x256xf32, #tpu.memory_space<vmem>>, %arg2: memref<4x256xf32, #tpu.memory_space<vmem>>, %arg3: memref<8x2xf32, #tpu.memory_space<vmem>>, %arg4: memref<4x2xf32, #tpu.memory_space<vmem>>, %arg5: memref<256x128xf32, #tpu.memory_space<vmem>>, %arg6: memref<1x128xf32, #tpu.memory_space<vmem>>, %arg7: memref<128x128xf32, #tpu.memory_space<vmem>>, %arg8: memref<1x128xf32, #tpu.memory_space<vmem>>, %arg9: memref<128x2xf32, #tpu.memory_space<vmem>>, %arg10: memref<1x2xf32, #tpu.memory_space<vmem>>, %arg11: memref<128x2xf32, #tpu.memory_space<vmem>>, %arg12: memref<1x2xf32, #tpu.memory_space<vmem>>, %arg13: memref<1x2xf32, #tpu.memory_space<vmem>>, %arg14: memref<1x2xf32, #tpu.memory_space<vmem>>, %arg15: memref<1x2xf32, #tpu.memory_space<vmem>>, %arg16: memref<1x2xf32, #tpu.memory_space<vmem>>, %arg17: memref<8x300xf32, #tpu.memory_space<vmem>>, %arg18: memref<300x128xf32, #tpu.memory_space<vmem>>, %arg19: memref<1x128xf32, #tpu.memory_space<vmem>>, %arg20: memref<128x128xf32, #tpu.memory_space<vmem>>, %arg21: memref<1x128xf32, #tpu.memory_space<vmem>>, %arg22: memref<128x2xf32, #tpu.memory_space<vmem>>, %arg23: memref<1x2xf32, #tpu.memory_space<vmem>>, %arg24: memref<1x2xf32, #tpu.memory_space<vmem>>, %arg25: memref<1x2xf32, #tpu.memory_space<vmem>>, %arg26: memref<1x2xf32, #tpu.memory_space<vmem>>, %arg27: memref<1x2xf32, #tpu.memory_space<vmem>>, %arg28: memref<300x256xf32, #tpu.memory_space<vmem>>, %arg29: memref<8x2xf32, #tpu.memory_space<vmem>>, %arg30: memref<4x2xf32, #tpu.memory_space<vmem>>, %arg31: memref<8x2xf32, #tpu.memory_space<vmem>>, %arg32: memref<4x2xf32, #tpu.memory_space<vmem>>, %arg33: memref<8x8xf32, #tpu.memory_space<vmem>>, %arg34: memref<4x8xf32, #tpu.memory_space<vmem>>, %arg35: memref<8x2xf32, #tpu.memory_space<vmem>>, %arg36: memref<8x1xf32, #tpu.memory_space<vmem>>, %arg37: memref<8x128xf32, #tpu.memory_space<vmem>>, %arg38: memref<4x128xf32, #tpu.memory_space<vmem>>, %arg39: memref<8x1xf32, #tpu.memory_space<vmem>>, %arg40: memref<8x1xf32, #tpu.memory_space<vmem>>) attributes {dimension_semantics = [#tpu.dimension_semantics<arbitrary>], iteration_bounds = array<i64: 2>, scalar_prefetch = 0 : i64, scratch_operands = 4 : i64, tpu.core_type = #tpu.core_type<tc>, window_params = [{transform_indices = @transform_0, window_bounds = array<i64: 8, 256>}, {transform_indices = @transform_1, window_bounds = array<i64: 4, 256>}, {pipeline_mode = #tpu.pipeline_mode<synchronous>, transform_indices = @transform_2, window_bounds = array<i64: 8, 2>}, {pipeline_mode = #tpu.pipeline_mode<synchronous>, transform_indices = @transform_3, window_bounds = array<i64: 4, 2>}, {transform_indices = @transform_4, window_bounds = array<i64: 256, 128>}, {pipeline_mode = #tpu.pipeline_mode<synchronous>, transform_indices = @transform_5, window_bounds = array<i64: 1, 128>}, {pipeline_mode = #tpu.pipeline_mode<synchronous>, transform_indices = @transform_6, window_bounds = array<i64: 128, 128>}, {pipeline_mode = #tpu.pipeline_mode<synchronous>, transform_indices = @transform_7, window_bounds = array<i64: 1, 128>}, {pipeline_mode = #tpu.pipeline_mode<synchronous>, transform_indices = @transform_8, window_bounds = array<i64: 128, 2>}, {pipeline_mode = #tpu.pipeline_mode<synchronous>, transform_indices = @transform_9, window_bounds = array<i64: 1, 2>}, {pipeline_mode = #tpu.pipeline_mode<synchronous>, transform_indices = @transform_10, window_bounds = array<i64: 128, 2>}, {pipeline_mode = #tpu.pipeline_mode<synchronous>, transform_indices = @transform_11, window_bounds = array<i64: 1, 2>}, {pipeline_mode = #tpu.pipeline_mode<synchronous>, transform_indices = @transform_12, window_bounds = array<i64: 1, 2>}, {pipeline_mode = #tpu.pipeline_mode<synchronous>, transform_indices = @transform_13, window_bounds = array<i64: 1, 2>}, {pipeline_mode = #tpu.pipeline_mode<synchronous>, transform_indices = @transform_14, window_bounds = array<i64: 1, 2>}, {pipeline_mode = #tpu.pipeline_mode<synchronous>, transform_indices = @transform_15, window_bounds = array<i64: 1, 2>}, {pipeline_mode = #tpu.pipeline_mode<synchronous>, transform_indices = @transform_16, window_bounds = array<i64: 8, 300>}, {pipeline_mode = #tpu.pipeline_mode<synchronous>, transform_indices = @transform_17, window_bounds = array<i64: 300, 128>}, {pipeline_mode = #tpu.pipeline_mode<synchronous>, transform_indices = @transform_18, window_bounds = array<i64: 1, 128>}, {pipeline_mode = #tpu.pipeline_mode<synchronous>, transform_indices = @transform_19, window_bounds = array<i64: 128, 128>}, {pipeline_mode = #tpu.pipeline_mode<synchronous>, transform_indices = @transform_20, window_bounds = array<i64: 1, 128>}, {pipeline_mode = #tpu.pipeline_mode<synchronous>, transform_indices = @transform_21, window_bounds = array<i64: 128, 2>}, {pipeline_mode = #tpu.pipeline_mode<synchronous>, transform_indices = @transform_22, window_bounds = array<i64: 1, 2>}, {pipeline_mode = #tpu.pipeline_mode<synchronous>, transform_indices = @transform_23, window_bounds = array<i64: 1, 2>}, {pipeline_mode = #tpu.pipeline_mode<synchronous>, transform_indices = @transform_24, window_bounds = array<i64: 1, 2>}, {pipeline_mode = #tpu.pipeline_mode<synchronous>, transform_indices = @transform_25, window_bounds = array<i64: 1, 2>}, {pipeline_mode = #tpu.pipeline_mode<synchronous>, transform_indices = @transform_26, window_bounds = array<i64: 1, 2>}, {transform_indices = @transform_27, window_bounds = array<i64: 300, 256>}, {pipeline_mode = #tpu.pipeline_mode<synchronous>, transform_indices = @transform_28, window_bounds = array<i64: 8, 2>}, {pipeline_mode = #tpu.pipeline_mode<synchronous>, transform_indices = @transform_29, window_bounds = array<i64: 4, 2>}, {pipeline_mode = #tpu.pipeline_mode<synchronous>, transform_indices = @transform_30, window_bounds = array<i64: 8, 2>}, {pipeline_mode = #tpu.pipeline_mode<synchronous>, transform_indices = @transform_31, window_bounds = array<i64: 4, 2>}, {pipeline_mode = #tpu.pipeline_mode<synchronous>, transform_indices = @transform_32, window_bounds = array<i64: 8, 8>}, {pipeline_mode = #tpu.pipeline_mode<synchronous>, transform_indices = @transform_33, window_bounds = array<i64: 4, 8>}, {pipeline_mode = #tpu.pipeline_mode<synchronous>, transform_indices = @transform_34, window_bounds = array<i64: 8, 2>}, {pipeline_mode = #tpu.pipeline_mode<synchronous>, transform_indices = @transform_35, window_bounds = array<i64: 8, 1>}]} {
    %c0_i32 = arith.constant 0 : i32
    %0 = arith.cmpi eq, %arg0, %c0_i32 : i32
    %1 = arith.extui %0 : i1 to i32
    %c0_i32_0 = arith.constant 0 : i32
    %2 = arith.cmpi ne, %1, %c0_i32_0 : i32
    scf.if %2 {
      %cst_31 = arith.constant 0.000000e+00 : f32
      %36 = vector.broadcast %cst_31 : f32 to vector<8x128xf32>
      %c0_32 = arith.constant 0 : index
      %c0_33 = arith.constant 0 : index
      %37 = vector.load %arg37[%c0_32, %c0_33] : memref<8x128xf32, #tpu.memory_space<vmem>>, vector<8x128xf32>
      tpu.vector_store %arg37[%c0_32, %c0_33], %36 {strides = array<i32>} : memref<8x128xf32, #tpu.memory_space<vmem>>, vector<8x128xf32>,
      %cst_34 = arith.constant 0.000000e+00 : f32
      %38 = vector.broadcast %cst_34 : f32 to vector<4x128xf32>
      %c0_35 = arith.constant 0 : index
      %c0_36 = arith.constant 0 : index
      %39 = vector.load %arg38[%c0_35, %c0_36] : memref<4x128xf32, #tpu.memory_space<vmem>>, vector<4x128xf32>
      tpu.vector_store %arg38[%c0_35, %c0_36], %38 {strides = array<i32>} : memref<4x128xf32, #tpu.memory_space<vmem>>, vector<4x128xf32>,
      %cst_37 = arith.constant 0xFF800000 : f32
      %40 = vector.broadcast %cst_37 : f32 to vector<8x1xf32>
      %c0_38 = arith.constant 0 : index
      %c0_39 = arith.constant 0 : index
      %41 = vector.load %arg39[%c0_38, %c0_39] : memref<8x1xf32, #tpu.memory_space<vmem>>, vector<8x1xf32>
      tpu.vector_store %arg39[%c0_38, %c0_39], %40 {strides = array<i32>} : memref<8x1xf32, #tpu.memory_space<vmem>>, vector<8x1xf32>,
      %cst_40 = arith.constant 0.000000e+00 : f32
      %42 = vector.broadcast %cst_40 : f32 to vector<8x1xf32>
      %c0_41 = arith.constant 0 : index
      %c0_42 = arith.constant 0 : index
      %43 = vector.load %arg40[%c0_41, %c0_42] : memref<8x1xf32, #tpu.memory_space<vmem>>, vector<8x1xf32>
      tpu.vector_store %arg40[%c0_41, %c0_42], %42 {strides = array<i32>} : memref<8x1xf32, #tpu.memory_space<vmem>>, vector<8x1xf32>,
    } else {
    }
    %c0 = arith.constant 0 : index
    %c0_1 = arith.constant 0 : index
    %3 = vector.load %arg5[%c0, %c0_1] : memref<256x128xf32, #tpu.memory_space<vmem>>, vector<256x128xf32>
    %c0_2 = arith.constant 0 : index
    %c0_3 = arith.constant 0 : index
    %4 = vector.load %arg1[%c0_2, %c0_3] : memref<8x256xf32, #tpu.memory_space<vmem>>, vector<8x256xf32>
    %c0_4 = arith.constant 0 : index
    %c0_5 = arith.constant 0 : index
    %5 = vector.load %arg37[%c0_4, %c0_5] : memref<8x128xf32, #tpu.memory_space<vmem>>, vector<8x128xf32>
    %cst = arith.constant dense<0.000000e+00> : vector<8x128xf32>
    %6 = tpu.matmul %4, %3, %cst {dimension_numbers = #tpu.dot_dimension_numbers<[1], [0], [0], [1], [0, 0, 1, 1], [], []>} : vector<8x256xf32>, vector<256x128xf32>, vector<8x128xf32> -> vector<8x128xf32>
    %7 = arith.addf %5, %6 : vector<8x128xf32>
    %c0_6 = arith.constant 0 : index
    %c0_7 = arith.constant 0 : index
    %8 = vector.load %arg37[%c0_6, %c0_7] : memref<8x128xf32, #tpu.memory_space<vmem>>, vector<8x128xf32>
    tpu.vector_store %arg37[%c0_6, %c0_7], %7 {strides = array<i32>} : memref<8x128xf32, #tpu.memory_space<vmem>>, vector<8x128xf32>,
    %c0_8 = arith.constant 0 : index
    %c0_9 = arith.constant 0 : index
    %9 = vector.load %arg2[%c0_8, %c0_9] : memref<4x256xf32, #tpu.memory_space<vmem>>, vector<4x256xf32>
    %c0_10 = arith.constant 0 : index
    %c0_11 = arith.constant 0 : index
    %10 = vector.load %arg38[%c0_10, %c0_11] : memref<4x128xf32, #tpu.memory_space<vmem>>, vector<4x128xf32>
    %cst_12 = arith.constant dense<0.000000e+00> : vector<4x128xf32>
    %11 = tpu.matmul %9, %3, %cst_12 {dimension_numbers = #tpu.dot_dimension_numbers<[1], [0], [0], [1], [0, 0, 1, 1], [], []>} : vector<4x256xf32>, vector<256x128xf32>, vector<4x128xf32> -> vector<4x128xf32>
    %12 = arith.addf %10, %11 : vector<4x128xf32>
    %c0_13 = arith.constant 0 : index
    %c0_14 = arith.constant 0 : index
    %13 = vector.load %arg38[%c0_13, %c0_14] : memref<4x128xf32, #tpu.memory_space<vmem>>, vector<4x128xf32>
    tpu.vector_store %arg38[%c0_13, %c0_14], %12 {strides = array<i32>} : memref<4x128xf32, #tpu.memory_space<vmem>>, vector<4x128xf32>,
    %c0_15 = arith.constant 0 : index
    %c0_16 = arith.constant 0 : index
    %14 = vector.load %arg17[%c0_15, %c0_16] : memref<8x300xf32, #tpu.memory_space<vmem>>, vector<8x300xf32>
    %c0_17 = arith.constant 0 : index
    %c0_18 = arith.constant 0 : index
    %15 = vector.load %arg28[%c0_17, %c0_18] : memref<300x256xf32, #tpu.memory_space<vmem>>, vector<300x256xf32>
    %cst_19 = arith.constant dense<0.000000e+00> : vector<8x256xf32>
    %16 = tpu.matmul %14, %15, %cst_19 {dimension_numbers = #tpu.dot_dimension_numbers<[1], [0], [0], [1], [0, 0, 1, 1], [], []>} : vector<8x300xf32>, vector<300x256xf32>, vector<8x256xf32> -> vector<8x256xf32>
    %cst_20 = arith.constant dense<0xFF800000> : vector<8xf32>
    %17 = vector.multi_reduction <maximumf>, %16, %cst_20 [1] : vector<8x256xf32> to vector<8xf32>
    %18 = vector.shape_cast %17 : vector<8xf32> to vector<8x1xf32>
    %c0_21 = arith.constant 0 : index
    %c0_22 = arith.constant 0 : index
    %19 = vector.load %arg39[%c0_21, %c0_22] : memref<8x1xf32, #tpu.memory_space<vmem>>, vector<8x1xf32>
    %20 = arith.maximumf %19, %18 : vector<8x1xf32>
    %c0_23 = arith.constant 0 : index
    %c0_24 = arith.constant 0 : index
    %21 = vector.load %arg40[%c0_23, %c0_24] : memref<8x1xf32, #tpu.memory_space<vmem>>, vector<8x1xf32>
    %22 = arith.subf %19, %20 : vector<8x1xf32>
    %23 = math.exp %22 : vector<8x1xf32>
    %24 = arith.mulf %21, %23 : vector<8x1xf32>
    %25 = vector.broadcast %20 : vector<8x1xf32> to vector<8x256xf32>
    %26 = arith.subf %16, %25 : vector<8x256xf32>
    %27 = math.exp %26 : vector<8x256xf32>
    %cst_25 = arith.constant dense<0.000000e+00> : vector<8xf32>
    %28 = vector.multi_reduction <add>, %27, %cst_25 [1] : vector<8x256xf32> to vector<8xf32>
    %29 = vector.shape_cast %28 : vector<8xf32> to vector<8x1xf32>
    %30 = arith.addf %24, %29 : vector<8x1xf32>
    %c0_26 = arith.constant 0 : index
    %c0_27 = arith.constant 0 : index
    %31 = vector.load %arg40[%c0_26, %c0_27] : memref<8x1xf32, #tpu.memory_space<vmem>>, vector<8x1xf32>
    tpu.vector_store %arg40[%c0_26, %c0_27], %30 {strides = array<i32>} : memref<8x1xf32, #tpu.memory_space<vmem>>, vector<8x1xf32>,
    %c0_28 = arith.constant 0 : index
    %c0_29 = arith.constant 0 : index
    %32 = vector.load %arg39[%c0_28, %c0_29] : memref<8x1xf32, #tpu.memory_space<vmem>>, vector<8x1xf32>
    tpu.vector_store %arg39[%c0_28, %c0_29], %20 {strides = array<i32>} : memref<8x1xf32, #tpu.memory_space<vmem>>, vector<8x1xf32>,
    %c1_i32 = arith.constant 1 : i32
    %33 = arith.cmpi eq, %arg0, %c1_i32 : i32
    %34 = arith.extui %33 : i1 to i32
    %c0_i32_30 = arith.constant 0 : i32
    %35 = arith.cmpi ne, %34, %c0_i32_30 : i32
    scf.if %35 {
      %c0_31 = arith.constant 0 : index
      %c0_32 = arith.constant 0 : index
      %36 = vector.load %arg37[%c0_31, %c0_32] : memref<8x128xf32, #tpu.memory_space<vmem>>, vector<8x128xf32>
      %c0_33 = arith.constant 0 : index
      %c0_34 = arith.constant 0 : index
      %37 = vector.load %arg6[%c0_33, %c0_34] : memref<1x128xf32, #tpu.memory_space<vmem>>, vector<1x128xf32>
      %38 = vector.broadcast %37 : vector<1x128xf32> to vector<8x128xf32>
      %39 = arith.addf %36, %38 : vector<8x128xf32>
      %cst_35 = arith.constant 0.000000e+00 : f32
      %40 = vector.broadcast %cst_35 : f32 to vector<8x128xf32>
      %41 = arith.maximumf %39, %40 : vector<8x128xf32>
      %c0_36 = arith.constant 0 : index
      %c0_37 = arith.constant 0 : index
      %42 = vector.load %arg7[%c0_36, %c0_37] : memref<128x128xf32, #tpu.memory_space<vmem>>, vector<128x128xf32>
      %cst_38 = arith.constant dense<0.000000e+00> : vector<8x128xf32>
      %43 = tpu.matmul %41, %42, %cst_38 {dimension_numbers = #tpu.dot_dimension_numbers<[1], [0], [0], [1], [0, 0, 1, 1], [], []>} : vector<8x128xf32>, vector<128x128xf32>, vector<8x128xf32> -> vector<8x128xf32>
      %c0_39 = arith.constant 0 : index
      %c0_40 = arith.constant 0 : index
      %44 = vector.load %arg8[%c0_39, %c0_40] : memref<1x128xf32, #tpu.memory_space<vmem>>, vector<1x128xf32>
      %45 = vector.broadcast %44 : vector<1x128xf32> to vector<8x128xf32>
      %46 = arith.addf %43, %45 : vector<8x128xf32>
      %cst_41 = arith.constant 0.000000e+00 : f32
      %47 = vector.broadcast %cst_41 : f32 to vector<8x128xf32>
      %48 = arith.maximumf %46, %47 : vector<8x128xf32>
      %c0_42 = arith.constant 0 : index
      %c0_43 = arith.constant 0 : index
      %49 = vector.load %arg9[%c0_42, %c0_43] : memref<128x2xf32, #tpu.memory_space<vmem>>, vector<128x2xf32>
      %cst_44 = arith.constant dense<0.000000e+00> : vector<8x2xf32>
      %50 = tpu.matmul %48, %49, %cst_44 {dimension_numbers = #tpu.dot_dimension_numbers<[1], [0], [0], [1], [0, 0, 1, 1], [], []>} : vector<8x128xf32>, vector<128x2xf32>, vector<8x2xf32> -> vector<8x2xf32>
      %c0_45 = arith.constant 0 : index
      %c0_46 = arith.constant 0 : index
      %51 = vector.load %arg10[%c0_45, %c0_46] : memref<1x2xf32, #tpu.memory_space<vmem>>, vector<1x2xf32>
      %52 = vector.broadcast %51 : vector<1x2xf32> to vector<8x2xf32>
      %53 = arith.addf %50, %52 : vector<8x2xf32>
      %c0_47 = arith.constant 0 : index
      %c0_48 = arith.constant 0 : index
      %54 = vector.load %arg11[%c0_47, %c0_48] : memref<128x2xf32, #tpu.memory_space<vmem>>, vector<128x2xf32>
      %cst_49 = arith.constant dense<0.000000e+00> : vector<8x2xf32>
      %55 = tpu.matmul %48, %54, %cst_49 {dimension_numbers = #tpu.dot_dimension_numbers<[1], [0], [0], [1], [0, 0, 1, 1], [], []>} : vector<8x128xf32>, vector<128x2xf32>, vector<8x2xf32> -> vector<8x2xf32>
      %c0_50 = arith.constant 0 : index
      %c0_51 = arith.constant 0 : index
      %56 = vector.load %arg12[%c0_50, %c0_51] : memref<1x2xf32, #tpu.memory_space<vmem>>, vector<1x2xf32>
      %57 = vector.broadcast %56 : vector<1x2xf32> to vector<8x2xf32>
      %58 = arith.addf %55, %57 : vector<8x2xf32>
      %c0_52 = arith.constant 0 : index
      %c0_53 = arith.constant 0 : index
      %59 = vector.load %arg38[%c0_52, %c0_53] : memref<4x128xf32, #tpu.memory_space<vmem>>, vector<4x128xf32>
      %c0_54 = arith.constant 0 : index
      %c0_55 = arith.constant 0 : index
      %60 = vector.load %arg6[%c0_54, %c0_55] : memref<1x128xf32, #tpu.memory_space<vmem>>, vector<1x128xf32>
      %61 = vector.broadcast %60 : vector<1x128xf32> to vector<4x128xf32>
      %62 = arith.addf %59, %61 : vector<4x128xf32>
      %cst_56 = arith.constant 0.000000e+00 : f32
      %63 = vector.broadcast %cst_56 : f32 to vector<4x128xf32>
      %64 = arith.maximumf %62, %63 : vector<4x128xf32>
      %c0_57 = arith.constant 0 : index
      %c0_58 = arith.constant 0 : index
      %65 = vector.load %arg7[%c0_57, %c0_58] : memref<128x128xf32, #tpu.memory_space<vmem>>, vector<128x128xf32>
      %cst_59 = arith.constant dense<0.000000e+00> : vector<4x128xf32>
      %66 = tpu.matmul %64, %65, %cst_59 {dimension_numbers = #tpu.dot_dimension_numbers<[1], [0], [0], [1], [0, 0, 1, 1], [], []>} : vector<4x128xf32>, vector<128x128xf32>, vector<4x128xf32> -> vector<4x128xf32>
      %c0_60 = arith.constant 0 : index
      %c0_61 = arith.constant 0 : index
      %67 = vector.load %arg8[%c0_60, %c0_61] : memref<1x128xf32, #tpu.memory_space<vmem>>, vector<1x128xf32>
      %68 = vector.broadcast %67 : vector<1x128xf32> to vector<4x128xf32>
      %69 = arith.addf %66, %68 : vector<4x128xf32>
      %cst_62 = arith.constant 0.000000e+00 : f32
      %70 = vector.broadcast %cst_62 : f32 to vector<4x128xf32>
      %71 = arith.maximumf %69, %70 : vector<4x128xf32>
      %c0_63 = arith.constant 0 : index
      %c0_64 = arith.constant 0 : index
      %72 = vector.load %arg9[%c0_63, %c0_64] : memref<128x2xf32, #tpu.memory_space<vmem>>, vector<128x2xf32>
      %cst_65 = arith.constant dense<0.000000e+00> : vector<4x2xf32>
      %73 = tpu.matmul %71, %72, %cst_65 {dimension_numbers = #tpu.dot_dimension_numbers<[1], [0], [0], [1], [0, 0, 1, 1], [], []>} : vector<4x128xf32>, vector<128x2xf32>, vector<4x2xf32> -> vector<4x2xf32>
      %c0_66 = arith.constant 0 : index
      %c0_67 = arith.constant 0 : index
      %74 = vector.load %arg10[%c0_66, %c0_67] : memref<1x2xf32, #tpu.memory_space<vmem>>, vector<1x2xf32>
      %75 = vector.broadcast %74 : vector<1x2xf32> to vector<4x2xf32>
      %76 = arith.addf %73, %75 : vector<4x2xf32>
      %c0_68 = arith.constant 0 : index
      %c0_69 = arith.constant 0 : index
      %77 = vector.load %arg11[%c0_68, %c0_69] : memref<128x2xf32, #tpu.memory_space<vmem>>, vector<128x2xf32>
      %cst_70 = arith.constant dense<0.000000e+00> : vector<4x2xf32>
      %78 = tpu.matmul %71, %77, %cst_70 {dimension_numbers = #tpu.dot_dimension_numbers<[1], [0], [0], [1], [0, 0, 1, 1], [], []>} : vector<4x128xf32>, vector<128x2xf32>, vector<4x2xf32> -> vector<4x2xf32>
      %c0_71 = arith.constant 0 : index
      %c0_72 = arith.constant 0 : index
      %79 = vector.load %arg12[%c0_71, %c0_72] : memref<1x2xf32, #tpu.memory_space<vmem>>, vector<1x2xf32>
      %80 = vector.broadcast %79 : vector<1x2xf32> to vector<4x2xf32>
      %81 = arith.addf %78, %80 : vector<4x2xf32>
      %cst_73 = arith.constant dense<0.000000e+00> : vector<2xf32>
      %82 = vector.multi_reduction <add>, %53, %cst_73 [0] : vector<8x2xf32> to vector<2xf32>
      %83 = vector.shape_cast %82 : vector<2xf32> to vector<1x2xf32>
      %cst_74 = arith.constant dense<0.000000e+00> : vector<2xf32>
      %84 = vector.multi_reduction <add>, %76, %cst_74 [0] : vector<4x2xf32> to vector<2xf32>
      %85 = vector.shape_cast %84 : vector<2xf32> to vector<1x2xf32>
      %cst_75 = arith.constant 0.000000e+00 : f32
      %86 = vector.broadcast %cst_75 : f32 to vector<1x2xf32>
      %87 = arith.addf %86, %83 : vector<1x2xf32>
      %88 = arith.addf %87, %85 : vector<1x2xf32>
      %cst_76 = arith.constant 1.200000e+01 : f32
      %89 = vector.broadcast %cst_76 : f32 to vector<1x2xf32>
      %90 = arith.divf %88, %89 : vector<1x2xf32>
      %91 = vector.broadcast %90 : vector<1x2xf32> to vector<8x2xf32>
      %92 = arith.subf %53, %91 : vector<8x2xf32>
      %93 = arith.mulf %92, %92 : vector<8x2xf32>
      %cst_77 = arith.constant dense<0.000000e+00> : vector<2xf32>
      %94 = vector.multi_reduction <add>, %93, %cst_77 [0] : vector<8x2xf32> to vector<2xf32>
      %95 = vector.shape_cast %94 : vector<2xf32> to vector<1x2xf32>
      %96 = vector.broadcast %90 : vector<1x2xf32> to vector<4x2xf32>
      %97 = arith.subf %76, %96 : vector<4x2xf32>
      %98 = arith.mulf %97, %97 : vector<4x2xf32>
      %cst_78 = arith.constant dense<0.000000e+00> : vector<2xf32>
      %99 = vector.multi_reduction <add>, %98, %cst_78 [0] : vector<4x2xf32> to vector<2xf32>
      %100 = vector.shape_cast %99 : vector<2xf32> to vector<1x2xf32>
      %cst_79 = arith.constant 0.000000e+00 : f32
      %101 = vector.broadcast %cst_79 : f32 to vector<1x2xf32>
      %102 = arith.addf %101, %95 : vector<1x2xf32>
      %103 = arith.addf %102, %100 : vector<1x2xf32>
      %cst_80 = arith.constant 1.200000e+01 : f32
      %104 = vector.broadcast %cst_80 : f32 to vector<1x2xf32>
      %105 = arith.divf %103, %104 : vector<1x2xf32>
      %cst_81 = arith.constant 9.99999974E-6 : f32
      %106 = vector.broadcast %cst_81 : f32 to vector<1x2xf32>
      %107 = arith.addf %105, %106 : vector<1x2xf32>
      %108 = math.rsqrt %107 : vector<1x2xf32>
      %c0_82 = arith.constant 0 : index
      %c0_83 = arith.constant 0 : index
      %109 = vector.load %arg13[%c0_82, %c0_83] : memref<1x2xf32, #tpu.memory_space<vmem>>, vector<1x2xf32>
      %110 = arith.mulf %108, %109 : vector<1x2xf32>
      %111 = vector.broadcast %90 : vector<1x2xf32> to vector<8x2xf32>
      %112 = arith.subf %53, %111 : vector<8x2xf32>
      %113 = vector.broadcast %110 : vector<1x2xf32> to vector<8x2xf32>
      %114 = arith.mulf %112, %113 : vector<8x2xf32>
      %c0_84 = arith.constant 0 : index
      %c0_85 = arith.constant 0 : index
      %115 = vector.load %arg14[%c0_84, %c0_85] : memref<1x2xf32, #tpu.memory_space<vmem>>, vector<1x2xf32>
      %116 = vector.broadcast %115 : vector<1x2xf32> to vector<8x2xf32>
      %117 = arith.addf %114, %116 : vector<8x2xf32>
      %118 = vector.broadcast %90 : vector<1x2xf32> to vector<4x2xf32>
      %119 = arith.subf %76, %118 : vector<4x2xf32>
      %120 = vector.broadcast %110 : vector<1x2xf32> to vector<4x2xf32>
      %121 = arith.mulf %119, %120 : vector<4x2xf32>
      %c0_86 = arith.constant 0 : index
      %c0_87 = arith.constant 0 : index
      %122 = vector.load %arg14[%c0_86, %c0_87] : memref<1x2xf32, #tpu.memory_space<vmem>>, vector<1x2xf32>
      %123 = vector.broadcast %122 : vector<1x2xf32> to vector<4x2xf32>
      %124 = arith.addf %121, %123 : vector<4x2xf32>
      %cst_88 = arith.constant dense<0.000000e+00> : vector<2xf32>
      %125 = vector.multi_reduction <add>, %58, %cst_88 [0] : vector<8x2xf32> to vector<2xf32>
      %126 = vector.shape_cast %125 : vector<2xf32> to vector<1x2xf32>
      %cst_89 = arith.constant dense<0.000000e+00> : vector<2xf32>
      %127 = vector.multi_reduction <add>, %81, %cst_89 [0] : vector<4x2xf32> to vector<2xf32>
      %128 = vector.shape_cast %127 : vector<2xf32> to vector<1x2xf32>
      %cst_90 = arith.constant 0.000000e+00 : f32
      %129 = vector.broadcast %cst_90 : f32 to vector<1x2xf32>
      %130 = arith.addf %129, %126 : vector<1x2xf32>
      %131 = arith.addf %130, %128 : vector<1x2xf32>
      %cst_91 = arith.constant 1.200000e+01 : f32
      %132 = vector.broadcast %cst_91 : f32 to vector<1x2xf32>
      %133 = arith.divf %131, %132 : vector<1x2xf32>
      %134 = vector.broadcast %133 : vector<1x2xf32> to vector<8x2xf32>
      %135 = arith.subf %58, %134 : vector<8x2xf32>
      %136 = arith.mulf %135, %135 : vector<8x2xf32>
      %cst_92 = arith.constant dense<0.000000e+00> : vector<2xf32>
      %137 = vector.multi_reduction <add>, %136, %cst_92 [0] : vector<8x2xf32> to vector<2xf32>
      %138 = vector.shape_cast %137 : vector<2xf32> to vector<1x2xf32>
      %139 = vector.broadcast %133 : vector<1x2xf32> to vector<4x2xf32>
      %140 = arith.subf %81, %139 : vector<4x2xf32>
      %141 = arith.mulf %140, %140 : vector<4x2xf32>
      %cst_93 = arith.constant dense<0.000000e+00> : vector<2xf32>
      %142 = vector.multi_reduction <add>, %141, %cst_93 [0] : vector<4x2xf32> to vector<2xf32>
      %143 = vector.shape_cast %142 : vector<2xf32> to vector<1x2xf32>
      %cst_94 = arith.constant 0.000000e+00 : f32
      %144 = vector.broadcast %cst_94 : f32 to vector<1x2xf32>
      %145 = arith.addf %144, %138 : vector<1x2xf32>
      %146 = arith.addf %145, %143 : vector<1x2xf32>
      %cst_95 = arith.constant 1.200000e+01 : f32
      %147 = vector.broadcast %cst_95 : f32 to vector<1x2xf32>
      %148 = arith.divf %146, %147 : vector<1x2xf32>
      %cst_96 = arith.constant 9.99999974E-6 : f32
      %149 = vector.broadcast %cst_96 : f32 to vector<1x2xf32>
      %150 = arith.addf %148, %149 : vector<1x2xf32>
      %151 = math.rsqrt %150 : vector<1x2xf32>
      %c0_97 = arith.constant 0 : index
      %c0_98 = arith.constant 0 : index
      %152 = vector.load %arg15[%c0_97, %c0_98] : memref<1x2xf32, #tpu.memory_space<vmem>>, vector<1x2xf32>
      %153 = arith.mulf %151, %152 : vector<1x2xf32>
      %154 = vector.broadcast %133 : vector<1x2xf32> to vector<8x2xf32>
      %155 = arith.subf %58, %154 : vector<8x2xf32>
      %156 = vector.broadcast %153 : vector<1x2xf32> to vector<8x2xf32>
      %157 = arith.mulf %155, %156 : vector<8x2xf32>
      %c0_99 = arith.constant 0 : index
      %c0_100 = arith.constant 0 : index
      %158 = vector.load %arg16[%c0_99, %c0_100] : memref<1x2xf32, #tpu.memory_space<vmem>>, vector<1x2xf32>
      %159 = vector.broadcast %158 : vector<1x2xf32> to vector<8x2xf32>
      %160 = arith.addf %157, %159 : vector<8x2xf32>
      %161 = vector.broadcast %133 : vector<1x2xf32> to vector<4x2xf32>
      %162 = arith.subf %81, %161 : vector<4x2xf32>
      %163 = vector.broadcast %153 : vector<1x2xf32> to vector<4x2xf32>
      %164 = arith.mulf %162, %163 : vector<4x2xf32>
      %c0_101 = arith.constant 0 : index
      %c0_102 = arith.constant 0 : index
      %165 = vector.load %arg16[%c0_101, %c0_102] : memref<1x2xf32, #tpu.memory_space<vmem>>, vector<1x2xf32>
      %166 = vector.broadcast %165 : vector<1x2xf32> to vector<4x2xf32>
      %167 = arith.addf %164, %166 : vector<4x2xf32>
      %cst_103 = arith.constant 5.000000e-01 : f32
      %168 = vector.broadcast %cst_103 : f32 to vector<8x2xf32>
      %169 = arith.mulf %168, %160 : vector<8x2xf32>
      %170 = math.exp %169 : vector<8x2xf32>
      %c0_104 = arith.constant 0 : index
      %c0_105 = arith.constant 0 : index
      %171 = vector.load %arg3[%c0_104, %c0_105] : memref<8x2xf32, #tpu.memory_space<vmem>>, vector<8x2xf32>
      %172 = arith.mulf %170, %171 : vector<8x2xf32>
      %173 = arith.addf %117, %172 : vector<8x2xf32>
      %cst_106 = arith.constant 5.000000e-01 : f32
      %174 = vector.broadcast %cst_106 : f32 to vector<4x2xf32>
      %175 = arith.mulf %174, %167 : vector<4x2xf32>
      %176 = math.exp %175 : vector<4x2xf32>
      %c0_107 = arith.constant 0 : index
      %c0_108 = arith.constant 0 : index
      %177 = vector.load %arg4[%c0_107, %c0_108] : memref<4x2xf32, #tpu.memory_space<vmem>>, vector<4x2xf32>
      %178 = arith.mulf %176, %177 : vector<4x2xf32>
      %179 = arith.addf %124, %178 : vector<4x2xf32>
      %cst_109 = arith.constant dense<0.000000e+00> : vector<2xf32>
      %180 = vector.multi_reduction <add>, %173, %cst_109 [0] : vector<8x2xf32> to vector<2xf32>
      %181 = vector.shape_cast %180 : vector<2xf32> to vector<1x2xf32>
      %cst_110 = arith.constant dense<0.000000e+00> : vector<2xf32>
      %182 = vector.multi_reduction <add>, %179, %cst_110 [0] : vector<4x2xf32> to vector<2xf32>
      %183 = vector.shape_cast %182 : vector<2xf32> to vector<1x2xf32>
      %cst_111 = arith.constant 0.000000e+00 : f32
      %184 = vector.broadcast %cst_111 : f32 to vector<1x2xf32>
      %185 = arith.addf %184, %181 : vector<1x2xf32>
      %186 = arith.addf %185, %183 : vector<1x2xf32>
      %cst_112 = arith.constant 1.200000e+01 : f32
      %187 = vector.broadcast %cst_112 : f32 to vector<1x2xf32>
      %188 = arith.divf %186, %187 : vector<1x2xf32>
      %189 = vector.broadcast %188 : vector<1x2xf32> to vector<8x2xf32>
      %190 = arith.subf %173, %189 : vector<8x2xf32>
      %191 = arith.mulf %190, %190 : vector<8x2xf32>
      %cst_113 = arith.constant dense<0.000000e+00> : vector<2xf32>
      %192 = vector.multi_reduction <add>, %191, %cst_113 [0] : vector<8x2xf32> to vector<2xf32>
      %193 = vector.shape_cast %192 : vector<2xf32> to vector<1x2xf32>
      %194 = vector.broadcast %188 : vector<1x2xf32> to vector<4x2xf32>
      %195 = arith.subf %179, %194 : vector<4x2xf32>
      %196 = arith.mulf %195, %195 : vector<4x2xf32>
      %cst_114 = arith.constant dense<0.000000e+00> : vector<2xf32>
      %197 = vector.multi_reduction <add>, %196, %cst_114 [0] : vector<4x2xf32> to vector<2xf32>
      %198 = vector.shape_cast %197 : vector<2xf32> to vector<1x2xf32>
      %cst_115 = arith.constant 0.000000e+00 : f32
      %199 = vector.broadcast %cst_115 : f32 to vector<1x2xf32>
      %200 = arith.addf %199, %193 : vector<1x2xf32>
      %201 = arith.addf %200, %198 : vector<1x2xf32>
      %cst_116 = arith.constant 1.200000e+01 : f32
      %202 = vector.broadcast %cst_116 : f32 to vector<1x2xf32>
      %203 = arith.divf %201, %202 : vector<1x2xf32>
      %cst_117 = arith.constant 9.99999974E-6 : f32
      %204 = vector.broadcast %cst_117 : f32 to vector<1x2xf32>
      %205 = arith.addf %203, %204 : vector<1x2xf32>
      %206 = math.rsqrt %205 : vector<1x2xf32>
      %c0_118 = arith.constant 0 : index
      %c0_119 = arith.constant 0 : index
      %207 = vector.load %arg26[%c0_118, %c0_119] : memref<1x2xf32, #tpu.memory_space<vmem>>, vector<1x2xf32>
      %208 = arith.mulf %206, %207 : vector<1x2xf32>
      %209 = vector.broadcast %188 : vector<1x2xf32> to vector<8x2xf32>
      %210 = arith.subf %173, %209 : vector<8x2xf32>
      %211 = vector.broadcast %208 : vector<1x2xf32> to vector<8x2xf32>
      %212 = arith.mulf %210, %211 : vector<8x2xf32>
      %c0_120 = arith.constant 0 : index
      %c0_121 = arith.constant 0 : index
      %213 = vector.load %arg27[%c0_120, %c0_121] : memref<1x2xf32, #tpu.memory_space<vmem>>, vector<1x2xf32>
      %214 = vector.broadcast %213 : vector<1x2xf32> to vector<8x2xf32>
      %215 = arith.addf %212, %214 : vector<8x2xf32>
      %216 = vector.broadcast %188 : vector<1x2xf32> to vector<4x2xf32>
      %217 = arith.subf %179, %216 : vector<4x2xf32>
      %218 = vector.broadcast %208 : vector<1x2xf32> to vector<4x2xf32>
      %219 = arith.mulf %217, %218 : vector<4x2xf32>
      %c0_122 = arith.constant 0 : index
      %c0_123 = arith.constant 0 : index
      %220 = vector.load %arg27[%c0_122, %c0_123] : memref<1x2xf32, #tpu.memory_space<vmem>>, vector<1x2xf32>
      %221 = vector.broadcast %220 : vector<1x2xf32> to vector<4x2xf32>
      %222 = arith.addf %219, %221 : vector<4x2xf32>
      %c0_124 = arith.constant 0 : index
      %c0_125 = arith.constant 0 : index
      %223 = vector.load %arg18[%c0_124, %c0_125] : memref<300x128xf32, #tpu.memory_space<vmem>>, vector<300x128xf32>
      %cst_126 = arith.constant dense<0.000000e+00> : vector<8x128xf32>
      %224 = tpu.matmul %14, %223, %cst_126 {dimension_numbers = #tpu.dot_dimension_numbers<[1], [0], [0], [1], [0, 0, 1, 1], [], []>} : vector<8x300xf32>, vector<300x128xf32>, vector<8x128xf32> -> vector<8x128xf32>
      %c0_127 = arith.constant 0 : index
      %c0_128 = arith.constant 0 : index
      %225 = vector.load %arg19[%c0_127, %c0_128] : memref<1x128xf32, #tpu.memory_space<vmem>>, vector<1x128xf32>
      %226 = vector.broadcast %225 : vector<1x128xf32> to vector<8x128xf32>
      %227 = arith.addf %224, %226 : vector<8x128xf32>
      %cst_129 = arith.constant 0.000000e+00 : f32
      %228 = vector.broadcast %cst_129 : f32 to vector<8x128xf32>
      %229 = arith.maximumf %227, %228 : vector<8x128xf32>
      %c0_130 = arith.constant 0 : index
      %c0_131 = arith.constant 0 : index
      %230 = vector.load %arg20[%c0_130, %c0_131] : memref<128x128xf32, #tpu.memory_space<vmem>>, vector<128x128xf32>
      %cst_132 = arith.constant dense<0.000000e+00> : vector<8x128xf32>
      %231 = tpu.matmul %229, %230, %cst_132 {dimension_numbers = #tpu.dot_dimension_numbers<[1], [0], [0], [1], [0, 0, 1, 1], [], []>} : vector<8x128xf32>, vector<128x128xf32>, vector<8x128xf32> -> vector<8x128xf32>
      %c0_133 = arith.constant 0 : index
      %c0_134 = arith.constant 0 : index
      %232 = vector.load %arg21[%c0_133, %c0_134] : memref<1x128xf32, #tpu.memory_space<vmem>>, vector<1x128xf32>
      %233 = vector.broadcast %232 : vector<1x128xf32> to vector<8x128xf32>
      %234 = arith.addf %231, %233 : vector<8x128xf32>
      %cst_135 = arith.constant 0.000000e+00 : f32
      %235 = vector.broadcast %cst_135 : f32 to vector<8x128xf32>
      %236 = arith.maximumf %234, %235 : vector<8x128xf32>
      %c0_136 = arith.constant 0 : index
      %c0_137 = arith.constant 0 : index
      %237 = vector.load %arg22[%c0_136, %c0_137] : memref<128x2xf32, #tpu.memory_space<vmem>>, vector<128x2xf32>
      %cst_138 = arith.constant dense<0.000000e+00> : vector<8x2xf32>
      %238 = tpu.matmul %236, %237, %cst_138 {dimension_numbers = #tpu.dot_dimension_numbers<[1], [0], [0], [1], [0, 0, 1, 1], [], []>} : vector<8x128xf32>, vector<128x2xf32>, vector<8x2xf32> -> vector<8x2xf32>
      %c0_139 = arith.constant 0 : index
      %c0_140 = arith.constant 0 : index
      %239 = vector.load %arg23[%c0_139, %c0_140] : memref<1x2xf32, #tpu.memory_space<vmem>>, vector<1x2xf32>
      %240 = vector.broadcast %239 : vector<1x2xf32> to vector<8x2xf32>
      %241 = arith.addf %238, %240 : vector<8x2xf32>
      %cst_141 = arith.constant dense<0.000000e+00> : vector<2xf32>
      %242 = vector.multi_reduction <add>, %241, %cst_141 [0] : vector<8x2xf32> to vector<2xf32>
      %243 = vector.shape_cast %242 : vector<2xf32> to vector<1x2xf32>
      %cst_142 = arith.constant 0.000000e+00 : f32
      %244 = vector.broadcast %cst_142 : f32 to vector<1x2xf32>
      %245 = arith.addf %244, %243 : vector<1x2xf32>
      %cst_143 = arith.constant 8.000000e+00 : f32
      %246 = vector.broadcast %cst_143 : f32 to vector<1x2xf32>
      %247 = arith.divf %245, %246 : vector<1x2xf32>
      %248 = vector.broadcast %247 : vector<1x2xf32> to vector<8x2xf32>
      %249 = arith.subf %241, %248 : vector<8x2xf32>
      %250 = arith.mulf %249, %249 : vector<8x2xf32>
      %cst_144 = arith.constant dense<0.000000e+00> : vector<2xf32>
      %251 = vector.multi_reduction <add>, %250, %cst_144 [0] : vector<8x2xf32> to vector<2xf32>
      %252 = vector.shape_cast %251 : vector<2xf32> to vector<1x2xf32>
      %cst_145 = arith.constant 0.000000e+00 : f32
      %253 = vector.broadcast %cst_145 : f32 to vector<1x2xf32>
      %254 = arith.addf %253, %252 : vector<1x2xf32>
      %cst_146 = arith.constant 8.000000e+00 : f32
      %255 = vector.broadcast %cst_146 : f32 to vector<1x2xf32>
      %256 = arith.divf %254, %255 : vector<1x2xf32>
      %cst_147 = arith.constant 9.99999974E-6 : f32
      %257 = vector.broadcast %cst_147 : f32 to vector<1x2xf32>
      %258 = arith.addf %256, %257 : vector<1x2xf32>
      %259 = math.rsqrt %258 : vector<1x2xf32>
      %c0_148 = arith.constant 0 : index
      %c0_149 = arith.constant 0 : index
      %260 = vector.load %arg24[%c0_148, %c0_149] : memref<1x2xf32, #tpu.memory_space<vmem>>, vector<1x2xf32>
      %261 = arith.mulf %259, %260 : vector<1x2xf32>
      %262 = vector.broadcast %247 : vector<1x2xf32> to vector<8x2xf32>
      %263 = arith.subf %241, %262 : vector<8x2xf32>
      %264 = vector.broadcast %261 : vector<1x2xf32> to vector<8x2xf32>
      %265 = arith.mulf %263, %264 : vector<8x2xf32>
      %c0_150 = arith.constant 0 : index
      %c0_151 = arith.constant 0 : index
      %266 = vector.load %arg25[%c0_150, %c0_151] : memref<1x2xf32, #tpu.memory_space<vmem>>, vector<1x2xf32>
      %267 = vector.broadcast %266 : vector<1x2xf32> to vector<8x2xf32>
      %268 = arith.addf %265, %267 : vector<8x2xf32>
      %cst_152 = arith.constant 1.000000e+00 : f32
      %269 = vector.broadcast %cst_152 : f32 to vector<1x2xf32>
      %270 = arith.mulf %268, %268 : vector<8x2xf32>
      %cst_153 = arith.constant dense<0.000000e+00> : vector<1x8xf32>
      %271 = tpu.matmul %269, %270, %cst_153 {dimension_numbers = #tpu.dot_dimension_numbers<[1], [1], [0], [0], [0, 0, 1, 0], [], []>} : vector<1x2xf32>, vector<8x2xf32>, vector<1x8xf32> -> vector<1x8xf32>
      %cst_154 = arith.constant 5.000000e-01 : f32
      %272 = vector.broadcast %cst_154 : f32 to vector<1x8xf32>
      %273 = arith.mulf %272, %271 : vector<1x8xf32>
      %c0_155 = arith.constant 0 : index
      %c0_156 = arith.constant 0 : index
      %274 = vector.load %arg35[%c0_155, %c0_156] : memref<8x2xf32, #tpu.memory_space<vmem>>, vector<8x2xf32>
      tpu.vector_store %arg35[%c0_155, %c0_156], %268 {strides = array<i32>} : memref<8x2xf32, #tpu.memory_space<vmem>>, vector<8x2xf32>,
      %c0_157 = arith.constant 0 : index
      %c0_158 = arith.constant 0 : index
      %275 = vector.load %arg39[%c0_157, %c0_158] : memref<8x1xf32, #tpu.memory_space<vmem>>, vector<8x1xf32>
      %c0_159 = arith.constant 0 : index
      %c0_160 = arith.constant 0 : index
      %276 = vector.load %arg40[%c0_159, %c0_160] : memref<8x1xf32, #tpu.memory_space<vmem>>, vector<8x1xf32>
      %277 = math.log %276 : vector<8x1xf32>
      %278 = arith.addf %275, %277 : vector<8x1xf32>
      %c0_161 = arith.constant 0 : index
      %c0_162 = arith.constant 0 : index
      %279 = vector.load %arg36[%c0_161, %c0_162] : memref<8x1xf32, #tpu.memory_space<vmem>>, vector<8x1xf32>
      tpu.vector_store %arg36[%c0_161, %c0_162], %278 {strides = array<i32>} : memref<8x1xf32, #tpu.memory_space<vmem>>, vector<8x1xf32>,
      %cst_163 = arith.constant dense<0.000000e+00> : vector<8x8xf32>
      %280 = tpu.matmul %215, %268, %cst_163 {dimension_numbers = #tpu.dot_dimension_numbers<[1], [1], [0], [0], [0, 0, 1, 0], [], []>} : vector<8x2xf32>, vector<8x2xf32>, vector<8x8xf32> -> vector<8x8xf32>
      %281 = vector.broadcast %273 : vector<1x8xf32> to vector<8x8xf32>
      %282 = arith.subf %280, %281 : vector<8x8xf32>
      %cst_164 = arith.constant dense<0xFF800000> : vector<8xf32>
      %283 = vector.multi_reduction <maximumf>, %282, %cst_164 [1] : vector<8x8xf32> to vector<8xf32>
      %284 = vector.shape_cast %283 : vector<8xf32> to vector<8x1xf32>
      %285 = vector.broadcast %284 : vector<8x1xf32> to vector<8x8xf32>
      %286 = arith.subf %282, %285 : vector<8x8xf32>
      %287 = math.exp %286 : vector<8x8xf32>
      %cst_165 = arith.constant dense<0.000000e+00> : vector<8xf32>
      %288 = vector.multi_reduction <add>, %287, %cst_165 [1] : vector<8x8xf32> to vector<8xf32>
      %289 = vector.shape_cast %288 : vector<8xf32> to vector<8x1xf32>
      %290 = tpu.reciprocal %289 {approx = true} : vector<8x1xf32> -> vector<8x1xf32>
      %c0_166 = arith.constant 0 : index
      %c0_167 = arith.constant 0 : index
      %291 = vector.load %arg29[%c0_166, %c0_167] : memref<8x2xf32, #tpu.memory_space<vmem>>, vector<8x2xf32>
      tpu.vector_store %arg29[%c0_166, %c0_167], %173 {strides = array<i32>} : memref<8x2xf32, #tpu.memory_space<vmem>>, vector<8x2xf32>,
      %c0_168 = arith.constant 0 : index
      %c0_169 = arith.constant 0 : index
      %292 = vector.load %arg31[%c0_168, %c0_169] : memref<8x2xf32, #tpu.memory_space<vmem>>, vector<8x2xf32>
      tpu.vector_store %arg31[%c0_168, %c0_169], %215 {strides = array<i32>} : memref<8x2xf32, #tpu.memory_space<vmem>>, vector<8x2xf32>,
      %293 = vector.broadcast %290 : vector<8x1xf32> to vector<8x8xf32>
      %294 = arith.mulf %287, %293 : vector<8x8xf32>
      %c0_170 = arith.constant 0 : index
      %c0_171 = arith.constant 0 : index
      %295 = vector.load %arg33[%c0_170, %c0_171] : memref<8x8xf32, #tpu.memory_space<vmem>>, vector<8x8xf32>
      tpu.vector_store %arg33[%c0_170, %c0_171], %294 {strides = array<i32>} : memref<8x8xf32, #tpu.memory_space<vmem>>, vector<8x8xf32>,
      %cst_172 = arith.constant dense<0.000000e+00> : vector<4x8xf32>
      %296 = tpu.matmul %222, %268, %cst_172 {dimension_numbers = #tpu.dot_dimension_numbers<[1], [1], [0], [0], [0, 0, 1, 0], [], []>} : vector<4x2xf32>, vector<8x2xf32>, vector<4x8xf32> -> vector<4x8xf32>
      %297 = vector.broadcast %273 : vector<1x8xf32> to vector<4x8xf32>
      %298 = arith.subf %296, %297 : vector<4x8xf32>
      %cst_173 = arith.constant dense<0xFF800000> : vector<4xf32>
      %299 = vector.multi_reduction <maximumf>, %298, %cst_173 [1] : vector<4x8xf32> to vector<4xf32>
      %300 = vector.shape_cast %299 : vector<4xf32> to vector<4x1xf32>
      %301 = vector.broadcast %300 : vector<4x1xf32> to vector<4x8xf32>
      %302 = arith.subf %298, %301 : vector<4x8xf32>
      %303 = math.exp %302 : vector<4x8xf32>
      %cst_174 = arith.constant dense<0.000000e+00> : vector<4xf32>
      %304 = vector.multi_reduction <add>, %303, %cst_174 [1] : vector<4x8xf32> to vector<4xf32>
      %305 = vector.shape_cast %304 : vector<4xf32> to vector<4x1xf32>
      %306 = tpu.reciprocal %305 {approx = true} : vector<4x1xf32> -> vector<4x1xf32>
      %c0_175 = arith.constant 0 : index
      %c0_176 = arith.constant 0 : index
      %307 = vector.load %arg30[%c0_175, %c0_176] : memref<4x2xf32, #tpu.memory_space<vmem>>, vector<4x2xf32>
      tpu.vector_store %arg30[%c0_175, %c0_176], %179 {strides = array<i32>} : memref<4x2xf32, #tpu.memory_space<vmem>>, vector<4x2xf32>,
      %c0_177 = arith.constant 0 : index
      %c0_178 = arith.constant 0 : index
      %308 = vector.load %arg32[%c0_177, %c0_178] : memref<4x2xf32, #tpu.memory_space<vmem>>, vector<4x2xf32>
      tpu.vector_store %arg32[%c0_177, %c0_178], %222 {strides = array<i32>} : memref<4x2xf32, #tpu.memory_space<vmem>>, vector<4x2xf32>,
      %309 = vector.broadcast %306 : vector<4x1xf32> to vector<4x8xf32>
      %310 = arith.mulf %303, %309 : vector<4x8xf32>
      %c0_179 = arith.constant 0 : index
      %c0_180 = arith.constant 0 : index
      %311 = vector.load %arg34[%c0_179, %c0_180] : memref<4x8xf32, #tpu.memory_space<vmem>>, vector<4x8xf32>
      tpu.vector_store %arg34[%c0_179, %c0_180], %310 {strides = array<i32>} : memref<4x8xf32, #tpu.memory_space<vmem>>, vector<4x8xf32>,
    } else {
    }
    return
  }
  func.func @transform_0(%arg0: i32) -> (i32, i32) {
    %c0_i32 = arith.constant 0 : i32
    %c0_i32_0 = arith.constant 0 : i32
    return %c0_i32, %arg0 : i32, i32
  }
  func.func @transform_1(%arg0: i32) -> (i32, i32) {
    %c0_i32 = arith.constant 0 : i32
    %c0_i32_0 = arith.constant 0 : i32
    return %c0_i32, %arg0 : i32, i32
  }
  func.func @transform_2(%arg0: i32) -> (i32, i32) {
    %c0_i32 = arith.constant 0 : i32
    %c0_i32_0 = arith.constant 0 : i32
    %c0_i32_1 = arith.constant 0 : i32
    return %c0_i32, %c0_i32_0 : i32, i32
  }
  func.func @transform_3(%arg0: i32) -> (i32, i32) {
    %c0_i32 = arith.constant 0 : i32
    %c0_i32_0 = arith.constant 0 : i32
    %c0_i32_1 = arith.constant 0 : i32
    return %c0_i32, %c0_i32_0 : i32, i32
  }
  func.func @transform_4(%arg0: i32) -> (i32, i32) {
    %c0_i32 = arith.constant 0 : i32
    %c0_i32_0 = arith.constant 0 : i32
    return %arg0, %c0_i32 : i32, i32
  }
  func.func @transform_5(%arg0: i32) -> (i32, i32) {
    %c0_i32 = arith.constant 0 : i32
    %c0_i32_0 = arith.constant 0 : i32
    %c0_i32_1 = arith.constant 0 : i32
    return %c0_i32, %c0_i32_0 : i32, i32
  }
  func.func @transform_6(%arg0: i32) -> (i32, i32) {
    %c0_i32 = arith.constant 0 : i32
    %c0_i32_0 = arith.constant 0 : i32
    %c0_i32_1 = arith.constant 0 : i32
    return %c0_i32, %c0_i32_0 : i32, i32
  }
  func.func @transform_7(%arg0: i32) -> (i32, i32) {
    %c0_i32 = arith.constant 0 : i32
    %c0_i32_0 = arith.constant 0 : i32
    %c0_i32_1 = arith.constant 0 : i32
    return %c0_i32, %c0_i32_0 : i32, i32
  }
  func.func @transform_8(%arg0: i32) -> (i32, i32) {
    %c0_i32 = arith.constant 0 : i32
    %c0_i32_0 = arith.constant 0 : i32
    %c0_i32_1 = arith.constant 0 : i32
    return %c0_i32, %c0_i32_0 : i32, i32
  }
  func.func @transform_9(%arg0: i32) -> (i32, i32) {
    %c0_i32 = arith.constant 0 : i32
    %c0_i32_0 = arith.constant 0 : i32
    %c0_i32_1 = arith.constant 0 : i32
    return %c0_i32, %c0_i32_0 : i32, i32
  }
  func.func @transform_10(%arg0: i32) -> (i32, i32) {
    %c0_i32 = arith.constant 0 : i32
    %c0_i32_0 = arith.constant 0 : i32
    %c0_i32_1 = arith.constant 0 : i32
    return %c0_i32, %c0_i32_0 : i32, i32
  }
  func.func @transform_11(%arg0: i32) -> (i32, i32) {
    %c0_i32 = arith.constant 0 : i32
    %c0_i32_0 = arith.constant 0 : i32
    %c0_i32_1 = arith.constant 0 : i32
    return %c0_i32, %c0_i32_0 : i32, i32
  }
  func.func @transform_12(%arg0: i32) -> (i32, i32) {
    %c0_i32 = arith.constant 0 : i32
    %c0_i32_0 = arith.constant 0 : i32
    %c0_i32_1 = arith.constant 0 : i32
    return %c0_i32, %c0_i32_0 : i32, i32
  }
  func.func @transform_13(%arg0: i32) -> (i32, i32) {
    %c0_i32 = arith.constant 0 : i32
    %c0_i32_0 = arith.constant 0 : i32
    %c0_i32_1 = arith.constant 0 : i32
    return %c0_i32, %c0_i32_0 : i32, i32
  }
  func.func @transform_14(%arg0: i32) -> (i32, i32) {
    %c0_i32 = arith.constant 0 : i32
    %c0_i32_0 = arith.constant 0 : i32
    %c0_i32_1 = arith.constant 0 : i32
    return %c0_i32, %c0_i32_0 : i32, i32
  }
  func.func @transform_15(%arg0: i32) -> (i32, i32) {
    %c0_i32 = arith.constant 0 : i32
    %c0_i32_0 = arith.constant 0 : i32
    %c0_i32_1 = arith.constant 0 : i32
    return %c0_i32, %c0_i32_0 : i32, i32
  }
  func.func @transform_16(%arg0: i32) -> (i32, i32) {
    %c0_i32 = arith.constant 0 : i32
    %c0_i32_0 = arith.constant 0 : i32
    %c0_i32_1 = arith.constant 0 : i32
    return %c0_i32, %c0_i32_0 : i32, i32
  }
  func.func @transform_17(%arg0: i32) -> (i32, i32) {
    %c0_i32 = arith.constant 0 : i32
    %c0_i32_0 = arith.constant 0 : i32
    %c0_i32_1 = arith.constant 0 : i32
    return %c0_i32, %c0_i32_0 : i32, i32
  }
  func.func @transform_18(%arg0: i32) -> (i32, i32) {
    %c0_i32 = arith.constant 0 : i32
    %c0_i32_0 = arith.constant 0 : i32
    %c0_i32_1 = arith.constant 0 : i32
    return %c0_i32, %c0_i32_0 : i32, i32
  }
  func.func @transform_19(%arg0: i32) -> (i32, i32) {
    %c0_i32 = arith.constant 0 : i32
    %c0_i32_0 = arith.constant 0 : i32
    %c0_i32_1 = arith.constant 0 : i32
    return %c0_i32, %c0_i32_0 : i32, i32
  }
  func.func @transform_20(%arg0: i32) -> (i32, i32) {
    %c0_i32 = arith.constant 0 : i32
    %c0_i32_0 = arith.constant 0 : i32
    %c0_i32_1 = arith.constant 0 : i32
    return %c0_i32, %c0_i32_0 : i32, i32
  }
  func.func @transform_21(%arg0: i32) -> (i32, i32) {
    %c0_i32 = arith.constant 0 : i32
    %c0_i32_0 = arith.constant 0 : i32
    %c0_i32_1 = arith.constant 0 : i32
    return %c0_i32, %c0_i32_0 : i32, i32
  }
  func.func @transform_22(%arg0: i32) -> (i32, i32) {
    %c0_i32 = arith.constant 0 : i32
    %c0_i32_0 = arith.constant 0 : i32
    %c0_i32_1 = arith.constant 0 : i32
    return %c0_i32, %c0_i32_0 : i32, i32
  }
  func.func @transform_23(%arg0: i32) -> (i32, i32) {
    %c0_i32 = arith.constant 0 : i32
    %c0_i32_0 = arith.constant 0 : i32
    %c0_i32_1 = arith.constant 0 : i32
    return %c0_i32, %c0_i32_0 : i32, i32
  }
  func.func @transform_24(%arg0: i32) -> (i32, i32) {
    %c0_i32 = arith.constant 0 : i32
    %c0_i32_0 = arith.constant 0 : i32
    %c0_i32_1 = arith.constant 0 : i32
    return %c0_i32, %c0_i32_0 : i32, i32
  }
  func.func @transform_25(%arg0: i32) -> (i32, i32) {
    %c0_i32 = arith.constant 0 : i32
    %c0_i32_0 = arith.constant 0 : i32
    %c0_i32_1 = arith.constant 0 : i32
    return %c0_i32, %c0_i32_0 : i32, i32
  }
  func.func @transform_26(%arg0: i32) -> (i32, i32) {
    %c0_i32 = arith.constant 0 : i32
    %c0_i32_0 = arith.constant 0 : i32
    %c0_i32_1 = arith.constant 0 : i32
    return %c0_i32, %c0_i32_0 : i32, i32
  }
  func.func @transform_27(%arg0: i32) -> (i32, i32) {
    %c0_i32 = arith.constant 0 : i32
    %c0_i32_0 = arith.constant 0 : i32
    return %c0_i32, %arg0 : i32, i32
  }
  func.func @transform_28(%arg0: i32) -> (i32, i32) {
    %c0_i32 = arith.constant 0 : i32
    %c0_i32_0 = arith.constant 0 : i32
    %c0_i32_1 = arith.constant 0 : i32
    return %c0_i32, %c0_i32_0 : i32, i32
  }
  func.func @transform_29(%arg0: i32) -> (i32, i32) {
    %c0_i32 = arith.constant 0 : i32
    %c0_i32_0 = arith.constant 0 : i32
    %c0_i32_1 = arith.constant 0 : i32
    return %c0_i32, %c0_i32_0 : i32, i32
  }
  func.func @transform_30(%arg0: i32) -> (i32, i32) {
    %c0_i32 = arith.constant 0 : i32
    %c0_i32_0 = arith.constant 0 : i32
    %c0_i32_1 = arith.constant 0 : i32
    return %c0_i32, %c0_i32_0 : i32, i32
  }
  func.func @transform_31(%arg0: i32) -> (i32, i32) {
    %c0_i32 = arith.constant 0 : i32
    %c0_i32_0 = arith.constant 0 : i32
    %c0_i32_1 = arith.constant 0 : i32
    return %c0_i32, %c0_i32_0 : i32, i32
  }
  func.func @transform_32(%arg0: i32) -> (i32, i32) {
    %c0_i32 = arith.constant 0 : i32
    %c0_i32_0 = arith.constant 0 : i32
    %c0_i32_1 = arith.constant 0 : i32
    return %c0_i32, %c0_i32_0 : i32, i32
  }
  func.func @transform_33(%arg0: i32) -> (i32, i32) {
    %c0_i32 = arith.constant 0 : i32
    %c0_i32_0 = arith.constant 0 : i32
    %c0_i32_1 = arith.constant 0 : i32
    return %c0_i32, %c0_i32_0 : i32, i32
  }
  func.func @transform_34(%arg0: i32) -> (i32, i32) {
    %c0_i32 = arith.constant 0 : i32
    %c0_i32_0 = arith.constant 0 : i32
    %c0_i32_1 = arith.constant 0 : i32
    return %c0_i32, %c0_i32_0 : i32, i32
  }
  func.func @transform_35(%arg0: i32) -> (i32, i32) {
    %c0_i32 = arith.constant 0 : i32
    %c0_i32_0 = arith.constant 0 : i32
    %c0_i32_1 = arith.constant 0 : i32
    return %c0_i32, %c0_i32_0 : i32, i32
  }
}

</mosaic_0001>

<bundles_post_ra>
// kernel: tpu_custom_call.1
= control target key start
LH: loop header
LB: loop body
LE: loop exit
PB: predicated region body
PF: predicated region fallthrough
CT: control target
= control target key end

     0   :  { %s6466_s6 = smov 1   ;;  %s6467_s10 = smov 2   ;;  %s7891_s0 = inlined_call_operand.smem [shape: u32[36], index: -1, kind: input, shape index: {}] }
   0x1   :  { %s6559_s5 = sld [smem:[%s7891_s0]]   ;;  %s6468_s14 = smov 3  }
   0x2   :  { %s6564_s9 = sld [smem:[%s7891_s0 + %s6466_s6]]   ;;  %s6469_s18 = smov 4  }
   0x3   :  { %s6569_s13 = sld [smem:[%s7891_s0 + %s6467_s10]]   ;;  %s6470_s22 = smov 5  }
   0x4   :  { %s6574_s17 = sld [smem:[%s7891_s0 + %s6468_s14]]   ;;  %s6471_s26 = smov 6  }
   0x5   :  { %s6579_s21 = sld [smem:[%s7891_s0 + %s6469_s18]]   ;;  %s6472_s30 = smov 7  }
   0x6   :  { %s6584_s25 = sld [smem:[%s7891_s0 + %s6470_s22]]   ;;  %s6473_s4 = smov 8  }
   0x7   :  { %7953 = sst [smem:[#allocation84_spill]] %s6559_s5  ;;  %s6474_s10 = smov 9  }
   0x8   :  { %7954 = sst [smem:[#allocation85_spill]] %s6564_s9  ;;  %s6475_s15 = smov 10  }
   0x9   :  { %7955 = sst [smem:[#allocation86_spill]] %s6569_s13  ;;  %s6476_s20 = smov 11  }
   0xa   :  { %7956 = sst [smem:[#allocation87_spill]] %s6574_s17  ;;  %s6478_s1 = smov 13  }
   0xb   :  { %7957 = sst [smem:[#allocation88_spill]] %s6579_s21  ;;  %s6479_s7 = smov 14  }
   0xc   :  { %7958 = sst [smem:[#allocation89_spill]] %s6584_s25  ;;  %s6481_s22 = smov 16  }
   0xd   :  { %s6589_s29 = sld [smem:[%s7891_s0 + %s6471_s26]]   ;;  %s6477_s26 = smov 12  }
   0xe   :  { %s6594_s3 = sld [smem:[%s7891_s0 + %s6472_s30]]   ;;  %s6482_s28 = smov 17  }
   0xf   :  { %s6599_s8 = sld [smem:[%s7891_s0 + %s6473_s4]]  }
  0x10   :  { %s6604_s14 = sld [smem:[%s7891_s0 + %s6474_s10]]  }
  0x11   :  { %s6609_s19 = sld [smem:[%s7891_s0 + %s6475_s15]]   ;;  %s6480_s15 = smov 15  }
  0x12   :  { %s6614_s24 = sld [smem:[%s7891_s0 + %s6476_s20]]  }
  0x13   :  { %7959 = sst [smem:[#allocation90_spill]] %s6589_s29 }
  0x14   :  { %7960 = sst [smem:[#allocation91_spill]] %s6594_s3 }
  0x15   :  { %7961 = sst [smem:[#allocation92_spill]] %s6599_s8 }
  0x16   :  { %7962 = sst [smem:[#allocation93_spill]] %s6604_s14 }
  0x17   :  { %7963 = sst [smem:[#allocation94_spill]] %s6609_s19 }
  0x18   :  { %7964 = sst [smem:[#allocation95_spill]] %s6614_s24 }
  0x19   :  { %s6619_s30 = sld [smem:[%s7891_s0 + %s6477_s26]]  }
  0x1a   :  { %s6624_s6 = sld [smem:[%s7891_s0 + %s6478_s1]]  }
  0x1b   :  { %s6629_s12 = sld [smem:[%s7891_s0 + %s6479_s7]]   ;;  %s6483_s7 = smov 18  }
  0x1c   :  { %s6634_s20 = sld [smem:[%s7891_s0 + %s6480_s15]]   ;;  %s6484_s15 = smov 19  }
  0x1d   :  { %s6639_s27 = sld [smem:[%s7891_s0 + %s6481_s22]]   ;;  %s6485_s22 = smov 20  }
  0x1e   :  { %s6644_s4 = sld [smem:[%s7891_s0 + %s6482_s28]]   ;;  %s6486_s28 = smov 21  }
  0x1f   :  { %7965 = sst [smem:[#allocation96_spill]] %s6619_s30 }
  0x20   :  { %7966 = sst [smem:[#allocation97_spill]] %s6624_s6 }
  0x21   :  { %7967 = sst [smem:[#allocation98_spill]] %s6629_s12 }
  0x22   :  { %7968 = sst [smem:[#allocation99_spill]] %s6634_s20 }
  0x23   :  { %7969 = sst [smem:[#allocation100_spill]] %s6639_s27 }
  0x24   :  { %7970 = sst [smem:[#allocation101_spill]] %s6644_s4 }
  0x25   :  { %s6649_s21 = sld [smem:[%s7891_s0 + %s6483_s7]]   ;;  %s6487_s7 = smov 22  }
  0x26   :  { %s6654_s9 = sld [smem:[%s7891_s0 + %s6484_s15]]   ;;  %s6488_s15 = smov 23  }
  0x27   :  { %s6659_s27 = sld [smem:[%s7891_s0 + %s6485_s22]]   ;;  %s6489_s22 = smov 24  }
  0x28   :  { %s6664_s12 = sld [smem:[%s7891_s0 + %s6486_s28]]   ;;  %s6490_s28 = smov 25  }
  0x29   :  { %s6674_s30 = sld [smem:[%s7891_s0 + %s6488_s15]]   ;;  %s6492_s15 = smov 27  }
  0x2a   :  { %s6684_s19 = sld [smem:[%s7891_s0 + %s6490_s28]]   ;;  %s6494_s28 = smov 29  }
  0x2b   :  { %7971 = sst [smem:[#allocation102_spill]] %s6649_s21 }
  0x2c   :  { %7972 = sst [smem:[#allocation103_spill]] %s6654_s9 }
  0x2d   :  { %7973 = sst [smem:[#allocation104_spill]] %s6659_s27 }
  0x2e   :  { %7974 = sst [smem:[#allocation105_spill]] %s6664_s12 }
  0x2f   :  { %s6669_s21 = sld [smem:[%s7891_s0 + %s6487_s7]]   ;;  %s6491_s7 = smov 26  }
  0x30   :  { %s6679_s27 = sld [smem:[%s7891_s0 + %s6489_s22]]   ;;  %s6493_s22 = smov 28  }
  0x31   :  { %7977 = sst [smem:[#allocation108_spill]] %s6684_s19 }
  0x32   :  { %s6694_s8 = sld [smem:[%s7891_s0 + %s6492_s15]]   ;;  %s6496_s15 = smov 31  }
  0x33   :  { %s6704_s29 = sld [smem:[%s7891_s0 + %s6494_s28]]   ;;  %s6498_s28 = smov 33  }
  0x35   :  { %7975 = sst [smem:[#allocation106_spill]] %s6669_s21 }
  0x36   :  { %7976 = sst [smem:[#allocation107_spill]] %s6679_s27 }
  0x37   :  { %s6689_s21 = sld [smem:[%s7891_s0 + %s6491_s7]]   ;;  %s6495_s7 = smov 30  }
  0x38   :  { %7979 = sst [smem:[#allocation110_spill]] %s6694_s8 }
  0x39   :  { %s6699_s27 = sld [smem:[%s7891_s0 + %s6493_s22]]   ;;  %s6497_s22 = smov 32  }
  0x3a   :  { %7981 = sst [smem:[#allocation112_spill]] %s6704_s29 }
  0x3b   :  { %s6714_s8 = sld [smem:[%s7891_s0 + %s6496_s15]]   ;;  %s6500_s15 = smov 35  }
  0x3c   :  { %s6724_s29 = sld [smem:[%s7891_s0 + %s6498_s28]]  }
  0x3d   :  { %7978 = sst [smem:[#allocation109_spill]] %s6689_s21 }
  0x3e   :  { %s6709_s21 = sld [smem:[%s7891_s0 + %s6495_s7]]   ;;  %s6499_s7 = smov 34  }
  0x3f   :  { %7980 = sst [smem:[#allocation111_spill]] %s6699_s27 }
  0x40   :  { %s6719_s27 = sld [smem:[%s7891_s0 + %s6497_s22]]  }
  0x41   :  { %7983 = sst [smem:[#allocation114_spill]] %s6714_s8 }
  0x42   :  { %s6734_s8 = sld [smem:[%s7891_s0 + %s6500_s15]]  }
  0x44   :  { %7982 = sst [smem:[#allocation113_spill]] %s6709_s21 }
  0x45   :  { %s6729_s21 = sld [smem:[%s7891_s0 + %s6499_s7]]  }
  0x48   :  { %7985 = sst [smem:[#allocation116_spill]] %s6734_s8 }
  0x4b   :  { %7984 = sst [smem:[#allocation115_spill]] %s6729_s21 }
  0x4c   :  { %77 = vsyncpa [#allocation7], 0 }
  0x4d   :  { %79 = vsyncpa [#allocation7 + $0x1], 0 }
  0x4e   :  { %80 = vsyncpa [#allocation10], 0 }
  0x4f   :  { %82 = vsyncpa [#allocation10 + $0x1], 0 }
  0x50   :  { %83 = vsyncpa [#allocation13], 0 }
  0x51   :  { %84 = vsyncpa [#allocation18], 0 }
  0x52   :  { %85 = vsyncpa [#allocation21], 0 }
  0x53   :  { %86 = vsyncpa [#allocation24], 0 }
  0x54   :  { %87 = vsyncpa [#allocation27], 0 }
  0x55   :  { %88 = vsyncpa [#allocation30], 0 }
  0x56   :  { %89 = vsyncpa [#allocation33], 0 }
  0x57   :  { %90 = vsyncpa [#allocation36], 0 }
  0x58   :  { %91 = vsyncpa [#allocation39], 0 }
  0x59   :  { %92 = vsyncpa [#allocation42], 0 }
  0x5a   :  { %93 = vsyncpa [#allocation45], 0 }
  0x5b   :  { %94 = vsyncpa [#allocation48], 0 }
  0x5c   :  { %96 = vsyncpa [#allocation48 + $0x1], 0 }
  0x5d   :  { %97 = vsyncpa [#allocation8], 0 }
  0x5e   :  { %98 = vsyncpa [#allocation51], 0 }
  0x5f   :  { %99 = vsyncpa [#allocation54], 0 }
  0x60   :  { %100 = vsyncpa [#allocation57], 0 }
  0x61   :  { %101 = vsyncpa [#allocation60], 0  ;;  %s6736_s0 = smov 0   ;;  %s6738_s22 = smov 0  }
  0x62   :  { %s6740_s23 = smov 0   ;;  %s6742_s26 = smov 0  }
  0x63 LB: > { %s7986_s25 = sld [smem:[#allocation89_spill]]  ;;  %s7987_s24 = sld [smem:[#allocation95_spill]]  ;;  %s6452_s0 = sphi %s6736_s0, %s8069_s0   ;;  %s6464_s26 = sphi %s6742_s26, %s8072_s26   ;;  %s6460_s23 = sphi %s6740_s23, %s8071_s23   ;;  %s6456_s22 = sphi %s6738_s22, %s8070_s22  }
  0x64   : > { %s7988_s20 = sld [smem:[#allocation99_spill]]  ;;  %s7989_s19 = sld [smem:[#allocation108_spill]] }
  0x65   : > { %s7990_s17 = sld [smem:[#allocation87_spill]]  ;;  %s7991_s5 = sld [smem:[#allocation84_spill]] }
  0x66   : > { %s7992_s14 = sld [smem:[#allocation93_spill]]  ;;  %s7993_s13 = sld [smem:[#allocation86_spill]] }
  0x67   : > { %s7994_s12 = sld [smem:[#allocation105_spill]]  ;;  %s7995_s9 = sld [smem:[#allocation103_spill]] }
  0x68   : > { %s7996_s6 = sld [smem:[#allocation97_spill]]  ;;  %s7997_s4 = sld [smem:[#allocation101_spill]] }
  0x69   : > { %s7998_s3 = sld [smem:[#allocation91_spill]]  ;;  %s6501_s28 = smov [#allocation11]  }
  0x6a   : > { %s901_s1 = sshll.u32 %s6501_s28, 4  ;;  %s6757_s2 = sadd.s32 4294967295, %s6464_s26   ;;  %s6763_s1 = int_to_ptr.vmem [resolvable:$true] %s901_s1 }
  0x6b   : > { %p3857_p0 = scmp.ge.s32.totalorder %s6464_s26, 1  ;;  %p7912_p1 = scmp.eq.s32.totalorder %s6757_s2, 0 }
  0x6c   : > { %p888_p2 = scmp.lt.s32.totalorder %s6464_s26, 3  ;;  %s6502_s10 = smov [#allocation12]  }
  0x6d   : > { %s912_s11 = sshll.u32 %s6502_s10, 4  ;;  %s6503_s15 = smov [#allocation15]   ;;  %s6771_s11 = int_to_ptr.vmem [resolvable:$true] %s912_s11 }
  0x6e   : > { %p6765_p4 = pnand %p3857_p0, %p888_p2  ;;  %s923_s16 = sshll.u32 %s6503_s15, 4  ;;  %s6779_s16 = int_to_ptr.vmem [resolvable:$true] %s923_s16 }
  0x6f   : > { %s6504_s28 = smov [#allocation17]   ;;  %s5342_s21 = scalar_lea.hbm %s7993_s13, 128 }
  0x70   : > { %s7999_s7 = scalar_select %p6765_p4, 1, 0 }
  0x71   : > { %p5048_p5 = pneg %p6765_p4  ;;  %s6781_s8 = sshll.u32 %s6504_s28, 4  ;;  %s948_s8 = int_to_ptr.vmem [resolvable:$true] %s6781_s8 }
  0x72   : > { %p5343_p7 = scmp.ne.s32.totalorder %s7993_s13, %s5342_s21  ;;  %p5349_p11 = scmp.lt.u32.totalorder %s5342_s21, %s7993_s13 }
  0x73   : > { %p6775_p6 = pnand %p5048_p5, %p7912_p1 }
  0x75   : > { %s8000_s18 = scalar_select %p6775_p6, 1, 0 }
  0x76   : > { %p6787_p8 = pneg %p6775_p6 }
  0x78   : > { %s8001_s10 = scalar_select %p6787_p8, 1, 0 }
  0x79   : > { %p5345_p9 = pnand %p6787_p8, %p5343_p7 }
  0x7b   : > { %p5346_p10 = pneg %p5345_p9 }
  0x7d   : > { %p5351_p12 = pnand %p5349_p11, %p5346_p10 }
  0x7f   : > { %5354 = shalt.err (!%p5351_p12)
}
  0x80   : > { %s5355_s15 = scalar_lea.vmem %s6763_s1, 128  ;;  %p5363_p5 = scmp.lt.s32.totalorder %s6763_s1, %s6763_s1 }
  0x81   : > { %p5356_p13 = scmp.ne.s32.totalorder %s6763_s1, %s5355_s15  ;;  %p5364_p3 = scmp.lt.s32.totalorder %s5355_s15, %s5355_s15 }
  0x83   : > { %p5358_p0 = pnand %p5356_p13, %p6787_p8  ;;  %p5365_p1 = por %p5364_p3, %p5363_p5 }
  0x85   : > { %p5359_p2 = pneg %p5358_p0 }
  0x87   : > { %p5366_p4 = pnand %p5365_p1, %p5359_p2 }
  0x89   : > { %5369 = shalt.err (!%p5366_p4)
}
  0x8a   : > { %5051 = dma.hbm_to_vmem [thread:$0]  (!%p6775_p6), %s7993_s13, 128, %s6763_s1, [#allocation10]  }
  0x8b   : > { %s5370_s21 = scalar_lea.hbm %s7990_s17, 64 }
  0x8c   : > { %p5371_p7 = scmp.ne.s32.totalorder %s7990_s17, %s5370_s21  ;;  %p5377_p11 = scmp.lt.u32.totalorder %s5370_s21, %s7990_s17 }
  0x8e   : > { %p5373_p9 = pnand %p5371_p7, %p6787_p8 }
  0x90   : > { %p5374_p10 = pneg %p5373_p9 }
  0x92   : > { %p5379_p12 = pnand %p5377_p11, %p5374_p10 }
  0x94   : > { %5382 = shalt.err (!%p5379_p12)
}
  0x95   : > { %s5383_s28 = scalar_lea.vmem %s6771_s11, 64  ;;  %p5391_p13 = scmp.lt.s32.totalorder %s6771_s11, %s6771_s11 }
  0x96   : > { %p5384_p1 = scmp.ne.s32.totalorder %s6771_s11, %s5383_s28  ;;  %p5392_p0 = scmp.lt.s32.totalorder %s5383_s28, %s5383_s28 }
  0x98   : > { %p5386_p3 = pnand %p5384_p1, %p6787_p8  ;;  %p5393_p2 = por %p5392_p0, %p5391_p13 }
  0x9a   : > { %p5387_p4 = pneg %p5386_p3 }
  0x9c   : > { %p5394_p5 = pnand %p5393_p2, %p5387_p4 }
  0x9e   : > { %5397 = shalt.err (!%p5394_p5)
}
  0x9f   : > { %5054 = dma.hbm_to_vmem [thread:$0]  (!%p6775_p6), %s7990_s17, 64, %s6771_s11, [#allocation13]  }
  0xa0   : > { %s5398_s1 = scalar_lea.hbm %s7986_s25, 16 }
  0xa1   : > { %p5399_p7 = scmp.ne.s32.totalorder %s7986_s25, %s5398_s1  ;;  %p5405_p11 = scmp.lt.u32.totalorder %s5398_s1, %s7986_s25 }
  0xa3   : > { %p5401_p9 = pnand %p5399_p7, %p6787_p8 }
  0xa5   : > { %p5402_p10 = pneg %p5401_p9 }
  0xa7   : > { %p5407_p12 = pnand %p5405_p11, %p5402_p10 }
  0xa9   : > { %5410 = shalt.err (!%p5407_p12)
}
  0xaa   : > { %s5411_s15 = scalar_lea.vmem %s6779_s16, 16  ;;  %s5418_s21 = scalar_lea.vmem %s6779_s16, 32 }
  0xab   : > { %p5412_p1 = scmp.ne.s32.totalorder %s6779_s16, %s5411_s15  ;;  %p5419_p13 = scmp.lt.s32.totalorder %s6779_s16, %s6779_s16 }
  0xac   : > { %p5420_p0 = scmp.lt.s32.totalorder %s5418_s21, %s5411_s15 }
  0xad   : > { %p5414_p3 = pnand %p5412_p1, %p6787_p8 }
  0xae   : > { %p5421_p2 = por %p5420_p0, %p5419_p13 }
  0xaf   : > { %p5415_p4 = pneg %p5414_p3 }
  0xb1   : > { %p5422_p5 = pnand %p5421_p2, %p5415_p4 }
  0xb3   : > { %5425 = shalt.err (!%p5422_p5)
}
  0xb4   : > { %5057 = dma.hbm_to_vmem [thread:$0]  (!%p6775_p6), %s7986_s25, 16, %s6779_s16, [#allocation10]  }
  0xb5   : > { %s6505_s11 = smov [#allocation20]   ;;  %s5426_s1 = scalar_lea.hbm %s7998_s3, 16 }
  0xb6   : > { %s971_s28 = sshll.u32 %s6505_s11, 4  ;;  %p5427_p7 = scmp.ne.s32.totalorder %s7998_s3, %s5426_s1  ;;  %s972_s28 = int_to_ptr.vmem [resolvable:$true] %s971_s28 }
  0xb7   : > { %p5433_p11 = scmp.lt.u32.totalorder %s5426_s1, %s7998_s3 }
  0xb8   : > { %p5429_p9 = pnand %p5427_p7, %p6787_p8 }
  0xba   : > { %p5430_p10 = pneg %p5429_p9 }
  0xbc   : > { %p5435_p12 = pnand %p5433_p11, %p5430_p10 }
  0xbe   : > { %5438 = shalt.err (!%p5435_p12)
}
  0xbf   : > { %s5439_s15 = scalar_lea.vmem %s948_s8, 16  ;;  %s5446_s21 = scalar_lea.vmem %s948_s8, 32 }
  0xc0   : > { %p5440_p1 = scmp.ne.s32.totalorder %s948_s8, %s5439_s15  ;;  %p5447_p13 = scmp.lt.s32.totalorder %s948_s8, %s948_s8 }
  0xc1   : > { %p5448_p0 = scmp.lt.s32.totalorder %s5446_s21, %s5439_s15 }
  0xc2   : > { %p5442_p3 = pnand %p5440_p1, %p6787_p8 }
  0xc3   : > { %p5449_p2 = por %p5448_p0, %p5447_p13 }
  0xc4   : > { %p5443_p4 = pneg %p5442_p3 }
  0xc6   : > { %p5450_p5 = pnand %p5449_p2, %p5443_p4 }
  0xc8   : > { %5453 = shalt.err (!%p5450_p5)
}
  0xc9   : > { %5063 = dma.hbm_to_vmem [thread:$0]  (!%p6775_p6), %s7998_s3, 16, %s948_s8, [#allocation18]  }
  0xca   : > { %s5454_s16 = scalar_lea.hbm %s7992_s14, 16 }
  0xcb   : > { %p5455_p7 = scmp.ne.s32.totalorder %s7992_s14, %s5454_s16  ;;  %p5461_p11 = scmp.lt.u32.totalorder %s5454_s16, %s7992_s14 }
  0xcd   : > { %p5457_p9 = pnand %p5455_p7, %p6787_p8 }
  0xcf   : > { %p5458_p10 = pneg %p5457_p9 }
  0xd1   : > { %p5463_p12 = pnand %p5461_p11, %p5458_p10 }
  0xd3   : > { %5466 = shalt.err (!%p5463_p12)
}
  0xd4   : > { %s5467_s11 = scalar_lea.vmem %s972_s28, 16  ;;  %s5474_s1 = scalar_lea.vmem %s972_s28, 32 }
  0xd5   : > { %p5468_p1 = scmp.ne.s32.totalorder %s972_s28, %s5467_s11  ;;  %p5475_p13 = scmp.lt.s32.totalorder %s972_s28, %s972_s28 }
  0xd6   : > { %p5476_p0 = scmp.lt.s32.totalorder %s5474_s1, %s5467_s11 }
  0xd7   : > { %p5470_p3 = pnand %p5468_p1, %p6787_p8 }
  0xd8   : > { %p5477_p2 = por %p5476_p0, %p5475_p13 }
  0xd9   : > { %p5471_p4 = pneg %p5470_p3 }
  0xdb   : > { %p5478_p5 = pnand %p5477_p2, %p5471_p4 }
  0xdd   : > { %5481 = shalt.err (!%p5478_p5)
}
  0xde   : > { %5069 = dma.hbm_to_vmem [thread:$0]  (!%p6775_p6), %s7992_s14, 16, %s972_s28, [#allocation21]  }
  0xdf   : > { %s6506_s8 = smov [#allocation23]   ;;  %s6507_s21 = smov [#allocation26]  }
  0xe0   : > { %s995_s15 = sshll.u32 %s6506_s8, 4  ;;  %s1017_s16 = sshll.u32 %s6507_s21, 4  ;;  %s996_s15 = int_to_ptr.vmem [resolvable:$true] %s995_s15  ;;  %s1018_s16 = int_to_ptr.vmem [resolvable:$true] %s1017_s16 }
  0xe1   : > { %s5482_s3 = scalar_lea.hbm %s7987_s24, 16 }
  0xe2   : > { %p5483_p7 = scmp.ne.s32.totalorder %s7987_s24, %s5482_s3  ;;  %p5489_p11 = scmp.lt.u32.totalorder %s5482_s3, %s7987_s24 }
  0xe4   : > { %p5485_p9 = pnand %p5483_p7, %p6787_p8 }
  0xe6   : > { %p5486_p10 = pneg %p5485_p9 }
  0xe8   : > { %p5491_p12 = pnand %p5489_p11, %p5486_p10 }
  0xea   : > { %5494 = shalt.err (!%p5491_p12)
}
  0xeb   : > { %s5495_s11 = scalar_lea.vmem %s996_s15, 16  ;;  %s5502_s28 = scalar_lea.vmem %s996_s15, 32 }
  0xec   : > { %p5496_p1 = scmp.ne.s32.totalorder %s996_s15, %s5495_s11  ;;  %p5503_p13 = scmp.lt.s32.totalorder %s996_s15, %s996_s15 }
  0xed   : > { %p5504_p0 = scmp.lt.s32.totalorder %s5502_s28, %s5495_s11 }
  0xee   : > { %p5498_p3 = pnand %p5496_p1, %p6787_p8 }
  0xef   : > { %p5505_p2 = por %p5504_p0, %p5503_p13 }
  0xf0   : > { %p5499_p4 = pneg %p5498_p3 }
  0xf2   : > { %p5506_p5 = pnand %p5505_p2, %p5499_p4 }
  0xf4   : > { %5509 = shalt.err (!%p5506_p5)
}
  0xf5   : > { %5075 = dma.hbm_to_vmem [thread:$0]  (!%p6775_p6), %s7987_s24, 16, %s996_s15, [#allocation24]  }
  0xf6   : > { %s5510_s3 = scalar_lea.hbm %s7996_s6, 16 }
  0xf7   : > { %p5511_p7 = scmp.ne.s32.totalorder %s7996_s6, %s5510_s3  ;;  %p5517_p11 = scmp.lt.u32.totalorder %s5510_s3, %s7996_s6 }
  0xf9   : > { %p5513_p9 = pnand %p5511_p7, %p6787_p8 }
  0xfb   : > { %p5514_p10 = pneg %p5513_p9 }
  0xfd   : > { %p5519_p12 = pnand %p5517_p11, %p5514_p10 }
  0xff   : > { %5522 = shalt.err (!%p5519_p12)
}
 0x100   : > { %s5523_s1 = scalar_lea.vmem %s1018_s16, 16  ;;  %s5530_s8 = scalar_lea.vmem %s1018_s16, 32 }
 0x101   : > { %p5524_p1 = scmp.ne.s32.totalorder %s1018_s16, %s5523_s1  ;;  %p5531_p13 = scmp.lt.s32.totalorder %s1018_s16, %s1018_s16 }
 0x102   : > { %p5532_p0 = scmp.lt.s32.totalorder %s5530_s8, %s5523_s1 }
 0x103   : > { %p5526_p3 = pnand %p5524_p1, %p6787_p8 }
 0x104   : > { %p5533_p2 = por %p5532_p0, %p5531_p13 }
 0x105   : > { %p5527_p4 = pneg %p5526_p3 }
 0x107   : > { %p5534_p5 = pnand %p5533_p2, %p5527_p4 }
 0x109   : > { %5537 = shalt.err (!%p5534_p5)
}
 0x10a   : > { %5081 = dma.hbm_to_vmem [thread:$0]  (!%p6775_p6), %s7996_s6, 16, %s1018_s16, [#allocation27]  }
 0x10b   : > { %s6508_s15 = smov [#allocation29]   ;;  %s5538_s11 = scalar_lea.hbm %s7988_s20, 16 }
 0x10c   : > { %s1039_s21 = sshll.u32 %s6508_s15, 4  ;;  %p5539_p7 = scmp.ne.s32.totalorder %s7988_s20, %s5538_s11  ;;  %s1040_s21 = int_to_ptr.vmem [resolvable:$true] %s1039_s21 }
 0x10d   : > { %p5545_p11 = scmp.lt.u32.totalorder %s5538_s11, %s7988_s20 }
 0x10e   : > { %p5541_p9 = pnand %p5539_p7, %p6787_p8 }
 0x110   : > { %p5542_p10 = pneg %p5541_p9 }
 0x112   : > { %p5547_p12 = pnand %p5545_p11, %p5542_p10 }
 0x114   : > { %5550 = shalt.err (!%p5547_p12)
}
 0x115   : > { %s5551_s28 = scalar_lea.vmem %s1040_s21, 16  ;;  %s5558_s3 = scalar_lea.vmem %s1040_s21, 32 }
 0x116   : > { %p5552_p1 = scmp.ne.s32.totalorder %s1040_s21, %s5551_s28  ;;  %p5559_p13 = scmp.lt.s32.totalorder %s1040_s21, %s1040_s21 }
 0x117   : > { %p5560_p0 = scmp.lt.s32.totalorder %s5558_s3, %s5551_s28 }
 0x118   : > { %p5554_p3 = pnand %p5552_p1, %p6787_p8 }
 0x119   : > { %p5561_p2 = por %p5560_p0, %p5559_p13 }
 0x11a   : > { %p5555_p4 = pneg %p5554_p3 }
 0x11c   : > { %p5562_p5 = pnand %p5561_p2, %p5555_p4 }
 0x11e   : > { %5565 = shalt.err (!%p5562_p5)
}
 0x11f   : > { %5087 = dma.hbm_to_vmem [thread:$0]  (!%p6775_p6), %s7988_s20, 16, %s1040_s21, [#allocation30]  }
 0x120   : > { %s6509_s16 = smov [#allocation32]   ;;  %s6510_s8 = smov [#allocation35]  }
 0x121   : > { %s1060_s1 = sshll.u32 %s6509_s16, 4  ;;  %s1084_s15 = sshll.u32 %s6510_s8, 4  ;;  %s1061_s1 = int_to_ptr.vmem [resolvable:$true] %s1060_s1  ;;  %s6886_s15 = int_to_ptr.vmem [resolvable:$true] %s1084_s15 }
 0x122   : > { %s5566_s11 = scalar_lea.hbm %s7997_s4, 4864 }
 0x123   : > { %p5567_p7 = scmp.ne.s32.totalorder %s7997_s4, %s5566_s11  ;;  %p5573_p11 = scmp.lt.u32.totalorder %s5566_s11, %s7997_s4 }
 0x125   : > { %p5569_p9 = pnand %p5567_p7, %p6787_p8 }
 0x127   : > { %p5570_p10 = pneg %p5569_p9 }
 0x129   : > { %p5575_p12 = pnand %p5573_p11, %p5570_p10 }
 0x12b   : > { %5578 = shalt.err (!%p5575_p12)
}
 0x12c   : > { %s5579_s28 = scalar_lea.vmem %s1061_s1, 4864  ;;  %p5587_p13 = scmp.lt.s32.totalorder %s1061_s1, %s1061_s1 }
 0x12d   : > { %p5580_p1 = scmp.ne.s32.totalorder %s1061_s1, %s5579_s28  ;;  %p5588_p0 = scmp.lt.s32.totalorder %s5579_s28, %s5579_s28 }
 0x12f   : > { %p5582_p3 = pnand %p5580_p1, %p6787_p8  ;;  %p5589_p2 = por %p5588_p0, %p5587_p13 }
 0x131   : > { %p5583_p4 = pneg %p5582_p3 }
 0x133   : > { %p5590_p5 = pnand %p5589_p2, %p5583_p4 }
 0x135   : > { %5593 = shalt.err (!%p5590_p5)
}
 0x136   : > { %s7916_s21 = smov 128   ;;  %s7918_s3 = smov 8  }
 0x137   : > { %5093 = dma.hbm_to_vmem [thread:$0]  (!%p6775_p6), %s7997_s4, 4864, %s1061_s1, [#allocation33], %s7916_s21, %s7916_s21, %s7918_s3  }
 0x138   : > { %s5594_s16 = scalar_lea.hbm %s7995_s9, 2048 }
 0x139   : > { %p5595_p7 = scmp.ne.s32.totalorder %s7995_s9, %s5594_s16  ;;  %p5601_p11 = scmp.lt.u32.totalorder %s5594_s16, %s7995_s9 }
 0x13b   : > { %p5597_p9 = pnand %p5595_p7, %p6787_p8 }
 0x13d   : > { %p5598_p10 = pneg %p5597_p9 }
 0x13f   : > { %p5603_p12 = pnand %p5601_p11, %p5598_p10 }
 0x141   : > { %5606 = shalt.err (!%p5603_p12)
}
 0x142   : > { %s5607_s8 = scalar_lea.vmem %s6886_s15, 2048  ;;  %p5615_p13 = scmp.lt.s32.totalorder %s6886_s15, %s6886_s15 }
 0x143   : > { %p5608_p1 = scmp.ne.s32.totalorder %s6886_s15, %s5607_s8  ;;  %p5616_p0 = scmp.lt.s32.totalorder %s5607_s8, %s5607_s8 }
 0x145   : > { %p5610_p3 = pnand %p5608_p1, %p6787_p8  ;;  %p5617_p2 = por %p5616_p0, %p5615_p13 }
 0x147   : > { %p5611_p4 = pneg %p5610_p3 }
 0x149   : > { %p5618_p5 = pnand %p5617_p2, %p5611_p4 }
 0x14b   : > { %5621 = shalt.err (!%p5618_p5)
}
 0x14c   : > { %5099 = dma.hbm_to_vmem [thread:$0]  (!%p6775_p6), %s7995_s9, 2048, %s6886_s15, [#allocation36], %s7916_s21, %s7916_s21, %s7918_s3  }
 0x14d   : > { %s6513_s1 = smov [#allocation38]   ;;  %s6514_s28 = smov [#allocation41]  }
 0x14e   : > { %s1108_s11 = sshll.u32 %s6513_s1, 4  ;;  %s1133_s16 = sshll.u32 %s6514_s28, 4  ;;  %s1109_s11 = int_to_ptr.vmem [resolvable:$true] %s1108_s11  ;;  %s6919_s16 = int_to_ptr.vmem [resolvable:$true] %s1133_s16 }
 0x14f   : > { %s5622_s8 = scalar_lea.hbm %s7994_s12, 2048 }
 0x150   : > { %p5623_p7 = scmp.ne.s32.totalorder %s7994_s12, %s5622_s8  ;;  %p5629_p11 = scmp.lt.u32.totalorder %s5622_s8, %s7994_s12 }
 0x152   : > { %p5625_p9 = pnand %p5623_p7, %p6787_p8 }
 0x154   : > { %p5626_p10 = pneg %p5625_p9 }
 0x156   : > { %p5631_p12 = pnand %p5629_p11, %p5626_p10 }
 0x158   : > { %5634 = shalt.err (!%p5631_p12)
}
 0x159   : > { %s5635_s4 = scalar_lea.vmem %s1109_s11, 2048  ;;  %p5643_p13 = scmp.lt.s32.totalorder %s1109_s11, %s1109_s11 }
 0x15a   : > { %p5636_p1 = scmp.ne.s32.totalorder %s1109_s11, %s5635_s4  ;;  %p5644_p0 = scmp.lt.s32.totalorder %s5635_s4, %s5635_s4 }
 0x15c   : > { %p5638_p3 = pnand %p5636_p1, %p6787_p8  ;;  %p5645_p2 = por %p5644_p0, %p5643_p13 }
 0x15e   : > { %p5639_p4 = pneg %p5638_p3 }
 0x160   : > { %p5646_p5 = pnand %p5645_p2, %p5639_p4 }
 0x162   : > { %5649 = shalt.err (!%p5646_p5)
}
 0x163   : > { %5105 = dma.hbm_to_vmem [thread:$0]  (!%p6775_p6), %s7994_s12, 2048, %s1109_s11, [#allocation39], %s7916_s21, %s7916_s21, %s7918_s3  }
 0x164   : > { %s5650_s15 = scalar_lea.hbm %s6674_s30, 16 }
 0x165   : > { %p5651_p7 = scmp.ne.s32.totalorder %s6674_s30, %s5650_s15  ;;  %p5657_p11 = scmp.lt.u32.totalorder %s5650_s15, %s6674_s30 }
 0x167   : > { %p5653_p9 = pnand %p5651_p7, %p6787_p8 }
 0x169   : > { %p5654_p10 = pneg %p5653_p9 }
 0x16b   : > { %p5659_p12 = pnand %p5657_p11, %p5654_p10 }
 0x16d   : > { %5662 = shalt.err (!%p5659_p12)
}
 0x16e   : > { %s5663_s4 = scalar_lea.vmem %s6919_s16, 16  ;;  %s5670_s1 = scalar_lea.vmem %s6919_s16, 32 }
 0x16f   : > { %p5664_p1 = scmp.ne.s32.totalorder %s6919_s16, %s5663_s4  ;;  %p5671_p13 = scmp.lt.s32.totalorder %s6919_s16, %s6919_s16 }
 0x170   : > { %p5672_p0 = scmp.lt.s32.totalorder %s5670_s1, %s5663_s4 }
 0x171   : > { %p5666_p3 = pnand %p5664_p1, %p6787_p8 }
 0x172   : > { %p5673_p2 = por %p5672_p0, %p5671_p13 }
 0x173   : > { %p5667_p4 = pneg %p5666_p3 }
 0x175   : > { %p5674_p5 = pnand %p5673_p2, %p5667_p4 }
 0x177   : > { %5677 = shalt.err (!%p5674_p5)
}
 0x178   : > { %5111 = dma.hbm_to_vmem [thread:$0]  (!%p6775_p6), %s6674_s30, 16, %s6919_s16, [#allocation42]  }
 0x179   : > { %s6515_s11 = smov [#allocation44]   ;;  %s5678_s8 = scalar_lea.hbm %s7989_s19, 16 }
 0x17a   : > { %s1155_s28 = sshll.u32 %s6515_s11, 4  ;;  %p5679_p7 = scmp.ne.s32.totalorder %s7989_s19, %s5678_s8  ;;  %s1156_s28 = int_to_ptr.vmem [resolvable:$true] %s1155_s28 }
 0x17b   : > { %p5685_p11 = scmp.lt.u32.totalorder %s5678_s8, %s7989_s19 }
 0x17c   : > { %p5681_p9 = pnand %p5679_p7, %p6787_p8 }
 0x17e   : > { %p5682_p10 = pneg %p5681_p9 }
 0x180   : > { %p5687_p12 = pnand %p5685_p11, %p5682_p10 }
 0x182   : > { %5690 = shalt.err (!%p5687_p12)
}
 0x183   : > { %s5691_s15 = scalar_lea.vmem %s1156_s28, 16  ;;  %s5698_s4 = scalar_lea.vmem %s1156_s28, 32 }
 0x184   : > { %p5692_p1 = scmp.ne.s32.totalorder %s1156_s28, %s5691_s15  ;;  %p5699_p13 = scmp.lt.s32.totalorder %s1156_s28, %s1156_s28 }
 0x185   : > { %p5700_p0 = scmp.lt.s32.totalorder %s5698_s4, %s5691_s15 }
 0x186   : > { %p5694_p3 = pnand %p5692_p1, %p6787_p8 }
 0x187   : > { %p5701_p2 = por %p5700_p0, %p5699_p13 }
 0x188   : > { %p5695_p4 = pneg %p5694_p3 }
 0x18a   : > { %p5702_p5 = pnand %p5701_p2, %p5695_p4 }
 0x18c   : > { %5705 = shalt.err (!%p5702_p5)
}
 0x18d   : > { %5117 = dma.hbm_to_vmem [thread:$0]  (!%p6775_p6), %s7989_s19, 16, %s1156_s28, [#allocation45]  }
 0x18e   : > { %s6961_s16 = sadd.s32 1, %s6464_s26   ;;  %s114_s11 = sadd.s32 1, %s6460_s23 }
 0x18f   : > { %s111_s1 = ssub.s32 %s6464_s26, %s6961_s16  ;;  %p121_p9 = scmp.ne.s32.totalorder %s6460_s23, %s6456_s22 }
 0x190   : > { %p112_p7 = scmp.eq.s32.totalorder %s111_s1, 0  ;;  %p122_p10 = scmp.eq.s32.totalorder %s6464_s26, 0 }
 0x191   : > { %p127_p11 = scmp.ne.s32.totalorder %s6456_s22, %s6452_s0  ;;  %p8002_p1 = scmp.eq.s32.totalorder %s6757_s2, 0 }
 0x192   : > { %s6972_s8 = scalar_select %p112_p7, %s6460_s23, %s114_s11  }
 0x193   : > { %p123_p12 = por %p122_p10, %p121_p9  ;;  %p6976_p3 = por %p8002_p1, %p127_p11 }
 0x194   : > { %p5158_p4 = scmp.lt.s32.totalorder %s6464_s26, 2  ;;  %s7929_s28 = sand.u32 1, %s6464_s26  }
 0x195   : > { %s8003_s15 = scalar_select %p6976_p3, 1, 0 }
 0x196   : > { %s6983_s4 = sand.u32 1, %s6460_s23   ;;  %s7923_s21 = sshll.u32 %s6464_s26, 8 }
 0x197   : > { %s3883_s1 = sshll.u32 %s6983_s4, 4  ;;  %s6990_s3 = scalar_lea.hbm %s7991_s5, %s7923_s21 }
 0x198   : > { %s1181_s0 = scalar_lea.vmem [#allocation6], %s3883_s1  ;;  %p6992_p13 = pnand %p5158_p4, %p123_p12 }
 0x199   : > { %s1189_s11 = sshll.u32 %s1181_s0, 4  ;;  %s7000_s9 = scalar_lea.sflag [#allocation7], %s7929_s28  ;;  %s6996_s11 = int_to_ptr.vmem [resolvable:$true] %s1189_s11 }
 0x19a   : > { %s8004_s6 = scalar_select %p6992_p13, 1, 0 }
 0x19b   : > { %s5706_s12 = scalar_lea.hbm %s6990_s3, 256  ;;  %p7006_p2 = pneg %p6992_p13 }
 0x19c   : > { %p5707_p0 = scmp.ne.s32.totalorder %s6990_s3, %s5706_s12  ;;  %s5711_s1 = scalar_lea.hbm %s7991_s5, 512 }
 0x19d   : > { %s8005_s21 = scalar_select %p7006_p2, 1, 0 }
 0x19e   : > { %p5709_p5 = pnand %p7006_p2, %p5707_p0  ;;  %p5712_p9 = scmp.lt.u32.totalorder %s6990_s3, %s7991_s5 }
 0x19f   : > { %p5713_p10 = scmp.lt.u32.totalorder %s5711_s1, %s5706_s12  ;;  %p5715_p12 = scmp.lt.u32.totalorder %s5706_s12, %s6990_s3 }
 0x1a0   : > { %p5710_p7 = pneg %p5709_p5 }
 0x1a1   : > { %p5714_p11 = por %p5713_p10, %p5712_p9 }
 0x1a3   : > { %p5716_p1 = por %p5715_p12, %p5714_p11 }
 0x1a5   : > { %p5717_p4 = pnand %p5716_p1, %p5710_p7 }
 0x1a7   : > { %5720 = shalt.err (!%p5717_p4)
}
 0x1a8   : > { %s5721_s0 = scalar_lea.vmem %s6996_s11, 256  ;;  %s6516_s28 = smov [#allocation6]  }
 0x1a9   : > { %p5722_p3 = scmp.ne.s32.totalorder %s6996_s11, %s5721_s0  ;;  %s5726_s13 = sshll.u32 %s6516_s28, 4  ;;  %s5727_s13 = int_to_ptr.vmem [resolvable:$false] %s5726_s13 }
 0x1aa   : > { %s5728_s14 = scalar_lea.vmem %s5727_s13, 512  ;;  %p5729_p0 = scmp.lt.s32.totalorder %s6996_s11, %s5727_s13 }
 0x1ab   : > { %p5724_p6 = pnand %p5722_p3, %p7006_p2  ;;  %p5730_p5 = scmp.lt.s32.totalorder %s5728_s14, %s5721_s0 }
 0x1ad   : > { %p5725_p8 = pneg %p5724_p6  ;;  %p5731_p9 = por %p5730_p5, %p5729_p0 }
 0x1af   : > { %p5732_p10 = pnand %p5731_p9, %p5725_p8 }
 0x1b1   : > { %5735 = shalt.err (!%p5732_p10)
}
 0x1b2   : > { %s8006_s12 = sld [smem:[#allocation90_spill]]  ;;  %s6517_s1 = smov [#allocation16]  }
 0x1b3   : > { %5124 = dma.hbm_to_vmem [thread:$0]  (!%p6992_p13), %s6990_s3, 256, %s6996_s11, %s7000_s9  }
 0x1b4   : > { %s933_s5 = sshll.u32 %s6517_s1, 4  ;;  %s6518_s28 = smov [#allocation19]   ;;  %s934_s5 = int_to_ptr.vmem [resolvable:$true] %s933_s5 }
 0x1b5   : > { %s957_s17 = sshll.u32 %s6518_s28, 4  ;;  %p8007_p8 = scmp.ne.s32.totalorder %s8001_s10, 0  ;;  %s7026_s17 = int_to_ptr.vmem [resolvable:$true] %s957_s17 }
 0x1b8   : > { %s5736_s13 = scalar_lea.hbm %s8006_s12, 2048 }
 0x1b9   : > { %p5737_p6 = scmp.ne.s32.totalorder %s8006_s12, %s5736_s13  ;;  %p5743_p11 = scmp.lt.u32.totalorder %s5736_s13, %s8006_s12 }
 0x1bb   : > { %p5739_p3 = pnand %p5737_p6, %p8007_p8 }
 0x1bd   : > { %p5740_p7 = pneg %p5739_p3 }
 0x1bf   : > { %p5745_p12 = pnand %p5743_p11, %p5740_p7 }
 0x1c1   : > { %5748 = shalt.err (!%p5745_p12)
}
 0x1c2   : > { %s5749_s14 = scalar_lea.vmem %s934_s5, 2048  ;;  %p5757_p5 = scmp.lt.s32.totalorder %s934_s5, %s934_s5 }
 0x1c3   : > { %p5750_p1 = scmp.ne.s32.totalorder %s934_s5, %s5749_s14  ;;  %p5758_p9 = scmp.lt.s32.totalorder %s5749_s14, %s5749_s14 }
 0x1c5   : > { %p5752_p4 = pnand %p5750_p1, %p8007_p8  ;;  %p5759_p10 = por %p5758_p9, %p5757_p5 }
 0x1c7   : > { %p5753_p0 = pneg %p5752_p4 }
 0x1c9   : > { %p5760_p13 = pnand %p5759_p10, %p5753_p0 }
 0x1cb   : > { %5763 = shalt.err (!%p5760_p13)
}
 0x1cc   : > { %p8008_p2 = scmp.ne.s32.totalorder %s8000_s18, 0  ;;  %s8009_s3 = smov 8  }
 0x1cd   : > { %s8010_s11 = smov 128   ;;  %s8011_s0 = sld [smem:[#allocation92_spill]] }
 0x1ce   : > { %5060 = dma.hbm_to_vmem [thread:$0]  (!%p8008_p2), %s8006_s12, 2048, %s934_s5, [#allocation13], %s8010_s11, %s8010_s11, %s8009_s3  }
 0x1d3   : > { %s8012_s1 = smov %s8011_s0  ;;  %s5764_s28 = scalar_lea.hbm %s8011_s0, 2048 }
 0x1d4   : > { %p5765_p6 = scmp.ne.s32.totalorder %s8012_s1, %s5764_s28  ;;  %p5771_p11 = scmp.lt.u32.totalorder %s5764_s28, %s8012_s1 }
 0x1d6   : > { %p5767_p3 = pnand %p5765_p6, %p8007_p8 }
 0x1d8   : > { %p5768_p7 = pneg %p5767_p3 }
 0x1da   : > { %p5773_p12 = pnand %p5771_p11, %p5768_p7 }
 0x1dc   : > { %5776 = shalt.err (!%p5773_p12)
}
 0x1dd   : > { %s5777_s13 = scalar_lea.vmem %s7026_s17, 2048  ;;  %p5785_p0 = scmp.lt.s32.totalorder %s7026_s17, %s7026_s17 }
 0x1de   : > { %p5778_p13 = scmp.ne.s32.totalorder %s7026_s17, %s5777_s13  ;;  %p5786_p5 = scmp.lt.s32.totalorder %s5777_s13, %s5777_s13 }
 0x1e0   : > { %p5780_p1 = pnand %p5778_p13, %p8007_p8  ;;  %p5787_p9 = por %p5786_p5, %p5785_p0 }
 0x1e2   : > { %p5781_p4 = pneg %p5780_p1 }
 0x1e4   : > { %p5788_p10 = pnand %p5787_p9, %p5781_p4 }
 0x1e6   : > { %5791 = shalt.err (!%p5788_p10)
}
 0x1e7   : > { %s8013_s5 = sld [smem:[#allocation94_spill]]  ;;  %s6519_s14 = smov [#allocation22]  }
 0x1e8   : > { %5066 = dma.hbm_to_vmem [thread:$0]  (!%p8008_p2), %s8012_s1, 2048, %s7026_s17, [#allocation18], %s8010_s11, %s8010_s11, %s8009_s3  }
 0x1e9   : > { %s981_s0 = sshll.u32 %s6519_s14, 4  ;;  %s6520_s28 = smov [#allocation25]   ;;  %s982_s0 = int_to_ptr.vmem [resolvable:$true] %s981_s0 }
 0x1ea   : > { %s1006_s12 = sshll.u32 %s6520_s28, 4  ;;  %s7059_s12 = int_to_ptr.vmem [resolvable:$true] %s1006_s12 }
 0x1ed   : > { %s5792_s13 = scalar_lea.hbm %s8013_s5, 2048 }
 0x1ee   : > { %p5793_p6 = scmp.ne.s32.totalorder %s8013_s5, %s5792_s13  ;;  %p5799_p11 = scmp.lt.u32.totalorder %s5792_s13, %s8013_s5 }
 0x1f0   : > { %p5795_p3 = pnand %p5793_p6, %p8007_p8 }
 0x1f2   : > { %p5796_p7 = pneg %p5795_p3 }
 0x1f4   : > { %p5801_p12 = pnand %p5799_p11, %p5796_p7 }
 0x1f6   : > { %5804 = shalt.err (!%p5801_p12)
}
 0x1f7   : > { %s5805_s19 = scalar_lea.vmem %s982_s0, 2048  ;;  %p5813_p0 = scmp.lt.s32.totalorder %s982_s0, %s982_s0 }
 0x1f8   : > { %p5806_p13 = scmp.ne.s32.totalorder %s982_s0, %s5805_s19  ;;  %p5814_p5 = scmp.lt.s32.totalorder %s5805_s19, %s5805_s19 }
 0x1fa   : > { %p5808_p1 = pnand %p5806_p13, %p8007_p8  ;;  %p5815_p9 = por %p5814_p5, %p5813_p0 }
 0x1fc   : > { %p5809_p4 = pneg %p5808_p1 }
 0x1fe   : > { %p5816_p10 = pnand %p5815_p9, %p5809_p4 }
 0x200   : > { %5819 = shalt.err (!%p5816_p10)
}
 0x201   : > { %s8014_s17 = sld [smem:[#allocation96_spill]] }
 0x202   : > { %5072 = dma.hbm_to_vmem [thread:$0]  (!%p8008_p2), %s8013_s5, 2048, %s982_s0, [#allocation21], %s8010_s11, %s8010_s11, %s8009_s3  }
 0x207   : > { %s5820_s14 = scalar_lea.hbm %s8014_s17, 16 }
 0x208   : > { %p5821_p6 = scmp.ne.s32.totalorder %s8014_s17, %s5820_s14  ;;  %p5827_p11 = scmp.lt.u32.totalorder %s5820_s14, %s8014_s17 }
 0x20a   : > { %p5823_p3 = pnand %p5821_p6, %p8007_p8 }
 0x20c   : > { %p5824_p7 = pneg %p5823_p3 }
 0x20e   : > { %p5829_p12 = pnand %p5827_p11, %p5824_p7 }
 0x210   : > { %5832 = shalt.err (!%p5829_p12)
}
 0x211   : > { %s5833_s19 = scalar_lea.vmem %s7059_s12, 16  ;;  %s5840_s28 = scalar_lea.vmem %s7059_s12, 32 }
 0x212   : > { %p5834_p13 = scmp.ne.s32.totalorder %s7059_s12, %s5833_s19  ;;  %p5841_p0 = scmp.lt.s32.totalorder %s7059_s12, %s7059_s12 }
 0x213   : > { %p5842_p5 = scmp.lt.s32.totalorder %s5840_s28, %s5833_s19 }
 0x214   : > { %p5836_p1 = pnand %p5834_p13, %p8007_p8 }
 0x215   : > { %p5843_p9 = por %p5842_p5, %p5841_p0 }
 0x216   : > { %p5837_p4 = pneg %p5836_p1 }
 0x218   : > { %p5844_p10 = pnand %p5843_p9, %p5837_p4 }
 0x21a   : > { %5847 = shalt.err (!%p5844_p10)
}
 0x21b   : > { %s8015_s0 = sld [smem:[#allocation98_spill]]  ;;  %s6521_s14 = smov [#allocation28]  }
 0x21c   : > { %5078 = dma.hbm_to_vmem [thread:$0]  (!%p8008_p2), %s8014_s17, 16, %s7059_s12, [#allocation24]  }
 0x21d   : > { %s1028_s1 = sshll.u32 %s6521_s14, 4  ;;  %s6522_s5 = smov [#allocation31]   ;;  %s1029_s1 = int_to_ptr.vmem [resolvable:$true] %s1028_s1 }
 0x21e   : > { %s1050_s20 = sshll.u32 %s6522_s5, 4  ;;  %s7090_s20 = int_to_ptr.vmem [resolvable:$true] %s1050_s20 }
 0x221   : > { %s8016_s13 = smov %s8015_s0  ;;  %s5848_s19 = scalar_lea.hbm %s8015_s0, 16 }
 0x222   : > { %p5849_p6 = scmp.ne.s32.totalorder %s8016_s13, %s5848_s19  ;;  %p5855_p11 = scmp.lt.u32.totalorder %s5848_s19, %s8016_s13 }
 0x224   : > { %p5851_p3 = pnand %p5849_p6, %p8007_p8 }
 0x226   : > { %p5852_p7 = pneg %p5851_p3 }
 0x228   : > { %p5857_p12 = pnand %p5855_p11, %p5852_p7 }
 0x22a   : > { %5860 = shalt.err (!%p5857_p12)
}
 0x22b   : > { %s5861_s28 = scalar_lea.vmem %s1029_s1, 16  ;;  %s5868_s12 = scalar_lea.vmem %s1029_s1, 32 }
 0x22c   : > { %p5862_p13 = scmp.ne.s32.totalorder %s1029_s1, %s5861_s28  ;;  %p5869_p0 = scmp.lt.s32.totalorder %s1029_s1, %s1029_s1 }
 0x22d   : > { %p5870_p5 = scmp.lt.s32.totalorder %s5868_s12, %s5861_s28 }
 0x22e   : > { %p5864_p1 = pnand %p5862_p13, %p8007_p8 }
 0x22f   : > { %p5871_p9 = por %p5870_p5, %p5869_p0 }
 0x230   : > { %p5865_p4 = pneg %p5864_p1 }
 0x232   : > { %p5872_p10 = pnand %p5871_p9, %p5865_p4 }
 0x234   : > { %5875 = shalt.err (!%p5872_p10)
}
 0x235   : > { %s8017_s5 = sld [smem:[#allocation100_spill]] }
 0x236   : > { %5084 = dma.hbm_to_vmem [thread:$0]  (!%p8008_p2), %s8016_s13, 16, %s1029_s1, [#allocation27]  }
 0x23b   : > { %s5876_s0 = scalar_lea.hbm %s8017_s5, 384 }
 0x23c   : > { %p5877_p6 = scmp.ne.s32.totalorder %s8017_s5, %s5876_s0  ;;  %p5883_p11 = scmp.lt.u32.totalorder %s5876_s0, %s8017_s5 }
 0x23e   : > { %p5879_p3 = pnand %p5877_p6, %p8007_p8 }
 0x240   : > { %p5880_p7 = pneg %p5879_p3 }
 0x242   : > { %p5885_p12 = pnand %p5883_p11, %p5880_p7 }
 0x244   : > { %5888 = shalt.err (!%p5885_p12)
}
 0x245   : > { %s5889_s14 = scalar_lea.vmem %s7090_s20, 384  ;;  %p5897_p0 = scmp.lt.s32.totalorder %s7090_s20, %s7090_s20 }
 0x246   : > { %p5890_p13 = scmp.ne.s32.totalorder %s7090_s20, %s5889_s14  ;;  %p5898_p5 = scmp.lt.s32.totalorder %s5889_s14, %s5889_s14 }
 0x248   : > { %p5892_p1 = pnand %p5890_p13, %p8007_p8  ;;  %p5899_p9 = por %p5898_p5, %p5897_p0 }
 0x24a   : > { %p5893_p4 = pneg %p5892_p1 }
 0x24c   : > { %p5900_p10 = pnand %p5899_p9, %p5893_p4 }
 0x24e   : > { %5903 = shalt.err (!%p5900_p10)
}
 0x24f   : > { %s8018_s1 = sld [smem:[#allocation102_spill]]  ;;  %s6523_s19 = smov [#allocation34]  }
 0x250   : > { %5090 = dma.hbm_to_vmem [thread:$0]  (!%p8008_p2), %s8017_s5, 384, %s7090_s20, [#allocation30]  }
 0x251   : > { %s1074_s28 = sshll.u32 %s6523_s19, 4  ;;  %s6524_s12 = smov [#allocation37]   ;;  %s1075_s28 = int_to_ptr.vmem [resolvable:$true] %s1074_s28 }
 0x252   : > { %s1098_s0 = sshll.u32 %s6524_s12, 4  ;;  %s7117_s0 = int_to_ptr.vmem [resolvable:$true] %s1098_s0 }
 0x255   : > { %s5904_s14 = scalar_lea.hbm %s8018_s1, 16 }
 0x256   : > { %p5905_p6 = scmp.ne.s32.totalorder %s8018_s1, %s5904_s14  ;;  %p5911_p11 = scmp.lt.u32.totalorder %s5904_s14, %s8018_s1 }
 0x258   : > { %p5907_p3 = pnand %p5905_p6, %p8007_p8 }
 0x25a   : > { %p5908_p7 = pneg %p5907_p3 }
 0x25c   : > { %p5913_p12 = pnand %p5911_p11, %p5908_p7 }
 0x25e   : > { %5916 = shalt.err (!%p5913_p12)
}
 0x25f   : > { %s5917_s13 = scalar_lea.vmem %s1075_s28, 16  ;;  %s5924_s20 = scalar_lea.vmem %s1075_s28, 32 }
 0x260   : > { %p5918_p13 = scmp.ne.s32.totalorder %s1075_s28, %s5917_s13  ;;  %p5925_p0 = scmp.lt.s32.totalorder %s1075_s28, %s1075_s28 }
 0x261   : > { %p5926_p5 = scmp.lt.s32.totalorder %s5924_s20, %s5917_s13 }
 0x262   : > { %p5920_p1 = pnand %p5918_p13, %p8007_p8 }
 0x263   : > { %p5927_p9 = por %p5926_p5, %p5925_p0 }
 0x264   : > { %p5921_p4 = pneg %p5920_p1 }
 0x266   : > { %p5928_p10 = pnand %p5927_p9, %p5921_p4 }
 0x268   : > { %5931 = shalt.err (!%p5928_p10)
}
 0x269   : > { %s8019_s19 = sld [smem:[#allocation104_spill]] }
 0x26a   : > { %5096 = dma.hbm_to_vmem [thread:$0]  (!%p8008_p2), %s8018_s1, 16, %s1075_s28, [#allocation33]  }
 0x26f   : > { %s5932_s12 = scalar_lea.hbm %s8019_s19, 16 }
 0x270   : > { %p5933_p6 = scmp.ne.s32.totalorder %s8019_s19, %s5932_s12  ;;  %p5939_p11 = scmp.lt.u32.totalorder %s5932_s12, %s8019_s19 }
 0x272   : > { %p5935_p3 = pnand %p5933_p6, %p8007_p8 }
 0x274   : > { %p5936_p7 = pneg %p5935_p3 }
 0x276   : > { %p5941_p12 = pnand %p5939_p11, %p5936_p7 }
 0x278   : > { %5944 = shalt.err (!%p5941_p12)
}
 0x279   : > { %s5945_s13 = scalar_lea.vmem %s7117_s0, 16  ;;  %s5952_s14 = scalar_lea.vmem %s7117_s0, 32 }
 0x27a   : > { %p5946_p13 = scmp.ne.s32.totalorder %s7117_s0, %s5945_s13  ;;  %p5953_p0 = scmp.lt.s32.totalorder %s7117_s0, %s7117_s0 }
 0x27b   : > { %p5954_p5 = scmp.lt.s32.totalorder %s5952_s14, %s5945_s13 }
 0x27c   : > { %p5948_p1 = pnand %p5946_p13, %p8007_p8 }
 0x27d   : > { %p5955_p9 = por %p5954_p5, %p5953_p0 }
 0x27e   : > { %p5949_p4 = pneg %p5948_p1 }
 0x280   : > { %p5956_p10 = pnand %p5955_p9, %p5949_p4 }
 0x282   : > { %5959 = shalt.err (!%p5956_p10)
}
 0x283   : > { %s8020_s28 = sld [smem:[#allocation106_spill]]  ;;  %s6525_s20 = smov [#allocation40]  }
 0x284   : > { %5102 = dma.hbm_to_vmem [thread:$0]  (!%p8008_p2), %s8019_s19, 16, %s7117_s0, [#allocation36]  }
 0x285   : > { %s1122_s12 = sshll.u32 %s6525_s20, 4  ;;  %s6526_s1 = smov [#allocation43]   ;;  %s1123_s12 = int_to_ptr.vmem [resolvable:$true] %s1122_s12 }
 0x286   : > { %s1144_s5 = sshll.u32 %s6526_s1, 4  ;;  %s7145_s5 = int_to_ptr.vmem [resolvable:$true] %s1144_s5 }
 0x289   : > { %s5960_s13 = scalar_lea.hbm %s8020_s28, 16 }
 0x28a   : > { %p5961_p6 = scmp.ne.s32.totalorder %s8020_s28, %s5960_s13  ;;  %p5967_p11 = scmp.lt.u32.totalorder %s5960_s13, %s8020_s28 }
 0x28c   : > { %p5963_p3 = pnand %p5961_p6, %p8007_p8 }
 0x28e   : > { %p5964_p7 = pneg %p5963_p3 }
 0x290   : > { %p5969_p12 = pnand %p5967_p11, %p5964_p7 }
 0x292   : > { %5972 = shalt.err (!%p5969_p12)
}
 0x293   : > { %s5973_s14 = scalar_lea.vmem %s1123_s12, 16  ;;  %s5980_s0 = scalar_lea.vmem %s1123_s12, 32 }
 0x294   : > { %p5974_p13 = scmp.ne.s32.totalorder %s1123_s12, %s5973_s14  ;;  %p5981_p0 = scmp.lt.s32.totalorder %s1123_s12, %s1123_s12 }
 0x295   : > { %p5982_p5 = scmp.lt.s32.totalorder %s5980_s0, %s5973_s14 }
 0x296   : > { %p5976_p1 = pnand %p5974_p13, %p8007_p8 }
 0x297   : > { %p5983_p9 = por %p5982_p5, %p5981_p0 }
 0x298   : > { %p5977_p4 = pneg %p5976_p1 }
 0x29a   : > { %p5984_p10 = pnand %p5983_p9, %p5977_p4 }
 0x29c   : > { %5987 = shalt.err (!%p5984_p10)
}
 0x29d   : > { %s8021_s1 = sld [smem:[#allocation107_spill]] }
 0x29e   : > { %5108 = dma.hbm_to_vmem [thread:$0]  (!%p8008_p2), %s8020_s28, 16, %s1123_s12, [#allocation39]  }
 0x2a3   : > { %s5988_s20 = scalar_lea.hbm %s8021_s1, 16 }
 0x2a4   : > { %p5989_p6 = scmp.ne.s32.totalorder %s8021_s1, %s5988_s20  ;;  %p5995_p11 = scmp.lt.u32.totalorder %s5988_s20, %s8021_s1 }
 0x2a6   : > { %p5991_p3 = pnand %p5989_p6, %p8007_p8 }
 0x2a8   : > { %p5992_p7 = pneg %p5991_p3 }
 0x2aa   : > { %p5997_p12 = pnand %p5995_p11, %p5992_p7 }
 0x2ac   : > { %6000 = shalt.err (!%p5997_p12)
}
 0x2ad   : > { %s6001_s13 = scalar_lea.vmem %s7145_s5, 16  ;;  %s6008_s14 = scalar_lea.vmem %s7145_s5, 32 }
 0x2ae   : > { %p6002_p13 = scmp.ne.s32.totalorder %s7145_s5, %s6001_s13  ;;  %p6009_p0 = scmp.lt.s32.totalorder %s7145_s5, %s7145_s5 }
 0x2af   : > { %p6010_p5 = scmp.lt.s32.totalorder %s6008_s14, %s6001_s13 }
 0x2b0   : > { %p6004_p1 = pnand %p6002_p13, %p8007_p8 }
 0x2b1   : > { %p6011_p9 = por %p6010_p5, %p6009_p0 }
 0x2b2   : > { %p6005_p4 = pneg %p6004_p1 }
 0x2b4   : > { %p6012_p10 = pnand %p6011_p9, %p6005_p4 }
 0x2b6   : > { %6015 = shalt.err (!%p6012_p10)
}
 0x2b7   : > { %s8022_s12 = sld [smem:[#allocation109_spill]]  ;;  %s3886_s0 = sshll.u32 %s6983_s4, 3 }
 0x2b8   : > { %5114 = dma.hbm_to_vmem [thread:$0]  (!%p8008_p2), %s8021_s1, 16, %s7145_s5, [#allocation42]  }
 0x2b9   : > { %s6527_s20 = smov [#allocation46]   ;;  %s3965_s19 = sshll.u32 %s6464_s26, 7 }
 0x2ba   : > { %s1166_s17 = sshll.u32 %s6527_s20, 4  ;;  %s1167_s17 = int_to_ptr.vmem [resolvable:$true] %s1166_s17 }
 0x2bd   : > { %s6016_s13 = scalar_lea.hbm %s8022_s12, 16 }
 0x2be   : > { %p6017_p6 = scmp.ne.s32.totalorder %s8022_s12, %s6016_s13  ;;  %p6023_p11 = scmp.lt.u32.totalorder %s6016_s13, %s8022_s12 }
 0x2c0   : > { %p6019_p3 = pnand %p6017_p6, %p8007_p8 }
 0x2c2   : > { %p6020_p7 = pneg %p6019_p3 }
 0x2c4   : > { %p6025_p12 = pnand %p6023_p11, %p6020_p7 }
 0x2c6   : > { %6028 = shalt.err (!%p6025_p12)
}
 0x2c7   : > { %s6029_s14 = scalar_lea.vmem %s1167_s17, 16  ;;  %s6036_s5 = scalar_lea.vmem %s1167_s17, 32 }
 0x2c8   : > { %p6030_p13 = scmp.ne.s32.totalorder %s1167_s17, %s6029_s14  ;;  %p6037_p0 = scmp.lt.s32.totalorder %s1167_s17, %s1167_s17 }
 0x2c9   : > { %p6038_p5 = scmp.lt.s32.totalorder %s6036_s5, %s6029_s14 }
 0x2ca   : > { %p6032_p1 = pnand %p6030_p13, %p8007_p8 }
 0x2cb   : > { %p6039_p9 = por %p6038_p5, %p6037_p0 }
 0x2cc   : > { %p6033_p4 = pneg %p6032_p1 }
 0x2ce   : > { %p6040_p10 = pnand %p6039_p9, %p6033_p4 }
 0x2d0   : > { %6043 = shalt.err (!%p6040_p10)
}
 0x2d1   : > { %s8023_s20 = sld [smem:[#allocation85_spill]]  ;;  %s1200_s10 = scalar_lea.vmem [#allocation9], %s3886_s0 }
 0x2d2   : > { %5120 = dma.hbm_to_vmem [thread:$0]  (!%p8008_p2), %s8022_s12, 16, %s1167_s17, [#allocation45]  }
 0x2d3   : > { %s1208_s14 = sshll.u32 %s1200_s10, 4  ;;  %s3889_s5 = sshll.u32 %s6983_s4, 8  ;;  %s7188_s14 = int_to_ptr.vmem [resolvable:$true] %s1208_s14 }
 0x2d4   : > { %s8024_s18 = sand.u32 1, %s6464_s26   ;;  %p8025_p6 = scmp.ne.s32.totalorder %s8005_s21, 0 }
 0x2d5   : > { %s1197_s1 = scalar_lea.sflag [#allocation10], %s8024_s18 }
 0x2d7   : > { %s7186_s13 = scalar_lea.hbm %s8023_s20, %s3965_s19  ;;  %s6049_s25 = scalar_lea.hbm %s8023_s20, 256 }
 0x2d8   : > { %s6044_s24 = scalar_lea.hbm %s7186_s13, 128  ;;  %p6050_p2 = scmp.lt.u32.totalorder %s7186_s13, %s8023_s20 }
 0x2d9   : > { %p6045_p8 = scmp.ne.s32.totalorder %s7186_s13, %s6044_s24  ;;  %p6051_p11 = scmp.lt.u32.totalorder %s6049_s25, %s6044_s24 }
 0x2da   : > { %p6053_p13 = scmp.lt.u32.totalorder %s6044_s24, %s7186_s13 }
 0x2db   : > { %p6047_p3 = pnand %p6045_p8, %p8025_p6  ;;  %p6052_p12 = por %p6051_p11, %p6050_p2 }
 0x2dd   : > { %p6048_p7 = pneg %p6047_p3  ;;  %p6054_p1 = por %p6053_p13, %p6052_p12 }
 0x2df   : > { %p6055_p4 = pnand %p6054_p1, %p6048_p7 }
 0x2e1   : > { %6058 = shalt.err (!%p6055_p4)
}
 0x2e2   : > { %s6059_s17 = scalar_lea.vmem %s7188_s14, 128  ;;  %s6528_s19 = smov [#allocation9]  }
 0x2e3   : > { %p6060_p0 = scmp.ne.s32.totalorder %s7188_s14, %s6059_s17  ;;  %s6064_s0 = sshll.u32 %s6528_s19, 4  ;;  %s6065_s0 = int_to_ptr.vmem [resolvable:$false] %s6064_s0 }
 0x2e4   : > { %s6066_s10 = scalar_lea.vmem %s6065_s0, 256  ;;  %p6067_p10 = scmp.lt.s32.totalorder %s7188_s14, %s6065_s0 }
 0x2e5   : > { %p6062_p5 = pnand %p6060_p0, %p8025_p6  ;;  %p6068_p8 = scmp.lt.s32.totalorder %s6066_s10, %s6059_s17 }
 0x2e7   : > { %p6063_p9 = pneg %p6062_p5  ;;  %p6069_p3 = por %p6068_p8, %p6067_p10 }
 0x2e9   : > { %p6070_p2 = pnand %p6069_p3, %p6063_p9 }
 0x2eb   : > { %6073 = shalt.err (!%p6070_p2)
}
 0x2ec   : > { %p8026_p7 = scmp.ne.s32.totalorder %s8004_s6, 0  ;;  %s8027_s25 = sld [smem:[#allocation88_spill]] }
 0x2ed   : > { %s8028_s24 = sld [smem:[#allocation110_spill]]  ;;  %s3966_s18 = sshll.u32 %s6464_s26, 12 }
 0x2ee   : > { %5127 = dma.hbm_to_vmem [thread:$0]  (!%p8026_p7), %s7186_s13, 128, %s7188_s14, %s1197_s1  }
 0x2ef   : > { %s1219_s17 = scalar_lea.vmem [#allocation14], %s3889_s5  ;;  %s8029_s10 = sshll.u32 %s6464_s26, 8 }
 0x2f0   : > { %s1226_s0 = sshll.u32 %s1219_s17, 4  ;;  %s7221_s0 = int_to_ptr.vmem [resolvable:$true] %s1226_s0 }
 0x2f2   : > { %s7212_s19 = scalar_lea.hbm %s8027_s25, %s3966_s18  ;;  %s6079_s1 = scalar_lea.hbm %s8027_s25, 8192 }
 0x2f3   : > { %s7219_s12 = scalar_lea.hbm %s8028_s24, %s8029_s10  ;;  %s6074_s20 = scalar_lea.hbm %s7212_s19, 4096 }
 0x2f4   : > { %p6075_p11 = scmp.ne.s32.totalorder %s7212_s19, %s6074_s20  ;;  %p6080_p1 = scmp.lt.u32.totalorder %s7212_s19, %s8027_s25 }
 0x2f5   : > { %p6081_p4 = scmp.lt.u32.totalorder %s6079_s1, %s6074_s20  ;;  %p6083_p5 = scmp.lt.u32.totalorder %s6074_s20, %s7212_s19 }
 0x2f6   : > { %p6077_p12 = pnand %p6075_p11, %p8025_p6 }
 0x2f7   : > { %p6082_p0 = por %p6081_p4, %p6080_p1 }
 0x2f8   : > { %p6078_p13 = pneg %p6077_p12 }
 0x2f9   : > { %p6084_p9 = por %p6083_p5, %p6082_p0 }
 0x2fb   : > { %p6085_p10 = pnand %p6084_p9, %p6078_p13 }
 0x2fd   : > { %6088 = shalt.err (!%p6085_p10)
}
 0x2fe   : > { %s6089_s26 = scalar_lea.vmem %s7221_s0, 4096  ;;  %s6529_s13 = smov [#allocation14]  }
 0x2ff   : > { %p6090_p8 = scmp.ne.s32.totalorder %s7221_s0, %s6089_s26  ;;  %s6094_s14 = sshll.u32 %s6529_s13, 4  ;;  %s6095_s14 = int_to_ptr.vmem [resolvable:$false] %s6094_s14 }
 0x300   : > { %s6096_s5 = scalar_lea.vmem %s6095_s14, 8192  ;;  %p6097_p11 = scmp.lt.s32.totalorder %s7221_s0, %s6095_s14 }
 0x301   : > { %p6092_p3 = pnand %p6090_p8, %p8025_p6  ;;  %p6098_p12 = scmp.lt.s32.totalorder %s6096_s5, %s6089_s26 }
 0x303   : > { %p6093_p2 = pneg %p6092_p3  ;;  %p6099_p1 = por %p6098_p12, %p6097_p11 }
 0x305   : > { %p6100_p4 = pnand %p6099_p1, %p6093_p2 }
 0x307   : > { %6103 = shalt.err (!%p6100_p4)
}
 0x308   : > { %5130 = dma.hbm_to_vmem [thread:$0]  (!%p8026_p7), %s7212_s19, 4096, %s7221_s0, %s7000_s9, %s8010_s11, %s8010_s11, %s8009_s3  }
 0x309   : > { %s4910_s20 = smul.u32 608, %s6983_s4  ;;  %s1237_s10 = scalar_lea.sflag [#allocation48], %s6983_s4 }
 0x30a   : > { %s6104_s1 = scalar_lea.hbm %s7219_s12, 9728  ;;  %s6109_s26 = scalar_lea.hbm %s8028_s24, 19456 }
 0x30b   : > { %s1240_s18 = scalar_lea.vmem [#allocation47], %s4910_s20  ;;  %p6105_p13 = scmp.ne.s32.totalorder %s7219_s12, %s6104_s1 }
 0x30c   : > { %s1247_s17 = sshll.u32 %s1240_s18, 4  ;;  %p6110_p9 = scmp.lt.u32.totalorder %s7219_s12, %s8028_s24  ;;  %s7245_s17 = int_to_ptr.vmem [resolvable:$true] %s1247_s17 }
 0x30d   : > { %p6107_p0 = pnand %p6105_p13, %p8025_p6  ;;  %p6111_p10 = scmp.lt.u32.totalorder %s6109_s26, %s6104_s1 }
 0x30e   : > { %p6113_p3 = scmp.lt.u32.totalorder %s6104_s1, %s7219_s12 }
 0x30f   : > { %p6108_p5 = pneg %p6107_p0  ;;  %p6112_p8 = por %p6111_p10, %p6110_p9 }
 0x311   : > { %p6114_p2 = por %p6113_p3, %p6112_p8 }
 0x313   : > { %p6115_p11 = pnand %p6114_p2, %p6108_p5 }
 0x315   : > { %6118 = shalt.err (!%p6115_p11)
}
 0x316   : > { %s6119_s9 = scalar_lea.vmem %s7245_s17, 9728  ;;  %s6530_s3 = smov [#allocation47]  }
 0x317   : > { %p6120_p12 = scmp.ne.s32.totalorder %s7245_s17, %s6119_s9  ;;  %s6124_s11 = sshll.u32 %s6530_s3, 4  ;;  %s6125_s11 = int_to_ptr.vmem [resolvable:$false] %s6124_s11 }
 0x318   : > { %s6126_s19 = scalar_lea.vmem %s6125_s11, 19456  ;;  %p6127_p13 = scmp.lt.s32.totalorder %s7245_s17, %s6125_s11 }
 0x319   : > { %p6122_p1 = pnand %p6120_p12, %p8025_p6  ;;  %p6128_p0 = scmp.lt.s32.totalorder %s6126_s19, %s6119_s9 }
 0x31b   : > { %p6123_p4 = pneg %p6122_p1  ;;  %p6129_p9 = por %p6128_p0, %p6127_p13 }
 0x31d   : > { %p6130_p10 = pnand %p6129_p9, %p6123_p4 }
 0x31f   : > { %6133 = shalt.err (!%p6130_p10)
}
 0x320   : > { %s6531_s0 = smov 512   ;;  %s6532_s13 = smov 256  }
 0x321   : > { %s6533_s14 = smov 16   ;;  %p8030_p6 = scmp.ne.s32.totalorder %s7999_s7, 0 }
 0x322   : > { %5133 = dma.hbm_to_vmem [thread:$0]  (!%p8026_p7), %s7219_s12, 9728, %s7245_s17, %s1237_s10, %s6531_s0, %s6532_s13, %s6533_s14  }
 0x323   : > { %1259 = sbr.rel (%p8030_p6) target bundleno = 3427 (0xd63), region = 132  ;;  %s1261_s21 = sand.u32 (!%p8030_p6), 1, %s6757_s2  }
 0x324   : > { %s7271_s5 = sand.u32 (!%p8030_p6), 1, %s6456_s22   ;;  %s1262_s18 = scalar_lea.sflag (!%p8030_p6), [#allocation7], %s1261_s21 }
 0x325   : > { %s3895_s20 = sshll.u32 (!%p8030_p6), %s7271_s5, 4  ;;  %p8031_p5 = scmp.ne.s32.totalorder (!%p8030_p6), %s8003_s15, 0 }
 0x326   : > { %s7274_s1 = scalar_lea.vmem (!%p8030_p6), [#allocation6], %s3895_s20 }
 0x32a   : > { %6359 = dma.done.wait (%p8031_p5), %s1262_s18, 256  }
 0x32b   : > { %6361 = vsyncadd (%p8031_p5), %s1262_s18, 4294967040  ;;  %s3896_s6 = sshll.u32 %s7271_s5, 3  ;;  %s1271_s7 = scalar_lea.sflag [#allocation10], %s1261_s21 }
 0x32c   : > { %s7281_s4 = scalar_lea.vmem [#allocation9], %s3896_s6 }
 0x32d   : > { %6363 = dma.done.wait (%p8031_p5), %s1271_s7, 128  }
 0x32e   : > { %6365 = vsyncadd (%p8031_p5), %s1271_s7, 4294967168  ;;  %p8032_p7 = scmp.eq.s32.totalorder %s6757_s2, 0 }
 0x330   : > { %6367 = dma.done.wait (%p8032_p7), [#allocation10], 128   ;;  %p8033_p8 = pmov %p8032_p7 }
 0x331   : > { %p8034_p3 = pmov %p8032_p7 }
 0x332   : > { %6369 = vsyncadd (%p8033_p8), [#allocation10], 4294967168 }
 0x333   : > { %6371 = dma.done.wait (%p8034_p3), [#allocation13], 64   ;;  %p8035_p2 = pmov %p8034_p3 }
 0x334   : > { %s3899_s12 = sshll.u32 %s7271_s5, 8 }
 0x335   : > { %6373 = vsyncadd (%p8035_p2), [#allocation13], 4294967232  ;;  %s7296_s17 = scalar_lea.vmem [#allocation14], %s3899_s12 }
 0x336   : > { %6375 = dma.done.wait (%p8031_p5), %s1262_s18, 4096  }
 0x337   : > { %6377 = vsyncadd (%p8031_p5), %s1262_s18, 4294963200  ;;  %p8036_p11 = pmov %p8035_p2 }
 0x338   : > { %p8037_p12 = pmov %p8035_p2 }
 0x339   : > { %6379 = dma.done.wait (%p8036_p11), [#allocation10], 16  }
 0x33a   : > { %6381 = vsyncadd (%p8037_p12), [#allocation10], 4294967280  ;;  %p8038_p1 = pmov %p8035_p2 }
 0x33c   : > { %6383 = dma.done.wait (%p8038_p1), [#allocation13], 2048   ;;  %p8039_p4 = pmov %p8038_p1 }
 0x33d   : > { %p8040_p13 = pmov %p8038_p1 }
 0x33e   : > { %6385 = vsyncadd (%p8039_p4), [#allocation13], 4294965248 }
 0x33f   : > { %6387 = dma.done.wait (%p8040_p13), [#allocation18], 2064   ;;  %p8041_p0 = pmov %p8038_p1 }
 0x341   : > { %6389 = vsyncadd (%p8041_p0), [#allocation18], 4294965232  ;;  %p8042_p9 = pmov %p8041_p0 }
 0x342   : > { %p8043_p10 = pmov %p8041_p0 }
 0x343   : > { %6391 = dma.done.wait (%p8042_p9), [#allocation21], 2064  }
 0x344   : > { %6393 = vsyncadd (%p8043_p10), [#allocation21], 4294965232  ;;  %p8044_p6 = pmov %p8041_p0 }
 0x345   : > { %p8045_p7 = pmov %p8041_p0 }
 0x346   : > { %6395 = dma.done.wait (%p8044_p6), [#allocation24], 32  }
 0x347   : > { %6397 = vsyncadd (%p8045_p7), [#allocation24], 4294967264  ;;  %p8046_p8 = pmov %p8041_p0 }
 0x348   : > { %p8047_p3 = pmov %p8041_p0 }
 0x349   : > { %6399 = dma.done.wait (%p8046_p8), [#allocation27], 32  }
 0x34a   : > { %6401 = vsyncadd (%p8047_p3), [#allocation27], 4294967264  ;;  %p8048_p2 = pmov %p8041_p0 }
 0x34b   : > { %p8049_p11 = pmov %p8041_p0 }
 0x34c   : > { %6403 = dma.done.wait (%p8048_p2), [#allocation30], 400  }
 0x34d   : > { %6405 = vsyncadd (%p8049_p11), [#allocation30], 4294966896  ;;  %p8050_p12 = pmov %p8041_p0 }
 0x34e   : > { %p8051_p1 = pmov %p8041_p0 }
 0x34f   : > { %6407 = dma.done.wait (%p8050_p12), [#allocation33], 4880  }
 0x350   : > { %6409 = vsyncadd (%p8051_p1), [#allocation33], 4294962416  ;;  %p8052_p4 = pmov %p8041_p0 }
 0x351   : > { %p8053_p13 = pmov %p8041_p0 }
 0x352   : > { %6411 = dma.done.wait (%p8052_p4), [#allocation36], 2064  }
 0x353   : > { %6413 = vsyncadd (%p8053_p13), [#allocation36], 4294965232 }
 0x354   : > { %6415 = dma.done.wait (%p8041_p0), [#allocation39], 2064   ;;  %p8054_p9 = pmov %p8041_p0 }
 0x355   : > { %p8055_p10 = pmov %p8041_p0 }
 0x356   : > { %6417 = vsyncadd (%p8054_p9), [#allocation39], 4294965232 }
 0x357   : > { %6419 = dma.done.wait (%p8055_p10), [#allocation42], 32   ;;  %p8056_p6 = pmov %p8041_p0 }
 0x358   : > { %p8057_p7 = pmov %p8041_p0 }
 0x359   : > { %6421 = vsyncadd (%p8056_p6), [#allocation42], 4294967264 }
 0x35a   : > { %6423 = dma.done.wait (%p8057_p7), [#allocation45], 32   ;;  %p8058_p8 = pmov %p8041_p0 }
 0x35b   : > { %s4911_s10 = smul.u32 608, %s7271_s5  ;;  %s1385_s26 = scalar_lea.sflag [#allocation48], %s7271_s5 }
 0x35c   : > { %6425 = vsyncadd (%p8058_p8), [#allocation45], 4294967264 }
 0x35d   : > { %s7352_s9 = scalar_lea.vmem [#allocation47], %s4911_s10 }
 0x35e   : > { %6427 = dma.done.wait (%p8031_p5), %s1385_s26, 9728  }
 0x35f   : > { %6429 = vsyncadd (%p8031_p5), %s1385_s26, 4294957568  ;;  %p8059_p3 = scmp.ne.s32.totalorder %s6757_s2, 0 }
 0x360   : > { %vm1495_vm0 = vcmask (!%p8059_p3), 7168   ;;  %v6534_v0 = vmov (!%p8059_p3), 0.0   ;;  %v6535_v1 = vmov (!%p8059_p3), -inf  }
 0x361   : > { %1492 = sbr.rel (%p8059_p3) target bundleno = 872 (0x368), region = 248  ;;  %1493 = vst [vmem:[#allocation2] sm:$0xff] (!%p8059_p3), %v6534_v0  ;;  %1494 = vst [vmem:[#allocation3] sm:$0xf] (!%p8059_p3), %v6534_v0 }
 0x362   : > { %1496 = vst.msk [vmem:[#allocation4] sm:$0xff] (!%p8059_p3), %vm1495_vm0, %v6535_v1  ;;  %1497 = vst.msk [vmem:[#allocation5] sm:$0xff] (!%p8059_p3), %vm1495_vm0, %v6534_v0 }
 0x368 PF: > { %v1686_v2 = vld [vmem:[%s7352_s9 + $0x8] sm:$0xff]  ;;  %v1688_v3 = vld [vmem:[%s7352_s9 + $0x18] sm:$0xff]  ;;  %v1685_v4 = vld [vmem:[%s7352_s9] sm:$0xff]  ;;  %vm1765_vm1 = vcmask 1043456   ;;  %vm6537_vm2 = vmmov 1   ;;  %vm1761_vm4 = vcmask 359424  }
 0x369   : > { %v4596_v5 = vpack.c.bf16 %v1688_v3, %v1686_v2  ;;  %v1687_v6 = vld [vmem:[%s7352_s9 + $0x10] sm:$0xff]  ;;  %v1690_v7 = vld [vmem:[%s7352_s9 + $0x28] sm:$0xff]  ;;  %v1692_v8 = vld [vmem:[%s7352_s9 + $0x38] sm:$0xff]  ;;  %vm1939_vm5 = vcmask 7168   ;;  %p3926_p5 = scmp.ne.s32.totalorder %s6757_s2, 1 }
 0x36a   : > { %v4598_v9 = vpack.c.bf16 %v1687_v6, %v1685_v4  ;;  %v4600_v10 = vpack.c.bf16 %v1692_v8, %v1690_v7  ;;  %v1689_v11 = vld [vmem:[%s7352_s9 + $0x20] sm:$0xff]  ;;  %v1691_v12 = vld [vmem:[%s7352_s9 + $0x30] sm:$0xff]  ;;  %v1694_v13 = vld [vmem:[%s7352_s9 + $0x48] sm:$0xff]  ;;  %vm6540_vm6 = vmmov (!%p3926_p5), 0   ;;  %vm2450_vm7 = vcmask (!%p3926_p5), 15360  }
 0x36b   : > { %4597 = vmatprep.subr.bf16.mxu0 %v4596_v5  ;;  %v1696_v14 = vld [vmem:[%s7352_s9 + $0x58] sm:$0xff]  ;;  %v4602_v15 = vpack.c.bf16 %v1691_v12, %v1689_v11  ;;  %v1693_v17 = vld [vmem:[%s7352_s9 + $0x40] sm:$0xff]  ;;  %v1695_v18 = vld [vmem:[%s7352_s9 + $0x50] sm:$0xff]  ;;  %vm2458_vm8 = vcmask (!%p3926_p5), 11264   ;;  %vm3216_vm9 = vcmask (!%p3926_p5), 64512   ;;  %vm3305_vm10 = vcmask (!%p3926_p5), 60416  }
 0x36c   : > { %4599 = vmatpush1.bf16.msra.mxu0 %v4598_v9  ;;  %v4604_v16 = vpack.c.bf16 %v1696_v14, %v1694_v13  ;;  %v1698_v19 = vld [vmem:[%s7352_s9 + $0x68] sm:$0xff]  ;;  %v1700_v20 = vld [vmem:[%s7352_s9 + $0x78] sm:$0xff]  ;;  %v4606_v21 = vpack.c.bf16 %v1695_v18, %v1693_v17  ;;  %v1697_v23 = vld [vmem:[%s7352_s9 + $0x60] sm:$0xff] }
 0x36d   : > { %4601 = vmatprep.subr.bf16.mxu0 %v4600_v10  ;;  %v4608_v22 = vpack.c.bf16 %v1700_v20, %v1698_v19  ;;  %v1699_v24 = vld [vmem:[%s7352_s9 + $0x70] sm:$0xff]  ;;  %v1702_v25 = vld [vmem:[%s7352_s9 + $0x88] sm:$0xff]  ;;  %v1704_v26 = vld [vmem:[%s7352_s9 + $0x98] sm:$0xff] }
 0x36e   : > { %v4610_v27 = vpack.c.bf16 %v1699_v24, %v1697_v23  ;;  %v4612_v28 = vpack.c.bf16 %v1704_v26, %v1702_v25  ;;  %v1701_v29 = vld [vmem:[%s7352_s9 + $0x80] sm:$0xff]  ;;  %v1703_v30 = vld [vmem:[%s7352_s9 + $0x90] sm:$0xff]  ;;  %v1706_v31 = vld [vmem:[%s7352_s9 + $0xa8] sm:$0xff] }
 0x36f   : > { %v1708_v32 = vld [vmem:[%s7352_s9 + $0xb8] sm:$0xff]  ;;  %v4614_v33 = vpack.c.bf16 %v1703_v30, %v1701_v29  ;;  %v1705_v35 = vld [vmem:[%s7352_s9 + $0xa0] sm:$0xff]  ;;  %v1707_v36 = vld [vmem:[%s7352_s9 + $0xb0] sm:$0xff] }
 0x370   : > { %4603 = vmatpush1.bf16.msra.mxu0 %v4602_v15  ;;  %v4616_v34 = vpack.c.bf16 %v1708_v32, %v1706_v31  ;;  %v1710_v37 = vld [vmem:[%s7352_s9 + $0xc8] sm:$0xff]  ;;  %v1712_v38 = vld [vmem:[%s7352_s9 + $0xd8] sm:$0xff]  ;;  %v4618_v39 = vpack.c.bf16 %v1707_v36, %v1705_v35  ;;  %v1709_v41 = vld [vmem:[%s7352_s9 + $0xc0] sm:$0xff] }
 0x371   : > { %4605 = vmatprep.subr.bf16.mxu0 %v4604_v16  ;;  %v4620_v40 = vpack.c.bf16 %v1712_v38, %v1710_v37  ;;  %v1711_v42 = vld [vmem:[%s7352_s9 + $0xd0] sm:$0xff]  ;;  %v1714_v44 = vld [vmem:[%s7352_s9 + $0xe8] sm:$0xff]  ;;  %v1716_v45 = vld [vmem:[%s7352_s9 + $0xf8] sm:$0xff] }
 0x372   : > { %v7388_v43 = vld [vmem:[#allocation31 + $0x8] sm:$0xff]  ;;  %v4622_v46 = vpack.c.bf16 %v1711_v42, %v1709_v41  ;;  %v4624_v47 = vpack.c.bf16 %v1716_v45, %v1714_v44  ;;  %v1713_v48 = vld [vmem:[%s7352_s9 + $0xe0] sm:$0xff]  ;;  %v1718_v50 = vld [vmem:[%s7352_s9 + $0x108] sm:$0xff] }
 0x373   : > { %1836 = vmatprep.mubr.f32.mxu0 %v7388_v43  ;;  %v1715_v49 = vld [vmem:[%s7352_s9 + $0xf0] sm:$0xff]  ;;  %v1720_v51 = vld [vmem:[%s7352_s9 + $0x118] sm:$0xff]  ;;  %v1717_v54 = vld [vmem:[%s7352_s9 + $0x100] sm:$0xff] }
 0x374   : > { %4607 = vmatpush1.bf16.msra.mxu0 %v4606_v21  ;;  %v4626_v52 = vpack.c.bf16 %v1715_v49, %v1713_v48  ;;  %v4628_v53 = vpack.c.bf16 %v1720_v51, %v1718_v50  ;;  %v1719_v55 = vld [vmem:[%s7352_s9 + $0x110] sm:$0xff]  ;;  %v1722_v56 = vld [vmem:[%s7352_s9 + $0x128] sm:$0xff]  ;;  %v1724_v57 = vld [vmem:[%s7352_s9 + $0x138] sm:$0xff]  ;;  %v6536_v51 = vmov 0.0  }
 0x375   : > { %4609 = vmatprep.subr.bf16.mxu0 %v4608_v22  ;;  %v4630_v58 = vpack.c.bf16 %v1719_v55, %v1717_v54  ;;  %v4632_v59 = vpack.c.bf16 %v1724_v57, %v1722_v56  ;;  %v1721_v60 = vld [vmem:[%s7352_s9 + $0x120] sm:$0xff]  ;;  %v1723_v61 = vld [vmem:[%s7352_s9 + $0x130] sm:$0xff]  ;;  %v1726_v62 = vld [vmem:[%s7352_s9 + $0x148] sm:$0xff] }
 0x376   : > { %v1728_v63 = vld [vmem:[%s7352_s9 + $0x158] sm:$0xff]  ;;  %v4634_v0 = vpack.c.bf16 %v1723_v61, %v1721_v60  ;;  %v1725_v2 = vld [vmem:[%s7352_s9 + $0x140] sm:$0xff]  ;;  %v1727_v3 = vld [vmem:[%s7352_s9 + $0x150] sm:$0xff]  ;;  %v6538_v61 = vmov 0  }
 0x377   : > { %v4636_v1 = vpack.c.bf16 %v1728_v63, %v1726_v62  ;;  %v1730_v4 = vld [vmem:[%s7352_s9 + $0x168] sm:$0xff]  ;;  %v1732_v5 = vld [vmem:[%s7352_s9 + $0x178] sm:$0xff]  ;;  %v4638_v6 = vpack.c.bf16 %v1727_v3, %v1725_v2  ;;  %v1729_v8 = vld [vmem:[%s7352_s9 + $0x160] sm:$0xff]  ;;  %5312 = vset.pattern.permute.xlu0 %v6538_v61 }
 0x378   : > { %4611 = vmatpush1.bf16.msra.mxu0 %v4610_v27  ;;  %v4640_v7 = vpack.c.bf16 %v1732_v5, %v1730_v4  ;;  %v1731_v9 = vld [vmem:[%s7352_s9 + $0x170] sm:$0xff]  ;;  %v1734_v10 = vld [vmem:[%s7352_s9 + $0x188] sm:$0xff]  ;;  %v1736_v11 = vld [vmem:[%s7352_s9 + $0x198] sm:$0xff] }
 0x379   : > { %4613 = vmatprep.subr.bf16.mxu0 %v4612_v28  ;;  %v4642_v12 = vpack.c.bf16 %v1731_v9, %v1729_v8  ;;  %v4644_v13 = vpack.c.bf16 %v1736_v11, %v1734_v10  ;;  %v1733_v14 = vld [vmem:[%s7352_s9 + $0x180] sm:$0xff]  ;;  %v1735_v15 = vld [vmem:[%s7352_s9 + $0x190] sm:$0xff]  ;;  %v1738_v16 = vld [vmem:[%s7352_s9 + $0x1a8] sm:$0xff] }
 0x37a   : > { %v1740_v17 = vld [vmem:[%s7352_s9 + $0x1b8] sm:$0xff]  ;;  %v4646_v18 = vpack.c.bf16 %v1735_v15, %v1733_v14  ;;  %v1737_v20 = vld [vmem:[%s7352_s9 + $0x1a0] sm:$0xff]  ;;  %v1739_v21 = vld [vmem:[%s7352_s9 + $0x1b0] sm:$0xff] }
 0x37b   : > { %v4648_v19 = vpack.c.bf16 %v1740_v17, %v1738_v16  ;;  %v1742_v22 = vld [vmem:[%s7352_s9 + $0x1c8] sm:$0xff]  ;;  %v1744_v23 = vld [vmem:[%s7352_s9 + $0x1d8] sm:$0xff]  ;;  %v4650_v24 = vpack.c.bf16 %v1739_v21, %v1737_v20  ;;  %v1741_v26 = vld [vmem:[%s7352_s9 + $0x1c0] sm:$0xff] }
 0x37c   : > { %4615 = vmatpush1.bf16.msra.mxu0 %v4614_v33  ;;  %v4652_v25 = vpack.c.bf16 %v1744_v23, %v1742_v22  ;;  %v1743_v27 = vld [vmem:[%s7352_s9 + $0x1d0] sm:$0xff]  ;;  %v1746_v28 = vld [vmem:[%s7352_s9 + $0x1e8] sm:$0xff]  ;;  %v1748_v29 = vld [vmem:[%s7352_s9 + $0x1f8] sm:$0xff] }
 0x37d   : > { %4617 = vmatprep.subr.bf16.mxu0 %v4616_v34  ;;  %v4654_v30 = vpack.c.bf16 %v1743_v27, %v1741_v26  ;;  %v4656_v31 = vpack.c.bf16 %v1748_v29, %v1746_v28  ;;  %v1745_v32 = vld [vmem:[%s7352_s9 + $0x1e0] sm:$0xff]  ;;  %v1747_v33 = vld [vmem:[%s7352_s9 + $0x1f0] sm:$0xff]  ;;  %v1750_v34 = vld [vmem:[%s7352_s9 + $0x208] sm:$0xff] }
 0x37e   : > { %v1752_v35 = vld [vmem:[%s7352_s9 + $0x218] sm:$0xff]  ;;  %v4658_v36 = vpack.c.bf16 %v1747_v33, %v1745_v32  ;;  %v1749_v38 = vld [vmem:[%s7352_s9 + $0x200] sm:$0xff]  ;;  %v7433_v42 = vld [vmem:[#allocation31] sm:$0xff] }
 0x37f   : > { %v4660_v37 = vpack.c.bf16 %v1752_v35, %v1750_v34  ;;  %v1756_v41 = vld [vmem:[%s7352_s9 + $0x238] sm:$0xff]  ;;  %v1758_v48 = vld [vmem:[%s7352_s9 + $0x248] sm:$0xff]  ;;  %v1759_v54 = vld [vmem:[%s7352_s9 + $0x250] sm:$0xf] }
 0x380   : > { %4619 = vmatpush1.bf16.msra.mxu0 %v4618_v39  ;;  %v1751_v39 = vld [vmem:[%s7352_s9 + $0x210] sm:$0xff]  ;;  %v1760_v49 = vld [vmem:[%s7352_s9 + $0x258] sm:$0xf]  ;;  %vm7442_vm3 = vmpackc.low %vm1765_vm1, %vm6537_vm2 }
 0x381   : > { %4621 = vmatprep.subr.bf16.mxu0 %v4620_v40  ;;  %v1754_v40 = vld [vmem:[%s7352_s9 + $0x228] sm:$0xff]  ;;  %v4662_v44 = vpack.c.bf16 %v1751_v39, %v1749_v38  ;;  %v7450_v57 = vld [vmem:[#allocation31 + $0x10] sm:$0xff]  ;;  %v1517_v4 = vld [vmem:[%s7296_s17 + $0x98] sm:$0xff] }
 0x382   : > { %v4664_v45 = vpack.c.bf16 %v1756_v41, %v1754_v40  ;;  %v1514_v62 = vld [vmem:[%s7296_s17 + $0x80] sm:$0xff]  ;;  %v1515_v63 = vld [vmem:[%s7296_s17 + $0x88] sm:$0xff]  ;;  %v1516_v3 = vld [vmem:[%s7296_s17 + $0x90] sm:$0xff] }
 0x383   : > { %v1499_v2 = vld [vmem:[%s7296_s17 + $0x8] sm:$0xff]  ;;  %v1501_v8 = vld [vmem:[%s7296_s17 + $0x18] sm:$0xff]  ;;  %v1518_v9 = vld [vmem:[%s7296_s17 + $0xa0] sm:$0xff] }
 0x384   : > { %4623 = vmatpush1.bf16.msra.mxu0 %v4622_v46  ;;  %v1753_v46 = vld [vmem:[%s7352_s9 + $0x220] sm:$0xff]  ;;  %v1520_v15 = vld [vmem:[%s7296_s17 + $0xb0] sm:$0xff]  ;;  %v1521_v16 = vld [vmem:[%s7296_s17 + $0xb8] sm:$0xff] }
 0x385   : > { %4625 = vmatprep.subr.bf16.mxu0 %v4624_v47  ;;  %v1755_v47 = vld [vmem:[%s7352_s9 + $0x230] sm:$0xff]  ;;  %v1519_v10 = vld [vmem:[%s7296_s17 + $0xa8] sm:$0xff]  ;;  %v1522_v21 = vld [vmem:[%s7296_s17 + $0xc0] sm:$0xff] }
 0x386   : > { %v4666_v50 = vpack.c.bf16 %v1755_v47, %v1753_v46  ;;  %v1503_v14 = vld [vmem:[%s7296_s17 + $0x28] sm:$0xff]  ;;  %v1505_v20 = vld [vmem:[%s7296_s17 + $0x38] sm:$0xff]  ;;  %v1506_v26 = vld [vmem:[%s7296_s17 + $0x40] sm:$0xff] }
 0x387   : > { %v1523_v22 = vld [vmem:[%s7296_s17 + $0xc8] sm:$0xff]  ;;  %v1524_v28 = vld [vmem:[%s7296_s17 + $0xd0] sm:$0xff]  ;;  %v1525_v29 = vld [vmem:[%s7296_s17 + $0xd8] sm:$0xff] }
 0x388   : > { %4627 = vmatpush1.bf16.msra.mxu0 %v4626_v52  ;;  %v4668_v52 = vpack.c.bf16 %v1760_v49, %v1758_v48  ;;  %v1531_v23 = vld [vmem:[%s7274_s1 + $0x8] sm:$0xff]  ;;  %v1605_v49 = vld [vmem:[%s7281_s4] sm:$0xff] }
 0x389   : > { %4629 = vmatprep.subr.bf16.mxu0 %v4628_v53  ;;  %v1757_v53 = vld [vmem:[%s7352_s9 + $0x240] sm:$0xff]  ;;  %1597 = vmatprep.mubr.f32.mxu1 %v1531_v23  ;;  %v1508_v32 = vld [vmem:[%s7296_s17 + $0x50] sm:$0xff]  ;;  %v1509_v33 = vld [vmem:[%s7296_s17 + $0x58] sm:$0xff] }
 0x38a   : > { %v4671_v56 = vpack.c.bf16 %v1759_v54, %v1757_v53  ;;  %v1507_v27 = vld [vmem:[%s7296_s17 + $0x48] sm:$0xff]  ;;  %v1526_v34 = vld [vmem:[%s7296_s17 + $0xe0] sm:$0xff]  ;;  %v1528_v40 = vld [vmem:[%s7296_s17 + $0xf0] sm:$0xff] }
 0x38b   : > { %v1527_v35 = vld [vmem:[%s7296_s17 + $0xe8] sm:$0xff]  ;;  %v1510_v38 = vld [vmem:[%s7296_s17 + $0x60] sm:$0xff]  ;;  %v1529_v41 = vld [vmem:[%s7296_s17 + $0xf8] sm:$0xff] }
 0x38c   : > { %4631 = vmatpush1.bf16.msra.mxu0 %v4630_v58  ;;  %v1511_v39 = vld [vmem:[%s7296_s17 + $0x68] sm:$0xff]  ;;  %v1512_v46 = vld [vmem:[%s7296_s17 + $0x70] sm:$0xff]  ;;  %v1513_v47 = vld [vmem:[%s7296_s17 + $0x78] sm:$0xff] }
 0x38d   : > { %4633 = vmatprep.subr.bf16.mxu0 %v4632_v59  ;;  %v4562_v48 = vpack.c.bf16 %v1513_v47, %v1512_v46  ;;  %v1532_v61 = vld [vmem:[#allocation2] sm:$0xff]  ;;  %v1959_v23 = vld [vmem:[#allocation16 + $0x18] sm:$0xff] (!%p3926_p5) }
 0x38e   : > { %v2057_v46 = vld [vmem:[#allocation19 + $0x38] sm:$0xff] (!%p3926_p5) }
 0x38f   : > { %v2646_v55 = vld [vmem:[#allocation32 + $0x50] sm:$0xff] (!%p3926_p5) }
 0x390   : > { %4635 = vmatpush1.bf16.msra.mxu0 %v4634_v0  ;;  %v1498_v0 = vld [vmem:[%s7296_s17] sm:$0xff] }
 0x391   : > { %4637 = vmatprep.subr.bf16.mxu0 %v4636_v1  ;;  %v7463_v1 = vpack.c.bf16 %v1515_v63, %v1514_v62  ;;  %v7468_v5 = vpack.c.bf16 %v1499_v2, %v1498_v0 }
 0x393   : > { %4533 = vmatprep.subr.bf16.mxu1 %v7463_v1 }
 0x394   : > { %4639 = vmatpush1.bf16.msra.mxu0 %v4638_v6  ;;  %v7470_v6 = vpack.c.bf16 %v1517_v4, %v1516_v3  ;;  %4535 = vmatpush3.bf16.msra.mxu1 %v7468_v5 }
 0x395   : > { %4641 = vmatprep.subr.bf16.mxu0 %v4640_v7  ;;  %v1500_v7 = vld [vmem:[%s7296_s17 + $0x10] sm:$0xff] }
 0x396   : > { %v4538_v11 = vpack.c.bf16 %v1501_v8, %v1500_v7  ;;  %4537 = vmatprep.subr.bf16.mxu1 %v7470_v6 }
 0x398   : > { %4643 = vmatpush1.bf16.msra.mxu0 %v4642_v12  ;;  %v4540_v12 = vpack.c.bf16 %v1519_v10, %v1518_v9  ;;  %4539 = vmatpush3.bf16.msra.mxu1 %v4538_v11  ;;  %v1606_v10 = vld [vmem:[#allocation3] sm:$0xf] }
 0x399   : > { %4645 = vmatprep.subr.bf16.mxu0 %v4644_v13  ;;  %v1502_v13 = vld [vmem:[%s7296_s17 + $0x20] sm:$0xff] }
 0x39a   : > { %v4542_v17 = vpack.c.bf16 %v1503_v14, %v1502_v13  ;;  %4541 = vmatprep.subr.bf16.mxu1 %v4540_v12 }
 0x39c   : > { %4647 = vmatpush1.bf16.msra.mxu0 %v4646_v18  ;;  %v4544_v18 = vpack.c.bf16 %v1521_v16, %v1520_v15  ;;  %4543 = vmatpush3.bf16.msra.mxu1 %v4542_v17  ;;  %v1919_v15 = vld [vmem:[#allocation5] sm:$0xff] }
 0x39d   : > { %4649 = vmatprep.subr.bf16.mxu0 %v4648_v19  ;;  %v1504_v19 = vld [vmem:[%s7296_s17 + $0x30] sm:$0xff] }
 0x39e   : > { %4545 = vmatprep.subr.bf16.mxu1 %v4544_v18 }
 0x3a0   : > { %4651 = vmatpush1.bf16.msra.mxu0 %v4650_v24  ;;  %v4546_v24 = vpack.c.bf16 %v1505_v20, %v1504_v19  ;;  %v1957_v19 = vld [vmem:[#allocation16 + $0x8] sm:$0xff] (!%p3926_p5)  ;;  %v1958_v20 = vld [vmem:[#allocation16 + $0x10] sm:$0xff] (!%p3926_p5) }
 0x3a1   : > { %4653 = vmatprep.subr.bf16.mxu0 %v4652_v25  ;;  %v4548_v25 = vpack.c.bf16 %v1523_v22, %v1522_v21  ;;  %v6539_v21 = vmov (!%p3926_p5), 0.0|0.0  }
 0x3a2   : > { %4547 = vmatpush3.bf16.msra.mxu1 %v4546_v24 }
 0x3a3   : > { %4549 = vmatprep.subr.bf16.mxu1 %v4548_v25 }
 0x3a4   : > { %4655 = vmatpush1.bf16.msra.mxu0 %v4654_v30  ;;  %v4550_v30 = vpack.c.bf16 %v1507_v27, %v1506_v26  ;;  %v1960_v26 = vld [vmem:[#allocation16 + $0x20] sm:$0xff] (!%p3926_p5)  ;;  %v1961_v27 = vld [vmem:[#allocation16 + $0x28] sm:$0xff] (!%p3926_p5) }
 0x3a5   : > { %4657 = vmatprep.subr.bf16.mxu0 %v4656_v31  ;;  %v4552_v31 = vpack.c.bf16 %v1525_v29, %v1524_v28  ;;  %v2050_v28 = vld [vmem:[#allocation19] sm:$0xff] (!%p3926_p5)  ;;  %v2051_v29 = vld [vmem:[#allocation19 + $0x8] sm:$0xff] (!%p3926_p5) }
 0x3a6   : > { %4551 = vmatpush3.bf16.msra.mxu1 %v4550_v30 }
 0x3a7   : > { %4553 = vmatprep.subr.bf16.mxu1 %v4552_v31 }
 0x3a8   : > { %4659 = vmatpush1.bf16.msra.mxu0 %v4658_v36  ;;  %v4554_v36 = vpack.c.bf16 %v1509_v33, %v1508_v32  ;;  %v2052_v32 = vld [vmem:[#allocation19 + $0x10] sm:$0xff] (!%p3926_p5) }
 0x3a9   : > { %4661 = vmatprep.subr.bf16.mxu0 %v4660_v37  ;;  %v4556_v37 = vpack.c.bf16 %v1527_v35, %v1526_v34  ;;  %v1962_v33 = vld [vmem:[#allocation16 + $0x30] sm:$0xff] (!%p3926_p5)  ;;  %v1963_v34 = vld [vmem:[#allocation16 + $0x38] sm:$0xff] (!%p3926_p5) }
 0x3aa   : > { %4555 = vmatpush3.bf16.msra.mxu1 %v4554_v36  ;;  %v2053_v35 = vld [vmem:[#allocation19 + $0x18] sm:$0xff] (!%p3926_p5) }
 0x3ab   : > { %1837 = vmatmul.mubr.f32.vlgmr.msra.gmra.mrb[0].mxu0 %v7433_v42  ;;  %4557 = vmatprep.subr.bf16.mxu1 %v4556_v37 }
 0x3ac   : > { %4663 = vmatpush1.bf16.msra.mxu0 %v4662_v44  ;;  %1907 = vmatprep.mubr.f32.mxu0 %v6536_v51  ;;  %v4558_v44 = vpack.c.bf16 %v1511_v39, %v1510_v38  ;;  %v1608_v51 = vcombine.high %v1605_v49, %v1605_v49  ;;  %v2055_v38 = vld [vmem:[#allocation19 + $0x28] sm:$0xff] (!%p3926_p5)  ;;  %v7535_v39 = vpack.c.bf16 (!%p3926_p5), %v1963_v34, %v1962_v33 }
 0x3ad   : > { %4665 = vmatprep.subr.bf16.mxu0 %v4664_v45  ;;  %v4560_v45 = vpack.c.bf16 %v1529_v41, %v1528_v40  ;;  %v1964_v40 = vld [vmem:[#allocation16 + $0x40] sm:$0xff] (!%p3926_p5)  ;;  %v1965_v41 = vld [vmem:[#allocation16 + $0x48] sm:$0xff] (!%p3926_p5) }
 0x3ae   : > { %4559 = vmatpush3.bf16.msra.mxu1 %v4558_v44  ;;  %v7543_v47 = vpack.c.bf16 (!%p3926_p5), %v1965_v41, %v1964_v40  ;;  %v2155_v33 = vld [vmem:[#allocation22 + $0x60] sm:$0xff] (!%p3926_p5)  ;;  %v2156_v34 = vld [vmem:[#allocation22 + $0x68] sm:$0xff] (!%p3926_p5)  ;;  %v2157_v41 = vld [vmem:[#allocation22 + $0x70] sm:$0xff] (!%p3926_p5) }
 0x3af   : > { %4561 = vmatprep.subr.bf16.mxu1 %v4560_v45 }
 0x3b0   : > { %4667 = vmatpush1.bf16.msra.mxu0 %v4666_v50  ;;  %v1530_v50 = vld [vmem:[%s7274_s1] sm:$0xff] }
 0x3b1   : > { %4670 = vmatprep.subr.msk.bf16.mxu0 %vm7442_vm3, %v4668_v52  ;;  %v1917_v52 = vld [vmem:[#allocation4] sm:$0xff] }
 0x3b2   : > { %4563 = vmatpush3.bf16.msra.mxu1 %v4562_v48 }
 0x3b3   : > { %4565 = vmatprep.subr.bf16.mxu1 %v7463_v1 }
 0x3b4   : > { %4673 = vmatpush1.bf16.msk.msra.mxu0 %vm7442_vm3, %v4671_v56 }
 0x3b5   : > { %1598 = vmatmul.mubr.f32.vlgmr.msra.gmra.mrb[0].mxu1 %v1530_v50  ;;  %4674 = vmatprep.subr.bf16.mxu0 (!%p3926_p5), %v6539_v21 }
 0x3b6   : > { %4567 = vmatpush3.bf16.msra.mxu1 %v7468_v5  ;;  %1674 = vmatprep.mubr.f32.mxu1 %v1608_v51  ;;  %v2058_v51 = vld [vmem:[#allocation19 + $0x40] sm:$0xff] (!%p3926_p5) }
 0x3b7   : > { %3925 = vmatmul.mubr.msk.f32.vlgmr.msra.gmra.mrb[0].mxu0 %vm1761_vm4, %v7450_v57  ;;  %4569 = vmatprep.subr.bf16.mxu1 %v7470_v6 }
 0x3ba   : > { %4571 = vmatpush3.bf16.msra.mxu1 %v4538_v11 }
 0x3bb   : > { %4573 = vmatprep.subr.bf16.mxu1 %v4540_v12 }
 0x3be   : > { %4575 = vmatpush3.bf16.msra.mxu1 %v4542_v17 }
 0x3bf   : > { %4577 = vmatprep.subr.bf16.mxu1 %v4544_v18  ;;  %v1956_v18 = vld [vmem:[#allocation16] sm:$0xff] (!%p3926_p5) }
 0x3c0   : > { %v7513_v22 = vpack.c.bf16 (!%p3926_p5), %v1957_v19, %v1956_v18  ;;  %v2149_v18 = vld [vmem:[#allocation22 + $0x30] sm:$0xff] (!%p3926_p5)  ;;  %v2150_v19 = vld [vmem:[#allocation22 + $0x38] sm:$0xff] (!%p3926_p5) }
 0x3c2   : > { %4579 = vmatpush3.bf16.msra.mxu1 %v4546_v24  ;;  %v6541_v24 = vmov (!%p3926_p5), 0.0   ;;  %4676 = vmatpush3.bf16.msra.mxu0 (!%p3926_p5), %v7513_v22 }
 0x3c3   : > { %4581 = vmatprep.subr.bf16.mxu1 %v4548_v25  ;;  %4254 = vmatprep.mubr.msk.f32.mxu0 (!%p3926_p5), %vm6540_vm6, %v6541_v24  ;;  %v7521_v25 = vpack.c.bf16 (!%p3926_p5), %v1959_v23, %v1958_v20  ;;  %v7594_v20 = vpack.c.bf16 (!%p3926_p5), %v2150_v19, %v2149_v18  ;;  %v2151_v23 = vld [vmem:[#allocation22 + $0x40] sm:$0xff] (!%p3926_p5)  ;;  %v2673_v18 = vld [vmem:[#allocation32 + $0x128] sm:$0xf] (!%p3926_p5)  ;;  %v2658_v19 = vld [vmem:[#allocation32 + $0xb0] sm:$0xff] (!%p3926_p5) }
 0x3c4   : > { %4677 = vmatprep.subr.bf16.mxu0 (!%p3926_p5), %v6539_v21 }
 0x3c6   : > { %4583 = vmatpush3.bf16.msra.mxu1 %v4550_v30  ;;  %4679 = vmatpush3.bf16.msra.mxu0 (!%p3926_p5), %v7521_v25  ;;  %v7525_v30 = vpack.c.bf16 (!%p3926_p5), %v1961_v27, %v1960_v26  ;;  %v2152_v26 = vld [vmem:[#allocation22 + $0x48] sm:$0xff] (!%p3926_p5) }
 0x3c7   : > { %4585 = vmatprep.subr.bf16.mxu1 %v4552_v31  ;;  %v7527_v31 = vpack.c.bf16 (!%p3926_p5), %v2051_v29, %v2050_v28  ;;  %4680 = vmatprep.subr.bf16.mxu0 (!%p3926_p5), %v6539_v21  ;;  %v7598_v27 = vpack.c.bf16 (!%p3926_p5), %v2152_v26, %v2151_v23  ;;  %v2153_v28 = vld [vmem:[#allocation22 + $0x50] sm:$0xff] (!%p3926_p5)  ;;  %v2154_v29 = vld [vmem:[#allocation22 + $0x58] sm:$0xff] (!%p3926_p5) }
 0x3ca   : > { %4587 = vmatpush3.bf16.msra.mxu1 %v4554_v36  ;;  %v7531_v36 = vpack.c.bf16 (!%p3926_p5), %v2053_v35, %v2052_v32  ;;  %4682 = vmatpush3.bf16.msra.mxu0 (!%p3926_p5), %v7525_v30  ;;  %v7602_v32 = vpack.c.bf16 (!%p3926_p5), %v2154_v29, %v2153_v28  ;;  %v7606_v35 = vpack.c.bf16 (!%p3926_p5), %v2156_v34, %v2155_v33  ;;  %v2642_v28 = vld [vmem:[#allocation32 + $0x30] sm:$0xff] (!%p3926_p5)  ;;  %v2643_v29 = vld [vmem:[#allocation32 + $0x38] sm:$0xff] (!%p3926_p5)  ;;  %v2661_v33 = vld [vmem:[#allocation32 + $0xc8] sm:$0xff] (!%p3926_p5) }
 0x3cb   : > { %4589 = vmatprep.subr.bf16.mxu1 %v4556_v37  ;;  %v2054_v37 = vld [vmem:[#allocation19 + $0x20] sm:$0xff] (!%p3926_p5)  ;;  %4683 = vmatprep.subr.bf16.mxu0 (!%p3926_p5), %v6539_v21  ;;  %v4832_v34 = vpack.c.bf16 (!%p3926_p5), %v2643_v29, %v2642_v28  ;;  %v2925_v28 = vld [vmem:[#allocation38 + $0x30] sm:$0xff] (!%p3926_p5)  ;;  %v2926_v29 = vld [vmem:[#allocation38 + $0x38] sm:$0xff] (!%p3926_p5) }
 0x3ce   : > { %4591 = vmatpush3.bf16.msra.mxu1 %v4558_v44  ;;  %v7539_v44 = vpack.c.bf16 (!%p3926_p5), %v2055_v38, %v2054_v37  ;;  %4685 = vmatpush3.bf16.msra.mxu0 (!%p3926_p5), %v7535_v39  ;;  %v2064_v37 = vld [vmem:[#allocation19 + $0x70] sm:$0xff] (!%p3926_p5)  ;;  %v2065_v38 = vld [vmem:[#allocation19 + $0x78] sm:$0xff] (!%p3926_p5) }
 0x3cf   : > { %4593 = vmatprep.subr.bf16.mxu1 %v4560_v45  ;;  %v2056_v45 = vld [vmem:[#allocation19 + $0x30] sm:$0xff] (!%p3926_p5)  ;;  %4686 = vmatprep.subr.bf16.mxu0 (!%p3926_p5), %v6539_v21  ;;  %v4720_v40 = vpack.c.bf16 (!%p3926_p5), %v2065_v38, %v2064_v37 }
 0x3d0   : > { %v7547_v50 = vpack.c.bf16 (!%p3926_p5), %v2057_v46, %v2056_v45  ;;  %v2158_v45 = vld [vmem:[#allocation22 + $0x78] sm:$0xff] (!%p3926_p5)  ;;  %v2645_v37 = vld [vmem:[#allocation32 + $0x48] sm:$0xff] (!%p3926_p5) }
 0x3d1   : > { %v7611_v46 = vpack.c.bf16 (!%p3926_p5), %v2158_v45, %v2157_v41  ;;  %v2662_v38 = vld [vmem:[#allocation32 + $0xd0] sm:$0xff] (!%p3926_p5) }
 0x3d2   : > { %4595 = vmatpush3.bf16.msra.mxu1 %v4562_v48  ;;  %v1966_v48 = vld [vmem:[#allocation16 + $0x50] sm:$0xff] (!%p3926_p5)  ;;  %4688 = vmatpush3.bf16.msra.mxu0 (!%p3926_p5), %v7543_v47 }
 0x3d3   : > { %4698 = vmatprep.subr.bf16.mxu1 (!%p3926_p5), %v6539_v21  ;;  %4689 = vmatprep.subr.bf16.mxu0 (!%p3926_p5), %v6539_v21 }
 0x3d5   : > { %1675 = vmatmul.mubr.f32.vlgmr.msra.gmra.mrb[2].mxu1 %v1605_v49  ;;  %v1967_v49 = vld [vmem:[#allocation16 + $0x58] sm:$0xff] (!%p3926_p5) }
 0x3d6   : > { %4289 = vmatprep.mubr.msk.f32.mxu1 (!%p3926_p5), %vm6540_vm6, %v6541_v24  ;;  %4700 = vmatpush3.bf16.msra.mxu1 (!%p3926_p5), %v7527_v31 }
 0x3d7   : > { %4701 = vmatprep.subr.bf16.mxu1 (!%p3926_p5), %v6539_v21 }
 0x3da   : > { %4703 = vmatpush3.bf16.msra.mxu1 (!%p3926_p5), %v7531_v36 }
 0x3db   : > { %4704 = vmatprep.subr.bf16.mxu1 (!%p3926_p5), %v6539_v21 }
 0x3de   : > { %4706 = vmatpush3.bf16.msra.mxu1 (!%p3926_p5), %v7539_v44 }
 0x3df   : > { %4707 = vmatprep.subr.bf16.mxu1 (!%p3926_p5), %v6539_v21 }
 0x3e2   : > { %4709 = vmatpush3.bf16.msra.mxu1 (!%p3926_p5), %v7547_v50 }
 0x3e3   : > { %4710 = vmatprep.subr.bf16.mxu1 (!%p3926_p5), %v6539_v21 }
 0x48a   : > { %v7454_v58 = vpop.f32.mrb[0].mxu0 }
 0x48b   : > { %v7456_v59 = vpop.f32.mrb[1].mxu0 }
 0x48c   : > { %v1914_v60 = vmax.f32 %v7454_v58, %v7456_v59 }
 0x48e   : > { %1915 = vmax.xlane.f32.xlu0 %v1914_v60  ;;  %v4000_v60 = vpop.f32.mrb[0].mxu1 }
 0x48f   : > { %v4001_v62 = vpop.f32.mrb[1].mxu1 }
 0x490   : > { %v4002_v63 = vadd.f32 %v4001_v62, %v4000_v60  ;;  %v2061_v62 = vld [vmem:[#allocation19 + $0x58] sm:$0xff] (!%p3926_p5) }
 0x492   : > { %v1603_v0 = vadd.f32 %v4002_v63, %v1532_v61  ;;  %v2060_v61 = vld [vmem:[#allocation19 + $0x50] sm:$0xff] (!%p3926_p5) }
 0x494   : > { %1604 = vst [vmem:[#allocation2] sm:$0xff] %v1603_v0 }
 0x49b   : > { %v1946_v0 = vld [vmem:[#allocation2] sm:$0xff] (!%p3926_p5) }
 0x4a8   : > { %v4035_v9 = vpop.f32.mrb[2].mxu1 }
 0x4a9   : > { %v4036_v11 = vpop.f32.mrb[3].mxu1 }
 0x4aa   : > { %v4037_v12 = vadd.f32 %v4036_v11, %v4035_v9  ;;  %v2143_v9 = vld [vmem:[#allocation22] sm:$0xff] (!%p3926_p5) }
 0x4ac   : > { %v1680_v13 = vadd.f32 %v4037_v12, %v1606_v10  ;;  %v2144_v10 = vld [vmem:[#allocation22 + $0x8] sm:$0xff] (!%p3926_p5) }
 0x4ae   : > { %1681 = vst [vmem:[#allocation3] sm:$0xf] %v1680_v13  ;;  %v7578_v13 = vpack.c.bf16 (!%p3926_p5), %v2144_v10, %v2143_v9  ;;  %v2639_v9 = vld [vmem:[#allocation32 + $0x18] sm:$0xff] (!%p3926_p5)  ;;  %v2670_v10 = vld [vmem:[#allocation32 + $0x110] sm:$0xff] (!%p3926_p5) }
 0x51b   : > { %v1916_v53 = vpop.xlane.xlu0 %1915 }
 0x51c   : > { %v1918_v54 = vmax.f32 %v1917_v52, %v1916_v53  ;;  %v7551_v53 = vpack.c.bf16 (!%p3926_p5), %v1967_v49, %v1966_v48  ;;  %v7616_v48 = vld [vmem:[#allocation17] ss:$0 sm:$0xff] (!%p3926_p5) }
 0x51e   : > { %v1920_v56 = vsub.f32 %v1917_v52, %v1918_v54  ;;  %1941 = vst.msk [vmem:[#allocation4] sm:$0xff] %vm1939_vm5, %v1918_v54  ;;  %1926 = vperm.xlu0 %5312, %v1918_v54   ;;  %v2059_v52 = vld [vmem:[#allocation19 + $0x48] sm:$0xff] (!%p3926_p5)  ;;  %v1968_v54 = vld [vmem:[#allocation16 + $0x60] sm:$0xff] (!%p3926_p5)  ;;  %4691 = vmatpush3.bf16.msra.mxu0 (!%p3926_p5), %v7551_v53 }
 0x51f   : > { %v7555_v60 = vpack.c.bf16 (!%p3926_p5), %v2059_v52, %v2058_v51  ;;  %4692 = vmatprep.subr.bf16.mxu0 (!%p3926_p5), %v6539_v21 }
 0x520   : > { %v1921_v14 = vmul.f32 1.442695, %v1920_v56  ;;  %v1969_v56 = vld [vmem:[#allocation16 + $0x68] sm:$0xff] (!%p3926_p5) }
 0x521   : > { %v7559_v63 = vpack.c.bf16 (!%p3926_p5), %v1969_v56, %v1968_v54  ;;  %4712 = vmatpush3.bf16.msra.mxu1 (!%p3926_p5), %v7555_v60  ;;  %v2636_v56 = vld [vmem:[#allocation32] sm:$0xff] (!%p3926_p5) }
 0x522   : > { %4713 = vmatprep.subr.bf16.mxu1 (!%p3926_p5), %v6539_v21 }
 0x523   : > { %4694 = vmatpush3.bf16.msra.mxu0 (!%p3926_p5), %v7559_v63 }
 0x524   : > { %4695 = vmatprep.subr.bf16.mxu0 (!%p3926_p5), %v6539_v21 }
 0x59d   : > { %v1927_v1 = vpop.permute.xlu0 %1926 }
 0x59e   : > { %v1929_v2 = vsub.f32 %v7454_v58, %v1927_v1  ;;  %v1930_v3 = vsub.f32 %v7456_v59, %v1927_v1  ;;  %v7561_v1 = vld [vmem:[#allocation15] ss:$0 sm:$0xff] (!%p3926_p5) }
 0x5a0   : > { %v1931_v4 = vmul.f32 1.442695, %v1929_v2  ;;  %v1933_v5 = vmul.f32 1.442695, %v1930_v3  ;;  %v1970_v2 = vld [vmem:[#allocation16 + $0x70] sm:$0xff] (!%p3926_p5)  ;;  %v1971_v3 = vld [vmem:[#allocation16 + $0x78] sm:$0xff] (!%p3926_p5) }
 0x5a2   : > { %5314 = vpow2.f32 %v1931_v4  ;;  %v7565_v4 = vpack.c.bf16 (!%p3926_p5), %v2061_v62, %v2060_v61  ;;  %v2668_v61 = vld [vmem:[#allocation32 + $0x100] sm:$0xff] (!%p3926_p5)  ;;  %v2669_v62 = vld [vmem:[#allocation32 + $0x108] sm:$0xff] (!%p3926_p5) }
 0x5a3   : > { %5316 = vpow2.f32 %v1933_v5  ;;  %v1954_v5 = vadd.f32 (!%p3926_p5), %v7561_v1, %v1946_v0  ;;  %v2654_v0 = vld [vmem:[#allocation32 + $0x90] sm:$0xff] (!%p3926_p5) }
 0x5a4   : > { %5318 = vpow2.f32 %v1921_v14  ;;  %4715 = vmatpush3.bf16.msra.mxu1 (!%p3926_p5), %v7565_v4  ;;  %v2145_v14 = vld [vmem:[#allocation22 + $0x10] sm:$0xff] (!%p3926_p5) }
 0x5a5   : > { %v1955_v12 = vmax.f32 (!%p3926_p5), %v1954_v5, 0.0  ;;  %4716 = vmatprep.subr.bf16.mxu1 (!%p3926_p5), %v6539_v21  ;;  %v2638_v5 = vld [vmem:[#allocation32 + $0x10] sm:$0xff] (!%p3926_p5) }
 0x5ac   : > { %v5315_v6 = vpop.eup %5314 }
 0x5ad   : > { %v5317_v7 = vpop.eup %5316 }
 0x5ae   : > { %v1935_v8 = vadd.f32 %v5317_v7, %v5315_v6  ;;  %v5319_v58 = vpop.eup %5318  ;;  %v2062_v6 = vld [vmem:[#allocation19 + $0x60] sm:$0xff] (!%p3926_p5)  ;;  %v2063_v7 = vld [vmem:[#allocation19 + $0x68] sm:$0xff] (!%p3926_p5) }
 0x5af   : > { %v1923_v59 = vmul.f32 %v5319_v58, %v1919_v15  ;;  %v7574_v11 = vpack.c.bf16 (!%p3926_p5), %v2063_v7, %v2062_v6  ;;  %v2146_v58 = vld [vmem:[#allocation22 + $0x18] sm:$0xff] (!%p3926_p5)  ;;  %v4851_v6 = vpack.c.bf16 (!%p3926_p5), %v2669_v62, %v2668_v61  ;;  %v2827_v61 = vld [vmem:[#allocation35 + $0x10] sm:$0xff] (!%p3926_p5)  ;;  %v2828_v62 = vld [vmem:[#allocation35 + $0x18] sm:$0xff] (!%p3926_p5) }
 0x5b0   : > { %1936 = vadd.xlane.f32.xlu1 %v1935_v8  ;;  %v7570_v8 = vpack.c.bf16 (!%p3926_p5), %v1971_v3, %v1970_v2  ;;  %v7584_v15 = vpack.c.bf16 (!%p3926_p5), %v2146_v58, %v2145_v14  ;;  %v4824_v14 = vpack.c.bf16 (!%p3926_p5), %v2639_v9, %v2638_v5  ;;  %v2640_v58 = vld [vmem:[#allocation32 + $0x20] sm:$0xff] (!%p3926_p5)  ;;  %v2833_v5 = vld [vmem:[#allocation35 + $0x40] sm:$0xff] (!%p3926_p5)  ;;  %v2836_v9 = vld [vmem:[#allocation35 + $0x58] sm:$0xff] (!%p3926_p5) }
 0x5b1   : > { %4718 = vmatpush3.bf16.msra.mxu1 (!%p3926_p5), %v7574_v11 }
 0x5b2   : > { %4697 = vmatpush3.bf16.msra.mxu0 (!%p3926_p5), %v7570_v8  ;;  %4719 = vmatprep.subr.bf16.mxu1 (!%p3926_p5), %v6539_v21 }
 0x5b3   : > { %4722 = vmatprep.subr.bf16.mxu0 (!%p3926_p5), %v6539_v21 }
 0x5b5   : > { %4255 = vmatmul.mubr.f32.vlgmr.msra.gmra.mrb[0].mxu0 (!%p3926_p5), %v1955_v12  ;;  %4721 = vmatpush3.bf16.msra.mxu1 (!%p3926_p5), %v4720_v40  ;;  %v2656_v12 = vld [vmem:[#allocation32 + $0xa0] sm:$0xff] (!%p3926_p5) }
 0x5b6   : > { %4724 = vmatpush3.bf16.msra.mxu0 (!%p3926_p5), %v7578_v13  ;;  %4324 = vmatprep.mubr.msk.f32.mxu0 (!%p3926_p5), %vm6540_vm6, %v6541_v24 }
 0x5b7   : > { %4725 = vmatprep.subr.bf16.mxu0 (!%p3926_p5), %v6539_v21  ;;  %4746 = vmatprep.subr.bf16.mxu1 (!%p3926_p5), %v6539_v21 }
 0x5ba   : > { %4727 = vmatpush3.bf16.msra.mxu0 (!%p3926_p5), %v7584_v15 }
 0x5bb   : > { %4728 = vmatprep.subr.bf16.mxu0 (!%p3926_p5), %v6539_v21 }
 0x63a   : > { %1945 = sbr.rel (%p3926_p5) target bundleno = 3205 (0xc85), region = 252 }
 0x63d   : > { %v1937_v16 = vpop.xlane.xlu1 %1936 }
 0x63e   : > { %v1938_v17 = vadd.f32 %v1937_v16, %v1923_v59  ;;  %v2147_v59 = vld [vmem:[#allocation22 + $0x20] sm:$0xff] (!%p3926_p5)  ;;  %v2148_v16 = vld [vmem:[#allocation22 + $0x28] sm:$0xff] (!%p3926_p5) }
 0x640   : > { %1940 = vst.msk [vmem:[#allocation5] sm:$0xff] %vm1939_vm5, %v1938_v17  ;;  %v7590_v17 = vpack.c.bf16 (!%p3926_p5), %v2148_v16, %v2147_v59  ;;  %v2641_v16 = vld [vmem:[#allocation32 + $0x28] sm:$0xff] (!%p3926_p5) }
 0x641   : > { %v4828_v23 = vpack.c.bf16 %v2641_v16, %v2640_v58  ;;  %v2840_v58 = vld [vmem:[#allocation35 + $0x78] sm:$0xff]  ;;  %v2920_v16 = vld [vmem:[#allocation38 + $0x8] sm:$0xff] }
 0x642   : > { %4730 = vmatpush3.bf16.msra.mxu0 %v7590_v17 }
 0x643   : > { %4731 = vmatprep.subr.bf16.mxu0 %v6539_v21 }
 0x646   : > { %4733 = vmatpush3.bf16.msra.mxu0 %v7594_v20 }
 0x647   : > { %4734 = vmatprep.subr.bf16.mxu0 %v6539_v21 }
 0x64a   : > { %4736 = vmatpush3.bf16.msra.mxu0 %v7598_v27 }
 0x64b   : > { %4737 = vmatprep.subr.bf16.mxu0 %v6539_v21 }
 0x64e   : > { %4739 = vmatpush3.bf16.msra.mxu0 %v7602_v32 }
 0x64f   : > { %4740 = vmatprep.subr.bf16.mxu0 %v6539_v21 }
 0x652   : > { %4742 = vmatpush3.bf16.msra.mxu0 %v7606_v35 }
 0x653   : > { %4743 = vmatprep.subr.bf16.mxu0 %v6539_v21 }
 0x656   : > { %4745 = vmatpush3.bf16.msra.mxu0 %v7611_v46 }
 0x657   : > { %4770 = vmatprep.subr.bf16.mxu0 %v6539_v21 }
 0x688   : > { %v2045_v49 = vpop.f32.mrb[0].mxu0 }
 0x689   : > { %v2046_v51 = vadd.f32 %v7616_v48, %v2045_v49  ;;  %v4256_v52 = vpop.f32.mrb[1].mxu0  ;;  %v2665_v49 = vld [vmem:[#allocation32 + $0xe8] sm:$0xff] }
 0x68b   : > { %v2049_v54 = vmax.f32 %v2046_v51, 0.0 }
 0x68d   : > { %4290 = vmatmul.mubr.f32.vlgmr.msra.gmra.mrb[0].mxu1 %v2049_v54  ;;  %4325 = vmatmul.mubr.f32.vlgmr.msra.gmra.mrb[2].mxu0 %v2049_v54  ;;  %v2648_v54 = vld [vmem:[#allocation32 + $0x60] sm:$0xff] }
 0x68e   : > { %4748 = vmatpush3.bf16.msra.mxu1 %v7513_v22  ;;  %4359 = vmatprep.mubr.msk.f32.mxu1 %vm6540_vm6, %v6541_v24  ;;  %v2236_v22 = vld [vmem:[#allocation3] sm:$0xf] }
 0x68f   : > { %4749 = vmatprep.subr.bf16.mxu1 %v6539_v21  ;;  %4772 = vmatpush3.bf16.msra.mxu0 %v7527_v31  ;;  %v2652_v31 = vld [vmem:[#allocation32 + $0x80] sm:$0xff] }
 0x690   : > { %4773 = vmatprep.subr.bf16.mxu0 %v6539_v21  ;;  %4394 = vmatprep.mubr.msk.f32.mxu0 %vm6540_vm6, %v6541_v24 }
 0x692   : > { %4751 = vmatpush3.bf16.msra.mxu1 %v7521_v25  ;;  %v2237_v25 = vadd.f32 %v7561_v1, %v2236_v22  ;;  %v2655_v1 = vld [vmem:[#allocation32 + $0x98] sm:$0xff]  ;;  %v2649_v22 = vld [vmem:[#allocation32 + $0x68] sm:$0xff] }
 0x693   : > { %4752 = vmatprep.subr.bf16.mxu1 %v6539_v21  ;;  %4775 = vmatpush3.bf16.msra.mxu0 %v7531_v36  ;;  %v2653_v36 = vld [vmem:[#allocation32 + $0x88] sm:$0xff] }
 0x694   : > { %4776 = vmatprep.subr.bf16.mxu0 %v6539_v21 }
 0x696   : > { %4754 = vmatpush3.bf16.msra.mxu1 %v7525_v30  ;;  %v2238_v30 = vmax.f32 %v2237_v25, 0.0  ;;  %v2666_v25 = vld [vmem:[#allocation32 + $0xf0] sm:$0xff] }
 0x697   : > { %4755 = vmatprep.subr.bf16.mxu1 %v6539_v21  ;;  %4778 = vmatpush3.bf16.msra.mxu0 %v7539_v44 }
 0x698   : > { %4779 = vmatprep.subr.bf16.mxu0 %v6539_v21 }
 0x69a   : > { %4757 = vmatpush3.bf16.msra.mxu1 %v7535_v39  ;;  %v4818_v39 = vpack.c.bf16 %v2653_v36, %v2652_v31  ;;  %v2650_v36 = vld [vmem:[#allocation32 + $0x70] sm:$0xff] }
 0x69b   : > { %4758 = vmatprep.subr.bf16.mxu1 %v6539_v21  ;;  %4781 = vmatpush3.bf16.msra.mxu0 %v7547_v50 }
 0x69c   : > { %4782 = vmatprep.subr.bf16.mxu0 %v6539_v21 }
 0x69e   : > { %4760 = vmatpush3.bf16.msra.mxu1 %v7543_v47 }
 0x69f   : > { %4761 = vmatprep.subr.bf16.mxu1 %v6539_v21  ;;  %4784 = vmatpush3.bf16.msra.mxu0 %v7555_v60  ;;  %v2637_v60 = vld [vmem:[#allocation32 + $0x8] sm:$0xff] }
 0x6a0   : > { %4785 = vmatprep.subr.bf16.mxu0 %v6539_v21 }
 0x6a2   : > { %4763 = vmatpush3.bf16.msra.mxu1 %v7551_v53 }
 0x6a3   : > { %4764 = vmatprep.subr.bf16.mxu1 %v6539_v21  ;;  %4787 = vmatpush3.bf16.msra.mxu0 %v7565_v4  ;;  %v4820_v4 = vpack.c.bf16 %v2637_v60, %v2636_v56  ;;  %v2826_v56 = vld [vmem:[#allocation35 + $0x8] sm:$0xff] }
 0x6a4   : > { %4788 = vmatprep.subr.bf16.mxu0 %v6539_v21 }
 0x6a6   : > { %4766 = vmatpush3.bf16.msra.mxu1 %v7559_v63 }
 0x6a7   : > { %4767 = vmatprep.subr.bf16.mxu1 %v6539_v21  ;;  %4790 = vmatpush3.bf16.msra.mxu0 %v7574_v11  ;;  %v2671_v11 = vld [vmem:[#allocation32 + $0x118] sm:$0xff] }
 0x6a8   : > { %4791 = vmatprep.subr.bf16.mxu0 %v6539_v21 }
 0x6aa   : > { %4769 = vmatpush3.bf16.msra.mxu1 %v7570_v8  ;;  %v4822_v8 = vpack.c.bf16 %v2655_v1, %v2654_v0  ;;  %v2829_v0 = vld [vmem:[#allocation35 + $0x20] sm:$0xff]  ;;  %v2830_v1 = vld [vmem:[#allocation35 + $0x28] sm:$0xff] }
 0x6ab   : > { %4794 = vmatprep.subr.bf16.mxu1 %v6539_v21  ;;  %4793 = vmatpush3.bf16.msra.mxu0 %v4720_v40  ;;  %v2663_v40 = vld [vmem:[#allocation32 + $0xd8] sm:$0xff] }
 0x6ac   : > { %4819 = vmatprep.subr.bf16.mxu0 %v4818_v39  ;;  %v4838_v45 = vpack.c.bf16 %v2663_v40, %v2662_v38  ;;  %v2651_v39 = vld [vmem:[#allocation32 + $0x78] sm:$0xff] }
 0x6ad   : > { %4360 = vmatmul.mubr.f32.vlgmr.msra.gmra.mrb[2].mxu1 %v2238_v30  ;;  %v2667_v30 = vld [vmem:[#allocation32 + $0xf8] sm:$0xff] }
 0x6ae   : > { %4796 = vmatpush3.bf16.msra.mxu1 %v7578_v13  ;;  %4429 = vmatprep.mubr.msk.f32.mxu1 %vm6540_vm6, %v6541_v24  ;;  %v2657_v13 = vld [vmem:[#allocation32 + $0xa8] sm:$0xff]  ;;  %v4846_v31 = vpack.c.bf16 %v2667_v30, %v2666_v25  ;;  %v2931_v40 = vld [vmem:[#allocation38 + $0x60] sm:$0xff] }
 0x6af   : > { %4797 = vmatprep.subr.bf16.mxu1 %v6539_v21  ;;  %v4826_v59 = vpack.c.bf16 %v2657_v13, %v2656_v12  ;;  %v2838_v12 = vld [vmem:[#allocation35 + $0x68] sm:$0xff] }
 0x6b2   : > { %4799 = vmatpush3.bf16.msra.mxu1 %v7584_v15  ;;  %v4854_v15 = vpack.c.bf16 %v2671_v11, %v2670_v10  ;;  %v2837_v11 = vld [vmem:[#allocation35 + $0x60] sm:$0xff] }
 0x6b3   : > { %4800 = vmatprep.subr.bf16.mxu1 %v6539_v21  ;;  %v4879_v13 = vpack.c.bf16 %v2838_v12, %v2837_v11 }
 0x6b6   : > { %4802 = vmatpush3.bf16.msra.mxu1 %v7590_v17  ;;  %v2672_v17 = vld [vmem:[#allocation32 + $0x120] sm:$0xff] }
 0x6b7   : > { %4803 = vmatprep.subr.bf16.mxu1 %v6539_v21  ;;  %v4857_v26 = vpack.c.bf16 %v2673_v18, %v2672_v17  ;;  %v2921_v17 = vld [vmem:[#allocation38 + $0x10] sm:$0xff] }
 0x6ba   : > { %4805 = vmatpush3.bf16.msra.mxu1 %v7594_v20  ;;  %v2659_v20 = vld [vmem:[#allocation32 + $0xb8] sm:$0xff] }
 0x6bb   : > { %4806 = vmatprep.subr.bf16.mxu1 %v6539_v21 }
 0x6be   : > { %4808 = vmatpush3.bf16.msra.mxu1 %v7598_v27  ;;  %v4830_v27 = vpack.c.bf16 %v2659_v20, %v2658_v19  ;;  %v2922_v19 = vld [vmem:[#allocation38 + $0x18] sm:$0xff] }
 0x6bf   : > { %4809 = vmatprep.subr.bf16.mxu1 %v6539_v21  ;;  %v4888_v20 = vpack.c.bf16 %v2922_v19, %v2921_v17 }
 0x6c2   : > { %4811 = vmatpush3.bf16.msra.mxu1 %v7602_v32  ;;  %v2660_v32 = vld [vmem:[#allocation32 + $0xc0] sm:$0xff] }
 0x6c3   : > { %4812 = vmatprep.subr.bf16.mxu1 %v6539_v21 }
 0x6c6   : > { %4814 = vmatpush3.bf16.msra.mxu1 %v7606_v35  ;;  %v2644_v35 = vld [vmem:[#allocation32 + $0x40] sm:$0xff] }
 0x6c7   : > { %4815 = vmatprep.subr.bf16.mxu1 %v6539_v21  ;;  %v4836_v41 = vpack.c.bf16 %v2645_v37, %v2644_v35  ;;  %v2929_v35 = vld [vmem:[#allocation38 + $0x50] sm:$0xff]  ;;  %v2930_v37 = vld [vmem:[#allocation38 + $0x58] sm:$0xff] }
 0x6c8   : > { %v4900_v38 = vpack.c.bf16 %v2930_v37, %v2929_v35 }
 0x6ca   : > { %4817 = vmatpush3.bf16.msra.mxu1 %v7611_v46  ;;  %v2647_v46 = vld [vmem:[#allocation32 + $0x58] sm:$0xff] }
 0x6cb   : > { %4850 = vmatprep.subr.bf16.mxu1 %v6539_v21  ;;  %v4840_v51 = vpack.c.bf16 %v2647_v46, %v2646_v55  ;;  %v3929_v55 = vld [vmem:[#allocation20] ss:$0 sm:$0xff]  ;;  %v3930_v46 = vld [vmem:[#allocation23] ss:$0 sm:$0xff] }
 0x760   : > { %v7672_v44 = vpop.f32.mrb[0].mxu1  ;;  %v7674_v47 = vpop.f32.mrb[2].mxu0 }
 0x761   : > { %v4291_v50 = vpop.f32.mrb[1].mxu1  ;;  %v4326_v53 = vpop.f32.mrb[3].mxu0 }
 0x762   : > { %v4848_v50 = vpack.c.bf16 %v2651_v39, %v2650_v36  ;;  %v2825_v53 = vld [vmem:[#allocation35] sm:$0xff] }
 0x763   : > { %v4861_v60 = vpack.c.bf16 %v2826_v56, %v2825_v53 }
 0x780   : > { %v2305_v63 = vpop.f32.mrb[2].mxu1 }
 0x781   : > { %v2306_v2 = vadd.f32 %v7616_v48, %v2305_v63  ;;  %v4361_v3 = vpop.f32.mrb[3].mxu1  ;;  %v2664_v48 = vld [vmem:[#allocation32 + $0xe0] sm:$0xff]  ;;  %v4864_v63 = vpack.c.bf16 %v2828_v62, %v2827_v61 }
 0x782   : > { %v4842_v52 = vpack.c.bf16 %v2665_v49, %v2664_v48  ;;  %v2832_v3 = vld [vmem:[#allocation35 + $0x38] sm:$0xff]  ;;  %v2140_v48 = vadd.f32 %v3929_v55, %v7672_v44  ;;  %v2233_v49 = vadd.f32 %v3930_v46, %v7674_v47 }
 0x783   : > { %v2309_v7 = vmax.f32 %v2306_v2, 0.0  ;;  %v4867_v2 = vpack.c.bf16 %v2830_v1, %v2829_v0 }
 0x785   : > { %4395 = vmatmul.mubr.f32.vlgmr.msra.gmra.mrb[4].mxu0 %v2309_v7  ;;  %4430 = vmatmul.mubr.f32.vlgmr.msra.gmra.mrb[4].mxu1 %v2309_v7 }
 0x786   : > { %4821 = vmatpush3.bf16.msra.mxu0 %v4820_v4  ;;  %4852 = vmatpush3.bf16.msra.mxu1 %v4851_v6  ;;  %v2834_v6 = vld [vmem:[#allocation35 + $0x48] sm:$0xff] }
 0x787   : > { %4823 = vmatprep.subr.bf16.mxu0 %v4822_v8  ;;  %4853 = vmatprep.subr.bf16.mxu1 %v6539_v21  ;;  %v4873_v7 = vpack.c.bf16 %v2834_v6, %v2833_v5  ;;  %v2835_v8 = vld [vmem:[#allocation35 + $0x50] sm:$0xff] }
 0x788   : > { %2748 = vmatprep.mubr.f32.mxu0 %v7388_v43  ;;  %4444 = vmatprep.mubr.msk.f32.mxu1 %vm6540_vm6, %v6541_v24  ;;  %v4834_v43 = vpack.c.bf16 %v2661_v33, %v2660_v32  ;;  %v4876_v10 = vpack.c.bf16 %v2836_v9, %v2835_v8  ;;  %v4894_v32 = vpack.c.bf16 %v2926_v29, %v2925_v28  ;;  %v2927_v33 = vld [vmem:[#allocation38 + $0x40] sm:$0xff] }
 0x78a   : > { %4825 = vmatpush3.bf16.msra.mxu0 %v4824_v14  ;;  %4855 = vmatpush3.bf16.msra.mxu1 %v4854_v15  ;;  %v2839_v14 = vld [vmem:[#allocation35 + $0x70] sm:$0xff] }
 0x78b   : > { %4827 = vmatprep.subr.bf16.mxu0 %v4826_v59  ;;  %4856 = vmatprep.subr.bf16.mxu1 %v6539_v21  ;;  %v4882_v15 = vpack.c.bf16 %v2840_v58, %v2839_v14  ;;  %v2919_v59 = vld [vmem:[#allocation38] sm:$0xff] }
 0x78c   : > { %v4885_v18 = vpack.c.bf16 %v2920_v16, %v2919_v59 }
 0x78e   : > { %4829 = vmatpush3.bf16.msra.mxu0 %v4828_v23  ;;  %4859 = vmatpush3.bf16.msk.msra.mxu1 %vm7442_vm3, %v4857_v26  ;;  %v2923_v23 = vld [vmem:[#allocation38 + $0x20] sm:$0xff]  ;;  %v2924_v26 = vld [vmem:[#allocation38 + $0x28] sm:$0xff] }
 0x78f   : > { %4831 = vmatprep.subr.bf16.mxu0 %v4830_v27  ;;  %4860 = vmatprep.subr.bf16.mxu1 %v6539_v21  ;;  %v4891_v27 = vpack.c.bf16 %v2924_v26, %v2923_v23 }
 0x791   : > { %4445 = vmatmul.mubr.msk.f32.vlgmr.msra.gmra.mrb[6].mxu1 %vm1761_vm4, %v7450_v57  ;;  %v4844_v57 = vpack.c.bf16 %v2649_v22, %v2648_v54 }
 0x792   : > { %4833 = vmatpush3.bf16.msra.mxu0 %v4832_v34  ;;  %4479 = vmatprep.mubr.msk.f32.mxu1 %vm6540_vm6, %v6541_v24  ;;  %v2928_v34 = vld [vmem:[#allocation38 + $0x48] sm:$0xff] }
 0x793   : > { %4835 = vmatprep.subr.bf16.mxu0 %v4834_v43  ;;  %4862 = vmatpush3.bf16.msra.mxu1 %v4861_v60  ;;  %v4897_v43 = vpack.c.bf16 %v2928_v34, %v2927_v33 }
 0x794   : > { %4863 = vmatprep.subr.bf16.mxu1 %v6539_v21 }
 0x796   : > { %4837 = vmatpush3.bf16.msra.mxu0 %v4836_v41  ;;  %v2932_v41 = vld [vmem:[#allocation38 + $0x68] sm:$0xff] }
 0x797   : > { %4839 = vmatprep.subr.bf16.mxu0 %v4838_v45  ;;  %4865 = vmatpush3.bf16.msra.mxu1 %v4864_v63  ;;  %v4903_v45 = vpack.c.bf16 %v2932_v41, %v2931_v40 }
 0x798   : > { %4866 = vmatprep.subr.bf16.mxu1 %v6539_v21 }
 0x79a   : > { %4841 = vmatpush3.bf16.msra.mxu0 %v4840_v51  ;;  %v2451_v51 = vsel %vm2450_vm7, %v2140_v48, 0.0 }
 0x79b   : > { %4843 = vmatprep.subr.bf16.mxu0 %v4842_v52  ;;  %4868 = vmatpush3.bf16.msra.mxu1 %v4867_v2  ;;  %v2510_v52 = vsel %vm2450_vm7, %v2233_v49, 0.0  ;;  %v2452_v54 = vrot.slane %v2451_v51, 4 }
 0x79c   : > { %4869 = vmatprep.subr.bf16.mxu1 %v6539_v21  ;;  %v2511_v22 = vrot.slane %v2510_v52, 4 }
 0x79d   : > { %v2453_v25 = vadd.f32 %v2452_v54, %v2451_v51 }
 0x79e   : > { %4845 = vmatpush3.bf16.msra.mxu0 %v4844_v57  ;;  %v2512_v30 = vadd.f32 %v2511_v22, %v2510_v52 }
 0x79f   : > { %4847 = vmatprep.subr.bf16.mxu0 %v4846_v31  ;;  %v2454_v53 = vrot.slane %v2453_v25, 2 }
 0x7a0   : > { %v2513_v44 = vrot.slane %v2512_v30, 2 }
 0x7a1   : > { %v2455_v62 = vadd.f32 %v2454_v53, %v2453_v25 }
 0x7a2   : > { %4849 = vmatpush3.bf16.msra.mxu0 %v4848_v50  ;;  %v2514_v63 = vadd.f32 %v2513_v44, %v2512_v30 }
 0x7a3   : > { %4884 = vmatprep.subr.bf16.mxu0 %v6539_v21 }
 0x7a5   : > { %2749 = vmatmul.mubr.f32.vlgmr.msra.gmra.mrb[6].mxu0 %v7433_v42  ;;  %v2831_v42 = vld [vmem:[#allocation35 + $0x30] sm:$0xff] }
 0x7a6   : > { %4514 = vmatprep.mubr.msk.f32.mxu0 %vm6540_vm6, %v6541_v24  ;;  %v4870_v4 = vpack.c.bf16 %v2832_v3, %v2831_v42  ;;  %4886 = vmatpush3.bf16.msra.mxu0 %v4885_v18  ;;  %v2456_v3 = vrot.slane %v2455_v62, 1 }
 0x7a7   : > { %4887 = vmatprep.subr.bf16.mxu0 %v6539_v21 }
 0x7a8   : > { %4871 = vmatpush3.bf16.msra.mxu1 %v4870_v4  ;;  %v2515_v4 = vrot.slane %v2514_v63, 1  ;;  %v2457_v11 = vadd.f32 %v2456_v3, %v2455_v62 }
 0x7a9   : > { %4872 = vmatprep.subr.bf16.mxu1 %v6539_v21 }
 0x7aa   : > { %4889 = vmatpush3.bf16.msra.mxu0 %v4888_v20 }
 0x7ab   : > { %4890 = vmatprep.subr.bf16.mxu0 %v6539_v21 }
 0x7ac   : > { %4874 = vmatpush3.bf16.msra.mxu1 %v4873_v7 }
 0x7ad   : > { %4875 = vmatprep.subr.bf16.mxu1 %v6539_v21 }
 0x7ae   : > { %4892 = vmatpush3.bf16.msra.mxu0 %v4891_v27 }
 0x7af   : > { %4893 = vmatprep.subr.bf16.mxu0 %v6539_v21 }
 0x7b0   : > { %4877 = vmatpush3.bf16.msra.mxu1 %v4876_v10 }
 0x7b1   : > { %4878 = vmatprep.subr.bf16.mxu1 %v6539_v21 }
 0x7b2   : > { %4895 = vmatpush3.bf16.msra.mxu0 %v4894_v32 }
 0x7b3   : > { %4896 = vmatprep.subr.bf16.mxu0 %v6539_v21 }
 0x7b4   : > { %4880 = vmatpush3.bf16.msra.mxu1 %v4879_v13  ;;  %v2516_v13 = vadd.f32 %v2515_v4, %v2514_v63 }
 0x7b5   : > { %4881 = vmatprep.subr.bf16.mxu1 %v6539_v21 }
 0x7b6   : > { %4898 = vmatpush3.bf16.msra.mxu0 %v4897_v43 }
 0x7b7   : > { %4899 = vmatprep.subr.bf16.mxu0 %v6539_v21 }
 0x7b8   : > { %4883 = vmatpush3.bf16.msra.mxu1 %v4882_v15 }
 0x7b9   : > { %4517 = vmatprep.subr.mxu1 %v6541_v24 }
 0x7ba   : > { %4901 = vmatpush3.bf16.msra.mxu0 %v4900_v38 }
 0x7bb   : > { %4902 = vmatprep.subr.bf16.mxu0 %v6539_v21 }
 0x7be   : > { %4904 = vmatpush3.bf16.msra.mxu0 %v4903_v45 }
 0x7bf   : > { %4905 = vmatprep.subr.bf16.mxu0 %v6539_v21 }
 0x858   : > { %v2376_v57 = vpop.f32.mrb[4].mxu0  ;;  %v2446_v31 = vpop.f32.mrb[4].mxu1 }
 0x859   : > { %v2377_v36 = vadd.f32 %v3929_v55, %v2376_v57  ;;  %v2447_v21 = vadd.f32 %v3930_v46, %v2446_v31  ;;  %v4396_v39 = vpop.f32.mrb[5].mxu0  ;;  %v4431_v50 = vpop.f32.mrb[5].mxu1  ;;  %v3934_v57 = vld [vmem:[#allocation34] ss:$0 sm:$0xff] }
 0x85b   : > { %v2459_v47 = vsel %vm2458_vm8, %v2377_v36, 0.0  ;;  %v2517_v56 = vsel %vm2458_vm8, %v2447_v21, 0.0 }
 0x85c   : > { %v2460_v60 = vrot.slane %v2459_v47, 4  ;;  %v2518_v61 = vrot.slane %v2517_v56, 4 }
 0x85e   : > { %v2461_v0 = vadd.f32 %v2460_v60, %v2459_v47  ;;  %v2519_v1 = vadd.f32 %v2518_v61, %v2517_v56 }
 0x860   : > { %v2462_v2 = vrot.slane %v2461_v0, 2  ;;  %v2520_v42 = vrot.slane %v2519_v1, 2 }
 0x862   : > { %v2463_v5 = vadd.f32 %v2462_v2, %v2461_v0  ;;  %v2521_v6 = vadd.f32 %v2520_v42, %v2519_v1 }
 0x864   : > { %v2464_v7 = vrot.slane %v2463_v5, 1  ;;  %v2522_v8 = vrot.slane %v2521_v6, 1  ;;  %v2820_v9 = vpop.f32.mrb[6].mxu1 }
 0x865   : > { %v4446_v10 = vpop.f32.mrb[7].mxu1 }
 0x866   : > { %v2465_v12 = vadd.f32 %v2464_v7, %v2463_v5  ;;  %v2523_v14 = vadd.f32 %v2522_v8, %v2521_v6  ;;  %v2495_v5 = vlaneseq  ;;  %v2493_v7 = vld [vmem:[#allocation25] sm:$0x1]  ;;  %v2550_v10 = vld [vmem:[#allocation28] sm:$0x1] }
 0x868   : > { %v2467_v58 = vadd.f32 %v2465_v12, %v2457_v11  ;;  %v2525_v15 = vadd.f32 %v2523_v14, %v2516_v13  ;;  %v2496_v6 = vshrl.u32 %v2495_v5, 7 }
 0x86a   : > { %v2469_v59 = vmul.f32 0.083333336, %v2467_v58  ;;  %v2526_v16 = vmul.f32 0.083333336, %v2525_v15  ;;  %v7736_v8 = vsub.s32 0, %v2496_v6 }
 0x86c   : > { %v7714_v17 = vsub.f32 %v2140_v48, %v2469_v59  ;;  %v7716_v18 = vsub.f32 %v2377_v36, %v2469_v59  ;;  %v7718_v19 = vsub.f32 %v2233_v49, %v2526_v16  ;;  %v7720_v20 = vsub.f32 %v2447_v21, %v2526_v16  ;;  %v3932_v16 = vld [vmem:[#allocation29] ss:$0 sm:$0xff] }
 0x86e   : > { %v2471_v23 = vmul.f32 %v7714_v17, %v7714_v17  ;;  %v2480_v26 = vmul.f32 %v7716_v18, %v7716_v18  ;;  %v2528_v27 = vmul.f32 %v7718_v19, %v7718_v19  ;;  %v2537_v28 = vmul.f32 %v7720_v20, %v7720_v20 }
 0x870   : > { %v2472_v29 = vsel %vm2450_vm7, %v2471_v23, 0.0  ;;  %v2481_v32 = vsel %vm2458_vm8, %v2480_v26, 0.0  ;;  %v2529_v33 = vsel %vm2450_vm7, %v2528_v27, 0.0  ;;  %v2538_v34 = vsel %vm2458_vm8, %v2537_v28, 0.0 }
 0x871   : > { %v2473_v43 = vrot.slane %v2472_v29, 4  ;;  %v2482_v35 = vrot.slane %v2481_v32, 4  ;;  %v2530_v37 = vrot.slane %v2529_v33, 4  ;;  %v2539_v38 = vrot.slane %v2538_v34, 4 }
 0x873   : > { %v2474_v40 = vadd.f32 %v2473_v43, %v2472_v29  ;;  %v2483_v41 = vadd.f32 %v2482_v35, %v2481_v32  ;;  %v2531_v45 = vadd.f32 %v2530_v37, %v2529_v33  ;;  %v2540_v55 = vadd.f32 %v2539_v38, %v2538_v34  ;;  %v3931_v43 = vld [vmem:[#allocation26] ss:$0 sm:$0xff]  ;;  %v2570_v35 = vld [vmem:[#allocation11] sm:$0xff]  ;;  %v2576_v37 = vld [vmem:[#allocation12] sm:$0xf] }
 0x875   : > { %v2475_v46 = vrot.slane %v2474_v40, 2  ;;  %v2484_v48 = vrot.slane %v2483_v41, 2  ;;  %v2532_v49 = vrot.slane %v2531_v45, 2  ;;  %v2541_v51 = vrot.slane %v2540_v55, 2 }
 0x877   : > { %v2476_v52 = vadd.f32 %v2475_v46, %v2474_v40  ;;  %v2485_v54 = vadd.f32 %v2484_v48, %v2483_v41  ;;  %v2533_v22 = vadd.f32 %v2532_v49, %v2531_v45  ;;  %v2542_v25 = vadd.f32 %v2541_v51, %v2540_v55 }
 0x878   : > { %v4172_v30 = vpop.f32.mrb[6].mxu0 }
 0x879   : > { %v2477_v31 = vrot.slane %v2476_v52, 1  ;;  %v2486_v36 = vrot.slane %v2485_v54, 1  ;;  %v2534_v21 = vrot.slane %v2533_v22, 1  ;;  %v2543_v39 = vrot.slane %v2542_v25, 1  ;;  %v4173_v50 = vpop.f32.mrb[7].mxu0 }
 0x87a   : > { %v4174_v53 = vadd.f32 %v4173_v50, %v4172_v30 }
 0x87b   : > { %v2478_v44 = vadd.f32 %v2477_v31, %v2476_v52  ;;  %v2487_v47 = vadd.f32 %v2486_v36, %v2485_v54  ;;  %v2535_v56 = vadd.f32 %v2534_v21, %v2533_v22  ;;  %v2544_v60 = vadd.f32 %v2543_v39, %v2542_v25 }
 0x87c   : > { %v2751_v61 = vadd.f32 %v4174_v53, %v3934_v57 }
 0x87d   : > { %v2489_v62 = vadd.f32 %v2487_v47, %v2478_v44  ;;  %v2546_v63 = vadd.f32 %v2544_v60, %v2535_v56 }
 0x87e   : > { %v2821_v0 = vadd.f32 %v2820_v9, %v2751_v61 }
 0x87f   : > { %v2490_v1 = vmul.f32 0.083333336, %v2489_v62  ;;  %v2547_v2 = vmul.f32 0.083333336, %v2546_v63 }
 0x880   : > { %v2824_v42 = vmax.f32 %v2821_v0, 0.0 }
 0x881   : > { %v2491_v3 = vadd.f32 1e-05, %v2490_v1  ;;  %v2548_v4 = vadd.f32 1e-05, %v2547_v2 }
 0x882   : > { %4480 = vmatmul.mubr.f32.vlgmr.msra.gmra.mrb[8].mxu1 %v2824_v42 }
 0x883   : > { %5320 = vrsqrt.f32 %v2491_v3  ;;  %4519 = vmatprep.mubr.msk.f32.mxu1 %vm6540_vm6, %v6541_v24 }
 0x884   : > { %5322 = vrsqrt.f32 %v2548_v4 }
 0x88d   : > { %v5321_v11 = vpop.eup %5320 }
 0x88e   : > { %v5323_v12 = vpop.eup %5322  ;;  %v2494_v9 = vmul.f32 %v5321_v11, %v2493_v7 }
 0x88f   : > { %v2551_v13 = vmul.f32 %v5323_v12, %v2550_v10 }
 0x890   : > { %v2498_v14 = vrot.slane %v2494_v9, %v7736_v8 }
 0x891   : > { %v2555_v58 = vrot.slane %v2551_v13, %v7736_v8  ;;  %v2933_v13 = vld [vmem:[#allocation38 + $0x70] sm:$0xff] }
 0x892   : > { %v2499_v15 = vmul.f32 %v2498_v14, %v7714_v17  ;;  %v2508_v59 = vmul.f32 %v2498_v14, %v7716_v18  ;;  %v2934_v14 = vld [vmem:[#allocation38 + $0x78] sm:$0xff] }
 0x893   : > { %v2556_v23 = vmul.f32 %v2555_v58, %v7718_v19  ;;  %v2565_v26 = vmul.f32 %v2555_v58, %v7720_v20  ;;  %v4906_v58 = vpack.c.bf16 %v2934_v14, %v2933_v13 }
 0x894   : > { %v2507_v40 = vadd.f32 %v3931_v43, %v2499_v15  ;;  %v2509_v41 = vadd.f32 %v3931_v43, %v2508_v59  ;;  %v2619_v15 = vld [vmem:[#allocation44] sm:$0x1] }
 0x895   : > { %v2564_v27 = vadd.f32 %v3932_v16, %v2556_v23  ;;  %v2566_v28 = vadd.f32 %v3932_v16, %v2565_v26  ;;  %4907 = vmatpush3.bf16.msra.mxu0 %v4906_v58  ;;  %v3933_v26 = vld [vmem:[#allocation46] ss:$0 sm:$0xff] }
 0x897   : > { %v2567_v29 = vmul.f32 0.5, %v2564_v27  ;;  %v2573_v32 = vmul.f32 0.5, %v2566_v28 }
 0x899   : > { %v2568_v33 = vmul.f32 1.442695, %v2567_v29  ;;  %v2574_v34 = vmul.f32 1.442695, %v2573_v32 }
 0x89b   : > { %5324 = vpow2.f32 %v2568_v33  ;;  %v3937_v33 = vld [vmem:[#allocation37] ss:$0 sm:$0xff] }
 0x89c   : > { %5326 = vpow2.f32 %v2574_v34 }
 0x8a5   : > { %v5325_v38 = vpop.eup %5324 }
 0x8a6   : > { %v5327_v17 = vpop.eup %5326  ;;  %v2571_v18 = vmul.f32 %v5325_v38, %v2570_v35  ;;  %v3130_v38 = vld [vmem:[#allocation5] sm:$0xff] }
 0x8a7   : > { %v2577_v45 = vmul.f32 %v5327_v17, %v2576_v37 }
 0x8a8   : > { %v2572_v19 = vadd.f32 %v2571_v18, %v2507_v40  ;;  %v3129_v40 = vld [vmem:[#allocation4] sm:$0xff] }
 0x8a9   : > { %v2578_v55 = vadd.f32 %v2577_v45, %v2509_v41  ;;  %v3938_v45 = vld [vmem:[#allocation40] ss:$0 sm:$0xff] }
 0x8aa   : > { %v2579_v20 = vsel %vm2450_vm7, %v2572_v19, 0.0  ;;  %3227 = vst.msk [vmem:[#allocation49] sm:$0xff] %vm2450_vm7, %v2572_v19 }
 0x8ab   : > { %3316 = vst.msk [vmem:[#allocation50] sm:$0xf] %vm2458_vm8, %v2578_v55  ;;  %v2580_v46 = vrot.slane %v2579_v20, 4  ;;  %v2586_v48 = vsel %vm2458_vm8, %v2578_v55, 0.0 }
 0x8ac   : > { %v2587_v49 = vrot.slane %v2586_v48, 4 }
 0x8ad   : > { %v2581_v51 = vadd.f32 %v2580_v46, %v2579_v20 }
 0x8ae   : > { %v2588_v52 = vadd.f32 %v2587_v49, %v2586_v48 }
 0x8af   : > { %v2582_v54 = vrot.slane %v2581_v51, 2 }
 0x8b0   : > { %v2589_v22 = vrot.slane %v2588_v52, 2 }
 0x8b1   : > { %v2583_v25 = vadd.f32 %v2582_v54, %v2581_v51 }
 0x8b2   : > { %v2590_v30 = vadd.f32 %v2589_v22, %v2588_v52 }
 0x8b3   : > { %v2584_v57 = vrot.slane %v2583_v25, 1 }
 0x8b4   : > { %v2591_v31 = vrot.slane %v2590_v30, 1 }
 0x8b5   : > { %v2585_v36 = vadd.f32 %v2584_v57, %v2583_v25 }
 0x8b6   : > { %v2592_v21 = vadd.f32 %v2591_v31, %v2590_v30 }
 0x8b8   : > { %v2594_v39 = vadd.f32 %v2592_v21, %v2585_v36 }
 0x8ba   : > { %v2595_v50 = vmul.f32 0.083333336, %v2594_v39 }
 0x8bc   : > { %v2596_v53 = vsub.f32 %v2572_v19, %v2595_v50  ;;  %v2605_v44 = vsub.f32 %v2578_v55, %v2595_v50 }
 0x8be   : > { %v2597_v47 = vmul.f32 %v2596_v53, %v2596_v53  ;;  %v2606_v56 = vmul.f32 %v2605_v44, %v2605_v44 }
 0x8c0   : > { %v2598_v60 = vsel %vm2450_vm7, %v2597_v47, 0.0  ;;  %v2607_v61 = vsel %vm2458_vm8, %v2606_v56, 0.0 }
 0x8c1   : > { %v2599_v62 = vrot.slane %v2598_v60, 4  ;;  %v2608_v63 = vrot.slane %v2607_v61, 4 }
 0x8c3   : > { %v2600_v0 = vadd.f32 %v2599_v62, %v2598_v60  ;;  %v2609_v1 = vadd.f32 %v2608_v63, %v2607_v61  ;;  %v3035_v60 = vld [vmem:[#allocation41] sm:$0x1] }
 0x8c5   : > { %v2601_v2 = vrot.slane %v2600_v0, 2  ;;  %v2610_v42 = vrot.slane %v2609_v1, 2 }
 0x8c7   : > { %v2602_v3 = vadd.f32 %v2601_v2, %v2600_v0  ;;  %v2611_v4 = vadd.f32 %v2610_v42, %v2609_v1  ;;  %v3939_v0 = vld [vmem:[#allocation43] ss:$0 sm:$0xff] }
 0x8c9   : > { %v2603_v5 = vrot.slane %v2602_v3, 1  ;;  %v2612_v6 = vrot.slane %v2611_v4, 1 }
 0x8cb   : > { %v2604_v7 = vadd.f32 %v2603_v5, %v2602_v3  ;;  %v2613_v10 = vadd.f32 %v2612_v6, %v2611_v4  ;;  %v6542_v3 = vmov 1.0  }
 0x8cd   : > { %v2615_v11 = vadd.f32 %v2613_v10, %v2604_v7 }
 0x8cf   : > { %v2616_v12 = vmul.f32 0.083333336, %v2615_v11 }
 0x8d1   : > { %v2617_v9 = vadd.f32 1e-05, %v2616_v12 }
 0x8d3   : > { %5328 = vrsqrt.f32 %v2617_v9 }
 0x8d4   : > { %5330 = vlog2.f32 %v3130_v38 }
 0x8dd   : > { %v5329_v59 = vpop.eup %5328 }
 0x8de   : > { %v2620_v16 = vmul.f32 %v5329_v59, %v2619_v15  ;;  %v5331_v17 = vpop.eup %5330 }
 0x8df   : > { %v3132_v18 = vmul.f32 0.6931472, %v5331_v17 }
 0x8e0   : > { %v2624_v23 = vrot.slane %v2620_v16, %v7736_v8 }
 0x8e1   : > { %v3133_v41 = vadd.f32 %v3132_v18, %v3129_v40 }
 0x8e2   : > { %v2625_v27 = vmul.f32 %v2624_v23, %v2596_v53  ;;  %v2634_v28 = vmul.f32 %v2624_v23, %v2605_v44 }
 0x8e3   : > { %3134 = vst.msk [vmem:[#allocation59] sm:$0xff] %vm1939_vm5, %v3133_v41 }
 0x8e4   : > { %v2633_v29 = vadd.f32 %v3933_v26, %v2625_v27  ;;  %v2635_v32 = vadd.f32 %v3933_v26, %v2634_v28 }
 0x8e6   : > { %3228 = vst.msk [vmem:[#allocation52] sm:$0xff] %vm2450_vm7, %v2633_v29 }
 0x8e7   : > { %3317 = vst.msk [vmem:[#allocation53] sm:$0xf] %vm2458_vm8, %v2635_v32 }
 0x955   : > { %v2914_v34 = vpop.f32.mrb[8].mxu1 }
 0x956   : > { %v2915_v43 = vadd.f32 %v3937_v33, %v2914_v34  ;;  %v4481_v35 = vpop.f32.mrb[9].mxu1 }
 0x958   : > { %v2918_v37 = vmax.f32 %v2915_v43, 0.0 }
 0x95a   : > { %4515 = vmatmul.mubr.f32.vlgmr.msra.gmra.mrb[8].mxu0 %v2918_v37 }
 0xa2d   : > { %v3008_v19 = vpop.f32.mrb[8].mxu0 }
 0xa2e   : > { %v3009_v55 = vadd.f32 %v3938_v45, %v3008_v19  ;;  %v4516_v20 = vpop.f32.mrb[9].mxu0 }
 0xa30   : > { %v3012_v46 = vsel %vm2450_vm7, %v3009_v55, 0.0 }
 0xa31   : > { %v3013_v48 = vrot.slane %v3012_v46, 4 }
 0xa33   : > { %v3014_v49 = vadd.f32 %v3013_v48, %v3012_v46 }
 0xa35   : > { %v3015_v51 = vrot.slane %v3014_v49, 2 }
 0xa37   : > { %v3016_v52 = vadd.f32 %v3015_v51, %v3014_v49 }
 0xa39   : > { %v3017_v54 = vrot.slane %v3016_v52, 1 }
 0xa3b   : > { %v3018_v22 = vadd.f32 %v3017_v54, %v3016_v52 }
 0xa3d   : > { %v3021_v25 = vmul.f32 0.125, %v3018_v22 }
 0xa3f   : > { %v3022_v30 = vsub.f32 %v3009_v55, %v3021_v25 }
 0xa41   : > { %v3023_v57 = vmul.f32 %v3022_v30, %v3022_v30 }
 0xa43   : > { %v3024_v31 = vsel %vm2450_vm7, %v3023_v57, 0.0 }
 0xa44   : > { %v3025_v36 = vrot.slane %v3024_v31, 4 }
 0xa46   : > { %v3026_v21 = vadd.f32 %v3025_v36, %v3024_v31 }
 0xa48   : > { %v3027_v39 = vrot.slane %v3026_v21, 2 }
 0xa4a   : > { %v3028_v50 = vadd.f32 %v3027_v39, %v3026_v21 }
 0xa4c   : > { %v3029_v53 = vrot.slane %v3028_v50, 1 }
 0xa4e   : > { %v3030_v44 = vadd.f32 %v3029_v53, %v3028_v50 }
 0xa50   : > { %v3032_v47 = vmul.f32 0.125, %v3030_v44 }
 0xa52   : > { %v3033_v56 = vadd.f32 1e-05, %v3032_v47 }
 0xa54   : > { %5332 = vrsqrt.f32 %v3033_v56 }
 0xa5e   : > { %v5333_v61 = vpop.eup %5332 }
 0xa5f   : > { %v3036_v62 = vmul.f32 %v5333_v61, %v3035_v60 }
 0xa61   : > { %v3040_v63 = vrot.slane %v3036_v62, %v7736_v8 }
 0xa63   : > { %v3041_v1 = vmul.f32 %v3040_v63, %v3022_v30 }
 0xa65   : > { %v3049_v2 = vadd.f32 %v3939_v0, %v3041_v1 }
 0xa67   : > { %3128 = vst.msk [vmem:[#allocation58] sm:$0xff] %vm2450_vm7, %v3049_v2  ;;  %v3050_v42 = vmul.f32 %v3049_v2, %v3049_v2 }
 0xa69   : > { %4518 = vmatpush3.xpose.msk.msra.mxu1 %vm2450_vm7, %v3050_v42 }
 0xa6a   : > { %4522 = vmatprep.subr.mxu1 %v6541_v24 }
 0xa6c   : > { %4520 = vmatmul.mubr.msk.f32.vlgmr.msra.gmra.mrb[10].mxu1 %vm2450_vm7, %v6542_v3 }
 0xa6d   : > { %4523 = vmatpush3.xpose.msk.msra.mxu1 %vm2450_vm7, %v3049_v2  ;;  %4524 = vmatprep.mubr.msk.f32.mxu1 %vm6540_vm6, %v6541_v24 }
 0xa6e   : > { %4527 = vmatprep.subr.mxu1 %v6541_v24 }
 0xa70   : > { %4525 = vmatmul.mubr.msk.f32.vlgmr.msra.gmra.mrb[12].mxu1 %vm2450_vm7, %v2633_v29 }
 0xa71   : > { %4528 = vmatpush3.xpose.msk.msra.mxu1 %vm2450_vm7, %v3049_v2  ;;  %4529 = vmatprep.mubr.msk.f32.mxu1 %vm6540_vm6, %v6541_v24 }
 0xa74   : > { %4530 = vmatmul.mubr.msk.f32.vlgmr.msra.gmra.mrb[14].mxu1 %vm2450_vm7, %v2635_v32 }
 0xb3f   : > { %v3123_v4 = vpop.f32.mrb[10].mxu1 }
 0xb40   : > { %v3127_v5 = vmul.f32 0.5, %v3123_v4  ;;  %v4521_v6 = vpop.f32.mrb[11].mxu1 }
 0xb42   : > { %v3214_v7 = vrot.slane %v3127_v5, %v7736_v8 }
 0xb43   : > { %v3207_v10 = vpop.f32.mrb[12].mxu1 }
 0xb44   : > { %v3215_v11 = vsub.f32 %v3207_v10, %v3214_v7  ;;  %v4526_v12 = vpop.f32.mrb[13].mxu1 }
 0xb46   : > { %v3217_v9 = vsel %vm3216_vm9, %v3215_v11, -inf }
 0xb47   : > { %3218 = vmax.xlane.f32.xlu0 %v3217_v9  ;;  %v3300_v13 = vpop.f32.mrb[14].mxu1 }
 0xb48   : > { %v3304_v14 = vsub.f32 %v3300_v13, %v3214_v7  ;;  %v4531_v58 = vpop.f32.mrb[15].mxu1 }
 0xb4a   : > { %v3306_v24 = vsel %vm3305_vm10, %v3304_v14, -inf }
 0xb4b   : > { %3307 = vmax.xlane.f32.xlu0 %v3306_v24 }
 0xbd4   : > { %v3219_v15 = vpop.xlane.xlu0 %3218 }
 0xbd5   : > { %v3220_v59 = vsub.f32 %v3215_v11, %v3219_v15 }
 0xbd7   : > { %v3221_v16 = vmul.f32 1.442695, %v3220_v59 }
 0xbd8   : > { %v3308_v23 = vpop.xlane.xlu0 %3307 }
 0xbd9   : > { %5334 = vpow2.f32 %v3221_v16  ;;  %v3309_v8 = vsub.f32 %v3304_v14, %v3308_v23 }
 0xbdb   : > { %v3310_v26 = vmul.f32 1.442695, %v3309_v8 }
 0xbdd   : > { %5336 = vpow2.f32 %v3310_v26 }
 0xbe3   : > { %v5335_v27 = vpop.eup %5334 }
 0xbe4   : > { %v3223_v28 = vsel %vm3216_vm9, %v5335_v27, 0.0 }
 0xbe5   : > { %3224 = vadd.xlane.f32.xlu1 %v3223_v28 }
 0xbe7   : > { %v5337_v29 = vpop.eup %5336 }
 0xbe8   : > { %v3312_v32 = vsel %vm3305_vm10, %v5337_v29, 0.0 }
 0xbe9   : > { %3313 = vadd.xlane.f32.xlu1 %v3312_v32 }
 0xc72   : > { %v3225_v33 = vpop.xlane.xlu1 %3224 }
 0xc73   : > { %5338 = vrcp.f32 %v3225_v33 }
 0xc76   : > { %v3314_v34 = vpop.xlane.xlu1 %3313 }
 0xc77   : > { %5340 = vrcp.f32 %v3314_v34 }
 0xc7d   : > { %v5339_v43 = vpop.eup %5338 }
 0xc7e   : > { %v3229_v35 = vmul.f32 %v5339_v43, %v5335_v27 }
 0xc80   : > { %3230 = vst.msk [vmem:[#allocation55] sm:$0xff] %vm3216_vm9, %v3229_v35 }
 0xc81   : > { %v5341_v37 = vpop.eup %5340 }
 0xc82   : > { %v3318_v38 = vmul.f32 %v5341_v37, %v5337_v29 }
 0xc84   : > { %3319 = vst.msk [vmem:[#allocation56] sm:$0xf] %vm3305_vm10, %v3318_v38 }
 0xc85 PF: > { %p5183_p2 = scmp.eq.s32.totalorder %s6757_s2, 1  ;;  %s6543_s15 = smov [#allocation50]  }
 0xc86   : > { %s3338_s3 = sshll.u32 %s6543_s15, 4  ;;  %s6544_s11 = smov [#allocation53]   ;;  %s3339_s3 = int_to_ptr.vmem [resolvable:$true] %s3338_s3 }
 0xc87   : > { %s3360_s19 = sshll.u32 %s6544_s11, 4  ;;  %s6134_s0 = scalar_lea.vmem %s3339_s3, 64  ;;  %s3361_s19 = int_to_ptr.vmem [resolvable:$true] %s3360_s19 }
 0xc88   : > { %p6135_p11 = scmp.ne.s32.totalorder %s3339_s3, %s6134_s0  ;;  %p6141_p4 = scmp.lt.s32.totalorder %s3339_s3, %s3339_s3 }
 0xc89   : > { %p6142_p13 = scmp.lt.s32.totalorder %s6134_s0, %s6134_s0 }
 0xc8a   : > { %p6136_p12 = pnand %p6135_p11, %p5183_p2 }
 0xc8b   : > { %p6143_p0 = por %p6142_p13, %p6141_p4 }
 0xc8c   : > { %p6137_p1 = pneg %p6136_p12 }
 0xc8e   : > { %p6144_p9 = pnand %p6143_p0, %p6137_p1 }
 0xc90   : > { %6147 = shalt.err (!%p6144_p9)
}
 0xc91   : > { %s8062_s13 = sld [smem:[#allocation112_spill]] }
 0xc97   : > { %s6148_s14 = scalar_lea.hbm %s8062_s13, 64 }
 0xc98   : > { %p6149_p10 = scmp.ne.s32.totalorder %s8062_s13, %s6148_s14  ;;  %p6154_p8 = scmp.lt.u32.totalorder %s6148_s14, %s8062_s13 }
 0xc9a   : > { %p6150_p6 = pnand %p6149_p10, %p5183_p2 }
 0xc9c   : > { %p6151_p7 = pneg %p6150_p6 }
 0xc9e   : > { %p6156_p3 = pnand %p6154_p8, %p6151_p7 }
 0xca0   : > { %6159 = shalt.err (!%p6156_p3)
}
 0xca1   : > { %5019 = dma.vmem_to_hbm [thread:$0]  (%p5183_p2), %s3339_s3, 64, %s8062_s13, [#allocation51]  }
 0xca2   : > { %s6160_s21 = scalar_lea.vmem %s3361_s19, 64  ;;  %p6167_p1 = scmp.lt.s32.totalorder %s3361_s19, %s3361_s19 }
 0xca3   : > { %p6161_p5 = scmp.ne.s32.totalorder %s3361_s19, %s6160_s21  ;;  %p6168_p4 = scmp.lt.s32.totalorder %s6160_s21, %s6160_s21 }
 0xca5   : > { %p6162_p11 = pnand %p6161_p5, %p5183_p2  ;;  %p6169_p13 = por %p6168_p4, %p6167_p1 }
 0xca7   : > { %p6163_p12 = pneg %p6162_p11 }
 0xca9   : > { %p6170_p0 = pnand %p6169_p13, %p6163_p12 }
 0xcab   : > { %6173 = shalt.err (!%p6170_p0)
}
 0xcac   : > { %s8063_s5 = sld [smem:[#allocation114_spill]] }
 0xcb2   : > { %s6174_s20 = scalar_lea.hbm %s8063_s5, 64 }
 0xcb3   : > { %p6175_p9 = scmp.ne.s32.totalorder %s8063_s5, %s6174_s20  ;;  %p6180_p7 = scmp.lt.u32.totalorder %s6174_s20, %s8063_s5 }
 0xcb5   : > { %p6176_p10 = pnand %p6175_p9, %p5183_p2 }
 0xcb7   : > { %p6177_p6 = pneg %p6176_p10 }
 0xcb9   : > { %p6182_p8 = pnand %p6180_p7, %p6177_p6 }
 0xcbb   : > { %6185 = shalt.err (!%p6182_p8)
}
 0xcbc   : > { %5023 = dma.vmem_to_hbm [thread:$0]  (%p5183_p2), %s3361_s19, 64, %s8063_s5, [#allocation54]  }
 0xcbd   : > { %s6545_s18 = smov [#allocation56]   ;;  %s6546_s6 = smov [#allocation49]  }
 0xcbe   : > { %s3382_s1 = sshll.u32 %s6545_s18, 4  ;;  %s3327_s7 = sshll.u32 %s6546_s6, 4  ;;  %s3383_s1 = int_to_ptr.vmem [resolvable:$true] %s3382_s1  ;;  %s3328_s7 = int_to_ptr.vmem [resolvable:$true] %s3327_s7 }
 0xcbf   : > { %s6186_s4 = scalar_lea.vmem %s3383_s1, 64  ;;  %p6193_p12 = scmp.lt.s32.totalorder %s3383_s1, %s3383_s1 }
 0xcc0   : > { %p6187_p3 = scmp.ne.s32.totalorder %s3383_s1, %s6186_s4  ;;  %p6194_p1 = scmp.lt.s32.totalorder %s6186_s4, %s6186_s4 }
 0xcc2   : > { %p6188_p5 = pnand %p6187_p3, %p5183_p2  ;;  %p6195_p4 = por %p6194_p1, %p6193_p12 }
 0xcc4   : > { %p6189_p11 = pneg %p6188_p5 }
 0xcc6   : > { %p6196_p13 = pnand %p6195_p4, %p6189_p11 }
 0xcc8   : > { %6199 = shalt.err (!%p6196_p13)
}
 0xcc9   : > { %s6200_s12 = scalar_lea.hbm %s6724_s29, 64 }
 0xcca   : > { %p6201_p0 = scmp.ne.s32.totalorder %s6724_s29, %s6200_s12  ;;  %p6206_p6 = scmp.lt.u32.totalorder %s6200_s12, %s6724_s29 }
 0xccc   : > { %p6202_p9 = pnand %p6201_p0, %p5183_p2 }
 0xcce   : > { %p6203_p10 = pneg %p6202_p9 }
 0xcd0   : > { %p6208_p7 = pnand %p6206_p6, %p6203_p10 }
 0xcd2   : > { %6211 = shalt.err (!%p6208_p7)
}
 0xcd3   : > { %5027 = dma.vmem_to_hbm [thread:$0]  (%p5183_p2), %s3383_s1, 64, %s6724_s29, [#allocation57]  }
 0xcd4   : > { %s6212_s17 = scalar_lea.vmem %s3328_s7, 128  ;;  %p6219_p11 = scmp.lt.s32.totalorder %s3328_s7, %s3328_s7 }
 0xcd5   : > { %p6213_p8 = scmp.ne.s32.totalorder %s3328_s7, %s6212_s17  ;;  %p6220_p12 = scmp.lt.s32.totalorder %s6212_s17, %s6212_s17 }
 0xcd7   : > { %p6214_p3 = pnand %p6213_p8, %p5183_p2  ;;  %p6221_p1 = por %p6220_p12, %p6219_p11 }
 0xcd9   : > { %p6215_p5 = pneg %p6214_p3 }
 0xcdb   : > { %p6222_p4 = pnand %p6221_p1, %p6215_p5 }
 0xcdd   : > { %6225 = shalt.err (!%p6222_p4)
}
 0xcde   : > { %s8064_s10 = sld [smem:[#allocation111_spill]] }
 0xce4   : > { %s6226_s26 = scalar_lea.hbm %s8064_s10, 128 }
 0xce5   : > { %p6227_p13 = scmp.ne.s32.totalorder %s8064_s10, %s6226_s26  ;;  %p6232_p10 = scmp.lt.u32.totalorder %s6226_s26, %s8064_s10 }
 0xce7   : > { %p6228_p0 = pnand %p6227_p13, %p5183_p2 }
 0xce9   : > { %p6229_p9 = pneg %p6228_p0 }
 0xceb   : > { %p6234_p6 = pnand %p6232_p10, %p6229_p9 }
 0xced   : > { %6237 = shalt.err (!%p6234_p6)
}
 0xcee   : > { %5017 = dma.vmem_to_hbm [thread:$0]  (%p5183_p2), %s3328_s7, 128, %s8064_s10, [#allocation8]  }
 0xcef   : > { %s6547_s9 = smov [#allocation52]   ;;  %s6548_s3 = smov [#allocation55]  }
 0xcf0   : > { %s3349_s15 = sshll.u32 %s6547_s9, 4  ;;  %s3371_s11 = sshll.u32 %s6548_s3, 4  ;;  %s3350_s15 = int_to_ptr.vmem [resolvable:$true] %s3349_s15  ;;  %s3372_s11 = int_to_ptr.vmem [resolvable:$true] %s3371_s11 }
 0xcf1   : > { %s6238_s19 = scalar_lea.vmem %s3350_s15, 128  ;;  %p6245_p5 = scmp.lt.s32.totalorder %s3350_s15, %s3350_s15 }
 0xcf2   : > { %p6239_p7 = scmp.ne.s32.totalorder %s3350_s15, %s6238_s19  ;;  %p6246_p11 = scmp.lt.s32.totalorder %s6238_s19, %s6238_s19 }
 0xcf4   : > { %p6240_p8 = pnand %p6239_p7, %p5183_p2  ;;  %p6247_p12 = por %p6246_p11, %p6245_p5 }
 0xcf6   : > { %p6241_p3 = pneg %p6240_p8 }
 0xcf8   : > { %p6248_p1 = pnand %p6247_p12, %p6241_p3 }
 0xcfa   : > { %6251 = shalt.err (!%p6248_p1)
}
 0xcfb   : > { %s8065_s0 = sld [smem:[#allocation113_spill]] }
 0xd01   : > { %s8066_s14 = smov %s8065_s0  ;;  %s6252_s21 = scalar_lea.hbm %s8065_s0, 128 }
 0xd02   : > { %p6253_p4 = scmp.ne.s32.totalorder %s8066_s14, %s6252_s21  ;;  %p6258_p9 = scmp.lt.u32.totalorder %s6252_s21, %s8066_s14 }
 0xd04   : > { %p6254_p13 = pnand %p6253_p4, %p5183_p2 }
 0xd06   : > { %p6255_p0 = pneg %p6254_p13 }
 0xd08   : > { %p6260_p10 = pnand %p6258_p9, %p6255_p0 }
 0xd0a   : > { %6263 = shalt.err (!%p6260_p10)
}
 0xd0b   : > { %5021 = dma.vmem_to_hbm [thread:$0]  (%p5183_p2), %s3350_s15, 128, %s8066_s14, [#allocation51]  }
 0xd0c   : > { %s6264_s20 = scalar_lea.vmem %s3372_s11, 128  ;;  %p6271_p3 = scmp.lt.s32.totalorder %s3372_s11, %s3372_s11 }
 0xd0d   : > { %p6265_p6 = scmp.ne.s32.totalorder %s3372_s11, %s6264_s20  ;;  %p6272_p5 = scmp.lt.s32.totalorder %s6264_s20, %s6264_s20 }
 0xd0f   : > { %p6266_p7 = pnand %p6265_p6, %p5183_p2  ;;  %p6273_p11 = por %p6272_p5, %p6271_p3 }
 0xd11   : > { %p6267_p8 = pneg %p6266_p7 }
 0xd13   : > { %p6274_p12 = pnand %p6273_p11, %p6267_p8 }
 0xd15   : > { %6277 = shalt.err (!%p6274_p12)
}
 0xd16   : > { %s6278_s18 = scalar_lea.hbm %s6719_s27, 128 }
 0xd17   : > { %p6279_p1 = scmp.ne.s32.totalorder %s6719_s27, %s6278_s18  ;;  %p6284_p0 = scmp.lt.u32.totalorder %s6278_s18, %s6719_s27 }
 0xd19   : > { %p6280_p4 = pnand %p6279_p1, %p5183_p2 }
 0xd1b   : > { %p6281_p13 = pneg %p6280_p4 }
 0xd1d   : > { %p6286_p9 = pnand %p6284_p0, %p6281_p13 }
 0xd1f   : > { %6289 = shalt.err (!%p6286_p9)
}
 0xd20   : > { %5025 = dma.vmem_to_hbm [thread:$0]  (%p5183_p2), %s3372_s11, 128, %s6719_s27, [#allocation54]  }
 0xd21   : > { %s6549_s1 = smov [#allocation58]   ;;  %s6550_s7 = smov [#allocation59]  }
 0xd22   : > { %s3393_s6 = sshll.u32 %s6549_s1, 4  ;;  %s3404_s4 = sshll.u32 %s6550_s7, 4  ;;  %s3394_s6 = int_to_ptr.vmem [resolvable:$true] %s3393_s6  ;;  %s3405_s4 = int_to_ptr.vmem [resolvable:$true] %s3404_s4 }
 0xd23   : > { %s6290_s12 = scalar_lea.vmem %s3394_s6, 128  ;;  %p6297_p8 = scmp.lt.s32.totalorder %s3394_s6, %s3394_s6 }
 0xd24   : > { %p6291_p10 = scmp.ne.s32.totalorder %s3394_s6, %s6290_s12  ;;  %p6298_p3 = scmp.lt.s32.totalorder %s6290_s12, %s6290_s12 }
 0xd26   : > { %p6292_p6 = pnand %p6291_p10, %p5183_p2  ;;  %p6299_p5 = por %p6298_p3, %p6297_p8 }
 0xd28   : > { %p6293_p7 = pneg %p6292_p6 }
 0xd2a   : > { %p6300_p11 = pnand %p6299_p5, %p6293_p7 }
 0xd2c   : > { %6303 = shalt.err (!%p6300_p11)
}
 0xd2d   : > { %s8067_s17 = sld [smem:[#allocation115_spill]] }
 0xd33   : > { %s6304_s26 = scalar_lea.hbm %s8067_s17, 128 }
 0xd34   : > { %p6305_p12 = scmp.ne.s32.totalorder %s8067_s17, %s6304_s26  ;;  %p6310_p13 = scmp.lt.u32.totalorder %s6304_s26, %s8067_s17 }
 0xd36   : > { %p6306_p1 = pnand %p6305_p12, %p5183_p2 }
 0xd38   : > { %p6307_p4 = pneg %p6306_p1 }
 0xd3a   : > { %p6312_p0 = pnand %p6310_p13, %p6307_p4 }
 0xd3c   : > { %6315 = shalt.err (!%p6312_p0)
}
 0xd3d   : > { %5029 = dma.vmem_to_hbm [thread:$0]  (%p5183_p2), %s3394_s6, 128, %s8067_s17, [#allocation57]  }
 0xd3e   : > { %s6316_s9 = scalar_lea.vmem %s3405_s4, 128  ;;  %p6323_p7 = scmp.lt.s32.totalorder %s3405_s4, %s3405_s4 }
 0xd3f   : > { %p6317_p9 = scmp.ne.s32.totalorder %s3405_s4, %s6316_s9  ;;  %p6324_p8 = scmp.lt.s32.totalorder %s6316_s9, %s6316_s9 }
 0xd41   : > { %p6318_p10 = pnand %p6317_p9, %p5183_p2  ;;  %p6325_p3 = por %p6324_p8, %p6323_p7 }
 0xd43   : > { %p6319_p6 = pneg %p6318_p10 }
 0xd45   : > { %p6326_p5 = pnand %p6325_p3, %p6319_p6 }
 0xd47   : > { %6329 = shalt.err (!%p6326_p5)
}
 0xd48   : > { %s8068_s15 = sld [smem:[#allocation116_spill]] }
 0xd4e   : > { %s6330_s3 = scalar_lea.hbm %s8068_s15, 128 }
 0xd4f   : > { %p6331_p11 = scmp.ne.s32.totalorder %s8068_s15, %s6330_s3  ;;  %p6336_p4 = scmp.lt.u32.totalorder %s6330_s3, %s8068_s15 }
 0xd51   : > { %p6332_p12 = pnand %p6331_p11, %p5183_p2 }
 0xd53   : > { %p6333_p1 = pneg %p6332_p12 }
 0xd55   : > { %p6338_p13 = pnand %p6336_p4, %p6333_p1 }
 0xd57   : > { %6341 = shalt.err (!%p6338_p13)
}
 0xd58   : > { %5031 = dma.vmem_to_hbm [thread:$0]  (%p5183_p2), %s3405_s4, 128, %s8068_s15, [#allocation60]  }
 0xd59   : > { %6431 = dma.done.wait (%p5183_p2), [#allocation8], 128  }
 0xd5a   : > { %6433 = vsyncadd (%p5183_p2), [#allocation8], 4294967168 }
 0xd5b   : > { %6435 = dma.done.wait (%p5183_p2), [#allocation51], 192  }
 0xd5c   : > { %6437 = vsyncadd (%p5183_p2), [#allocation51], 4294967104 }
 0xd5d   : > { %6439 = dma.done.wait (%p5183_p2), [#allocation54], 192  }
 0xd5e   : > { %6441 = vsyncadd (%p5183_p2), [#allocation54], 4294967104 }
 0xd5f   : > { %6443 = dma.done.wait (%p5183_p2), [#allocation57], 192  }
 0xd60   : > { %6445 = vsyncadd (%p5183_p2), [#allocation57], 4294967104 }
 0xd61   : > { %6447 = dma.done.wait (%p5183_p2), [#allocation60], 128  }
 0xd62   : > { %6449 = vsyncadd (%p5183_p2), [#allocation60], 4294967168 }
 0xd63 PF: > { %p104_p0 = scmp.ge.s32.totalorder %s6961_s16, 4   ;;  %s8069_s0 = smov %s6456_s22 }
 0xd64   : > { %s8070_s22 = smov %s6460_s23  ;;  %s8071_s23 = smov %s6972_s8 }
 0xd65   : > { %s8072_s26 = smov %s6961_s16  ;;  %106 = sbr.rel (!%p104_p0) target bundleno = 99 (0x63), region = 401 }
 0xd6c   :  { %3445 = vsyncpa [#allocation7], 1 }
 0xd6d   :  { %3447 = vsyncpa [#allocation7 + $0x1], 1 }
 0xd6e   :  { %3448 = vsyncpa [#allocation10], 1 }
 0xd6f   :  { %3450 = vsyncpa [#allocation10 + $0x1], 1 }
 0xd70   :  { %3451 = vsyncpa [#allocation13], 1 }
 0xd71   :  { %3452 = vsyncpa [#allocation18], 1 }
 0xd72   :  { %3453 = vsyncpa [#allocation21], 1 }
 0xd73   :  { %3454 = vsyncpa [#allocation24], 1 }
 0xd74   :  { %3455 = vsyncpa [#allocation27], 1 }
 0xd75   :  { %3456 = vsyncpa [#allocation30], 1 }
 0xd76   :  { %3457 = vsyncpa [#allocation33], 1 }
 0xd77   :  { %3458 = vsyncpa [#allocation36], 1 }
 0xd78   :  { %3459 = vsyncpa [#allocation39], 1 }
 0xd79   :  { %3460 = vsyncpa [#allocation42], 1 }
 0xd7a   :  { %3461 = vsyncpa [#allocation45], 1 }
 0xd7b   :  { %3462 = vsyncpa [#allocation48], 1 }
 0xd7c   :  { %3464 = vsyncpa [#allocation48 + $0x1], 1 }
 0xd7d   :  { %3465 = vsyncpa [#allocation8], 1 }
 0xd7e   :  { %3467 = vsyncpa [#allocation8 + $0x1], 1 }
 0xd7f   :  { %3468 = vsyncpa [#allocation51], 1 }
 0xd80   :  { %3469 = vsyncpa [#allocation54], 1 }
 0xd81   :  { %3470 = vsyncpa [#allocation57], 1 }
 0xd82   :  { %3471 = vsyncpa [#allocation60], 1 }

</bundles_post_ra>
